<compile_context>
chip_gen: v7x
topology: tpu7x:2x2x1
jax: 0.10.0
libtpu: 0.0.40
codegen_flags: <defaults>
</compile_context>

<pallas_src>
import math

import jax
import jax.numpy as jnp
import numpy as np
from jax import lax
from jax.experimental import pallas as pl
from jax.experimental.pallas import tpu as pltpu

CONDITION_SIZE = 2   # the `condition_size` global used by the original Decoder
_LANE = 128
_SUB = 8


def _round_up(n, m):
    return ((n + m - 1) // m) * m


# --------------------------------------------------------------------- LSTM pieces

def _lstm_recurrence(xp_ref, w_hh, h0, c0, out_ref, steps, batch):
    """Serial LSTM recurrence.  xp_ref holds the hoisted per-step input projections
    (all biases folded), time-major rows [t*batch, (t+1)*batch).  Each step's hidden
    state is written into the same rows of out_ref (unmasked 8-row sublane stores)."""
    H = w_hh.shape[0]

    def step(t, carry):
        h, c = carry
        off = pl.multiple_of(t * batch, _SUB)
        gates = xp_ref[pl.ds(off, batch), :] + jnp.dot(
            h, w_hh, preferred_element_type=jnp.float32)
        sg = jax.nn.sigmoid(gates)                       # one full-width EUP pass (i,f,o)
        g = jnp.tanh(gates[:, 2 * H:3 * H])
        c = sg[:, H:2 * H] * c + sg[:, 0:H] * g
        h = sg[:, 3 * H:4 * H] * jnp.tanh(c)
        out_ref[pl.ds(off, batch), :] = h
        return (h, c)

    lax.fori_loop(0, steps, step, (h0, c0), unroll=True if steps <= 8 else 4)


def _lstm_layer(seq_scr, xp_scr, w_ih, w_hh, b, h0, c0, steps, batch):
    """One LSTM layer whose input sequence lives in seq_scr ((S*B, H), time-major).
    The hoisted input projection is a single matmul into xp_scr; the recurrence output
    overwrites seq_scr."""
    xp_scr[...] = jnp.dot(seq_scr[...], w_ih,
                          preferred_element_type=jnp.float32) + b
    _lstm_recurrence(xp_scr, w_hh, h0, c0, seq_scr, steps, batch)


# --------------------------------------------------------------------- fused kernel

def _make_vae_kernel(BP, S, He, Hd, R, O, OP):
    def kernel(x_ref, eps_ref, cond_ref,
               w_enc0, b_enc0, we_hh0,
               we_ih1, we_hh1, be_1,
               w_ms, b_ms,
               w_z, w_c, b_post,
               w_dx, wd_hh0,
               wd_ih1, wd_hh1, bd_1,
               wd_ih2, wd_hh2, bd_2,
               w_heads, b_heads, seg, seg_t,
               musig_ref, heads_ref,
               xp_e, enc_scr, xp_d, dec_scr):
        x2d = x_ref[0]                                   # (S*BP, D), time-major rows
        eps = eps_ref[0]                                 # (BP, R)
        cond = cond_ref[0]                               # (BP, cs) == x[:, 0, -cs:]

        # cond-only part of the fused post-z projection: no encoder dependence, placed
        # first so the scheduler can overlap it with the serial recurrences below.
        post_c = jnp.dot(cond, w_c[...], preferred_element_type=jnp.float32) + b_post[...]

        # ------------------------------ encoder ------------------------------
        # emb -> lstm0 input projection pre-composed into w_enc0/b_enc0 (exact).
        xp_e[...] = jnp.dot(x2d, w_enc0[...],
                            preferred_element_type=jnp.float32) + b_enc0[...]
        hz = jnp.zeros((BP, He), jnp.float32)
        _lstm_recurrence(xp_e, we_hh0[...], hz, hz, enc_scr, S, BP)
        _lstm_layer(enc_scr, xp_e, we_ih1[...], we_hh1[...], be_1[...], hz, hz, S, BP)

        last = enc_scr[pl.ds((S - 1) * BP, BP), :]       # (BP, He) == enc_out[:, -1, :]
        musig = jnp.dot(last, w_ms[...],
                        preferred_element_type=jnp.float32) + b_ms[...]
        musig_ref[0] = musig
        mu = musig[:, 0:R]
        sigma = musig[:, R:2 * R]
        # reparameterization: z = mu + exp(0.5*sigma) * eps  (eps supplied explicitly)
        z = mu + jnp.exp(0.5 * sigma) * eps              # (BP, R)

        # ------------------------------ decoder ------------------------------
        # One fused (BP,R)x(R,8Hd+1) matmul (cond part precomputed above) producing:
        #   [0:4Hd)    base0    = time-invariant z/cond/bias part of lstm0 projection
        #   [4Hd:8Hd)  xp_f     = full step-0 projection (f_rep -> emb chain folded)
        #   [8Hd]      cond_val = f_rep(...)[:, D-cs] used to fill h0/c0 of all layers
        post = jnp.dot(z, w_z[...], preferred_element_type=jnp.float32) + post_c
        base0 = post[:, 0:4 * Hd]
        xp_f = post[:, 4 * Hd:8 * Hd]
        cond_val = post[:, 8 * Hd:8 * Hd + 1]
        h0d = jnp.broadcast_to(cond_val, (BP, Hd))
        c0d = h0d

        # hoisted layer-0 input projections for the shifted sequence
        # [f_rep(rep), x_0, ..., x_{S-2}]; base0 folded into the slab once.
        xp_d[pl.ds(0, BP), :] = xp_f
        if S > 1:
            xp_d[pl.ds(BP, (S - 1) * BP), :] = (
                jnp.dot(x2d[0:(S - 1) * BP, :], w_dx[...],
                        preferred_element_type=jnp.float32)
                + jnp.tile(base0, (S - 1, 1)))

        _lstm_recurrence(xp_d, wd_hh0[...], h0d, c0d, dec_scr, S, BP)
        _lstm_layer(dec_scr, xp_d, wd_ih1[...], wd_hh1[...], bd_1[...], h0d, c0d, S, BP)
        _lstm_layer(dec_scr, xp_d, wd_ih2[...], wd_hh2[...], bd_2[...], h0d, c0d, S, BP)

        # TODO(synk): nn.Dropout(0.5) is stochastic in train mode; eval-mode identity here.

        # ---- fused lane-dense heads: one matmul + 5-segment softmax, one unmasked store
        logits = jnp.dot(dec_scr[...], w_heads[...],
                         preferred_element_type=jnp.float32) + b_heads[...]  # (S*BP, OP)
        lane = lax.broadcasted_iota(jnp.int32, (1, OP), 1)
        valid = lane < O
        m = jnp.max(jnp.where(valid, logits, jnp.float32(-1e30)), axis=-1, keepdims=True)
        e = jnp.exp(logits - m) * valid.astype(jnp.float32)
        # per-segment sums + broadcast-back as two tiny MXU matmuls vs a static one-hot
        den = jnp.dot(jnp.dot(e, seg[...], preferred_element_type=jnp.float32),
                      seg_t[...], preferred_element_type=jnp.float32)
        den = jnp.where(valid, jnp.maximum(den, jnp.float32(1e-30)), jnp.float32(1.0))
        inv = pl.reciprocal(den, approx=True)
        inv = inv * (2.0 - den * inv)                    # one Newton step for accuracy
        heads_ref[0] = e * inv

    return kernel


# ----------------------------------------------------------------------- wrapper

def vae_forward(x, eps, params):
    """Full VAE forward: (mu, sigma, tu, tv, lu, lv, le)."""
    B, S, D = x.shape
    enc = params['encoder']
    dec = params['decoder']
    E = enc['w_emb'].shape[1]
    He = enc['lstm0'][1].shape[0]
    Hd = dec['lstm0'][1].shape[0]
    R = enc['w_mu'].shape[1]
    cs = CONDITION_SIZE
    T = dec['w_tu'].shape[1]
    NL = dec['w_lu'].shape[1]
    EL = dec['w_le'].shape[1]
    head_widths = (T, T, NL, NL, EL)
    O = sum(head_widths)
    OP = _round_up(O, _LANE)

    # batch tiling: pad to a multiple of 8 sublanes; tiles map onto a "parallel" grid
    # axis (v7x shards over its 2 TensorCores; v5e/v6e see few serial tiles).
    BP = min(_round_up(B, _SUB), 128)
    G = -(-_round_up(B, _SUB) // BP)
    Bp = G * BP

    # ----- wrapper-side weight plumbing (exact algebra / layout only) -----
    def lstm_pack(p):
        w_ih, w_hh, b_ih, b_hh = p
        return w_ih, w_hh, b_ih + b_hh                   # fold the two LSTM biases

    we_ih0, we_hh0, be_0 = lstm_pack(enc['lstm0'])
    we_ih1, we_hh1, be_1 = lstm_pack(enc['lstm1'])
    # pre-compose encoder emb -> lstm0 input projection (no nonlinearity in between)
    w_enc0 = enc['w_emb'] @ we_ih0                       # (D, 4He)
    b_enc0 = enc['b_emb'] @ we_ih0 + be_0                # (1, 4He)
    w_ms = jnp.concatenate([enc['w_mu'], enc['w_sigma']], axis=1)     # (He, 2R)
    b_ms = jnp.concatenate([enc['b_mu'], enc['b_sigma']], axis=1)

    wf = dec['w_frep']                                   # (R+cs, D)
    bf = dec['b_frep']
    wf_z, wf_c = wf[:R, :], wf[R:, :]
    wd_i0, wd_hh0, bd_0 = lstm_pack(dec['lstm0'])
    wd_i0e, wd_i0z, wd_i0c = wd_i0[:E, :], wd_i0[E:E + R, :], wd_i0[E + R:, :]
    wd_ih1, wd_hh1, bd_1 = lstm_pack(dec['lstm1'])
    wd_ih2, wd_hh2, bd_2 = lstm_pack(dec['lstm2'])

    # pre-compose decoder emb -> lstm0 input projection
    w_dx = dec['w_emb'] @ wd_i0e                         # (D, 4Hd)
    b_embp = dec['b_emb'] @ wd_i0e                       # (1, 4Hd)
    col = D - cs                                         # f_rep column used for h0/c0
    # fused post-z projection: [ base0 | xp_f (step-0, f_rep->emb folded) | cond_val ]
    w_z = jnp.concatenate([wd_i0z, wd_i0z + wf_z @ w_dx, wf_z[:, col:col + 1]], axis=1)
    w_c = jnp.concatenate([wd_i0c, wd_i0c + wf_c @ w_dx, wf_c[:, col:col + 1]], axis=1)
    b0 = bd_0 + b_embp
    b_post = jnp.concatenate([b0, b0 + bf @ w_dx, bf[:, col:col + 1]], axis=1)

    w_heads = jnp.concatenate([dec['w_tu'], dec['w_tv'], dec['w_lu'],
                               dec['w_lv'], dec['w_le']], axis=1)     # (Hd, O)
    b_heads = jnp.concatenate([dec['b_tu'], dec['b_tv'], dec['b_lu'],
                               dec['b_lv'], dec['b_le']], axis=1)
    w_heads = jnp.pad(w_heads, ((0, 0), (0, OP - O)))                 # lane-dense pad
    b_heads = jnp.pad(b_heads, ((0, 0), (0, OP - O)))

    # static one-hot segment matrix for the segmented-softmax denominators
    seg_np = np.zeros((OP, 8), np.float32)
    off = 0
    for s, w in enumerate(head_widths):
        seg_np[off:off + w, s] = 1.0
        off += w
    seg = jnp.asarray(seg_np)
    seg_t = jnp.asarray(seg_np.T)

    # input layout: per batch tile, time-major 2-D rows (row = t*BP + b)
    x_t = jnp.transpose(x, (1, 0, 2))                                 # (S, B, D)
    x_t = jnp.pad(x_t, ((0, 0), (0, Bp - B), (0, 0)))
    x3 = x_t.reshape(S, G, BP, D).transpose(1, 0, 2, 3).reshape(G, S * BP, D)
    eps3 = jnp.pad(eps.reshape(B, R), ((0, Bp - B), (0, 0))).reshape(G, BP, R)
    cond3 = jnp.pad(x[:, 0, D - cs:D], ((0, Bp - B), (0, 0))).reshape(G, BP, cs)

    args = [x3, eps3, cond3,
            w_enc0, b_enc0, we_hh0,
            we_ih1, we_hh1, be_1,
            w_ms, b_ms,
            w_z, w_c, b_post,
            w_dx, wd_hh0,
            wd_ih1, wd_hh1, bd_1,
            wd_ih2, wd_hh2, bd_2,
            w_heads, b_heads, seg, seg_t]

    in_specs = [pl.BlockSpec((1, S * BP, D), lambda g: (g, 0, 0)),
                pl.BlockSpec((1, BP, R), lambda g: (g, 0, 0)),
                pl.BlockSpec((1, BP, cs), lambda g: (g, 0, 0))]
    # weights: constant index_map -> block revisited every iteration, DMA elided
    in_specs += [pl.BlockSpec(a.shape, lambda g: (0, 0)) for a in args[3:]]
    out_specs = (pl.BlockSpec((1, BP, 2 * R), lambda g: (g, 0, 0)),
                 pl.BlockSpec((1, S * BP, OP), lambda g: (g, 0, 0)))
    out_shape = (jax.ShapeDtypeStruct((G, BP, 2 * R), jnp.float32),
                 jax.ShapeDtypeStruct((G, S * BP, OP), jnp.float32))
    scratch_shapes = [pltpu.VMEM((S * BP, 4 * He), jnp.float32),      # hoisted xp (enc)
                      pltpu.VMEM((S * BP, He), jnp.float32),          # enc hidden seq
                      pltpu.VMEM((S * BP, 4 * Hd), jnp.float32),      # hoisted xp (dec)
                      pltpu.VMEM((S * BP, Hd), jnp.float32)]          # dec hidden seq

    # VMEM budget: weights (resident) + double-buffered per-tile blocks + scratch
    weight_bytes = sum(int(math.prod(a.shape)) * 4 for a in args[3:])
    block_bytes = 4 * (S * BP * D + BP * R + BP * cs + BP * 2 * R + S * BP * OP)
    scratch_bytes = 4 * S * BP * (5 * He + 5 * Hd)
    vmem_limit = int(min(max(weight_bytes + 2 * block_bytes + scratch_bytes + (4 << 20),
                             8 << 20), 48 << 20))

    def _lstm_flops(f_in, h):
        return 2 * S * Bp * (f_in * 4 * h + h * 4 * h)

    flops = int(2 * S * Bp * D * 4 * He + 2 * S * Bp * He * 4 * He      # enc l0
                + _lstm_flops(He, He)                                   # enc l1
                + 2 * Bp * He * 2 * R
                + 2 * Bp * (R + cs) * (8 * Hd + 1)
                + 2 * (S - 1) * Bp * D * 4 * Hd + 2 * S * Bp * Hd * 4 * Hd  # dec l0
                + 2 * _lstm_flops(Hd, Hd)                               # dec l1, l2
                + 2 * S * Bp * Hd * OP + 4 * S * Bp * OP * 8)
    transcendentals = int(S * Bp * (2 * 6 * He + 3 * 6 * Hd) + S * Bp * OP + Bp * R)
    bytes_accessed = int(weight_bytes + 4 * (G * block_bytes // 4))

    kernel = _make_vae_kernel(BP, S, He, Hd, R, O, OP)

    musig, heads = pl.pallas_call(
        kernel,
        grid=(G,),
        out_shape=out_shape,
        in_specs=in_specs,
        out_specs=out_specs,
        scratch_shapes=scratch_shapes,
        compiler_params=pltpu.CompilerParams(
            dimension_semantics=("parallel",),
            vmem_limit_bytes=vmem_limit),
        cost_estimate=pl.CostEstimate(flops=flops,
                                      transcendentals=transcendentals,
                                      bytes_accessed=bytes_accessed),
    )(*args)

    musig = musig.reshape(Bp, 2 * R)[:B]
    mu = musig[:, None, 0:R]
    sigma = musig[:, None, R:2 * R]
    probs = heads.reshape(G, S, BP, OP).transpose(1, 0, 2, 3).reshape(S, Bp, OP)
    probs = jnp.transpose(probs, (1, 0, 2))[:B]                        # (B, S, OP)
    outs = []
    off = 0
    for w in head_widths:
        outs.append(probs[:, :, off:off + w])
        off += w
    tu, tv, lu, lv, le = outs
    return mu, sigma, tu, tv, lu, lv, le


# ----------------------------------------------------------------------- params

def _dense_params(key, n_in, n_out, scale=0.1):
    kw, kb = jax.random.split(key)
    w = scale * jax.random.normal(kw, (n_in, n_out), jnp.float32)
    b = scale * jax.random.normal(kb, (1, n_out), jnp.float32)
    return w, b


def _lstm_params(key, n_in, hidden, scale=0.1):
    k1, k2, k3, k4 = jax.random.split(key, 4)
    w_ih = scale * jax.random.normal(k1, (n_in, 4 * hidden), jnp.float32)
    w_hh = scale * jax.random.normal(k2, (hidden, 4 * hidden), jnp.float32)
    b_ih = scale * jax.random.normal(k3, (1, 4 * hidden), jnp.float32)
    b_hh = scale * jax.random.normal(k4, (1, 4 * hidden), jnp.float32)
    return w_ih, w_hh, b_ih, b_hh


def init_params(key, dfs_size, time_size, node_size, edge_size, model_param):
    E = model_param['emb_size']
    He = model_param['en_hidden_size']
    Hd = model_param['de_hidden_size']
    R = model_param['rep_size']
    cs = CONDITION_SIZE
    ks = iter(jax.random.split(key, 20))

    enc = {}
    enc['w_emb'], enc['b_emb'] = _dense_params(next(ks), dfs_size, E)
    enc['lstm0'] = _lstm_params(next(ks), E, He)
    enc['lstm1'] = _lstm_params(next(ks), He, He)
    enc['w_mu'], enc['b_mu'] = _dense_params(next(ks), He, R)
    enc['w_sigma'], enc['b_sigma'] = _dense_params(next(ks), He, R)

    dec = {}
    dec['w_frep'], dec['b_frep'] = _dense_params(next(ks), R + cs, dfs_size)
    dec['w_emb'], dec['b_emb'] = _dense_params(next(ks), dfs_size, E)
    dec['lstm0'] = _lstm_params(next(ks), E + R + cs, Hd)
    dec['lstm1'] = _lstm_params(next(ks), Hd, Hd)
    dec['lstm2'] = _lstm_params(next(ks), Hd, Hd)
    dec['w_tu'], dec['b_tu'] = _dense_params(next(ks), Hd, time_size)
    dec['w_tv'], dec['b_tv'] = _dense_params(next(ks), Hd, time_size)
    dec['w_lu'], dec['b_lu'] = _dense_params(next(ks), Hd, node_size)
    dec['w_lv'], dec['b_lv'] = _dense_params(next(ks), Hd, node_size)
    dec['w_le'], dec['b_le'] = _dense_params(next(ks), Hd, edge_size)

    return {'encoder': enc, 'decoder': dec}


# ----------------------------------------------------------------------- main

if __name__ == "__main__":
    B, S = 2, 8
    dfs_size = 16
    time_size, node_size, edge_size = 6, 5, 4
    # hidden sizes chosen so 4*H == 128 (lane-dense gate matmuls / scratch stores)
    model_param = dict(emb_size=8, en_hidden_size=32, de_hidden_size=32, rep_size=4)

    key = jax.random.PRNGKey(0)
    k_x, k_eps, k_par = jax.random.split(key, 3)
    x = jax.random.uniform(k_x, (B, S, dfs_size), jnp.float32)
    eps = jax.random.normal(k_eps, (B, 1, model_param['rep_size']), jnp.float32)
    params = init_params(k_par, dfs_size, time_size, node_size, edge_size, model_param)

    mu, sigma, tu, tv, lu, lv, le = jax.block_until_ready(
        jax.jit(vae_forward)(x, eps, params))

    # sanity: shapes correct and softmax heads sum to 1 over last axis
    assert mu.shape == (B, 1, model_param['rep_size'])
    assert sigma.shape == (B, 1, model_param['rep_size'])
    assert tu.shape == (B, S, time_size) and tv.shape == (B, S, time_size)
    assert lu.shape == (B, S, node_size) and lv.shape == (B, S, node_size)
    assert le.shape == (B, S, edge_size)
    assert abs(float(tu.sum(-1).mean()) - 1.0) < 1e-3
    assert abs(float(lv.sum(-1).mean()) - 1.0) < 1e-3
    assert abs(float(le.sum(-1).mean()) - 1.0) < 1e-3
    assert bool(jnp.isfinite(mu).all()) and bool(jnp.isfinite(sigma).all())

    print("KERNEL_OK")
</pallas_src>

<mosaic_0001>
module attributes {stable_mosaic.version = 11 : i64} {
  func.func @kernel(%arg0: i32, %arg1: memref<1x64x16xf32, #tpu.memory_space<vmem>>, %arg2: memref<1x8x4xf32, #tpu.memory_space<vmem>>, %arg3: memref<1x8x2xf32, #tpu.memory_space<vmem>>, %arg4: memref<16x128xf32, #tpu.memory_space<vmem>>, %arg5: memref<1x128xf32, #tpu.memory_space<vmem>>, %arg6: memref<32x128xf32, #tpu.memory_space<vmem>>, %arg7: memref<32x128xf32, #tpu.memory_space<vmem>>, %arg8: memref<32x128xf32, #tpu.memory_space<vmem>>, %arg9: memref<1x128xf32, #tpu.memory_space<vmem>>, %arg10: memref<32x8xf32, #tpu.memory_space<vmem>>, %arg11: memref<1x8xf32, #tpu.memory_space<vmem>>, %arg12: memref<4x257xf32, #tpu.memory_space<vmem>>, %arg13: memref<2x257xf32, #tpu.memory_space<vmem>>, %arg14: memref<1x257xf32, #tpu.memory_space<vmem>>, %arg15: memref<16x128xf32, #tpu.memory_space<vmem>>, %arg16: memref<32x128xf32, #tpu.memory_space<vmem>>, %arg17: memref<32x128xf32, #tpu.memory_space<vmem>>, %arg18: memref<32x128xf32, #tpu.memory_space<vmem>>, %arg19: memref<1x128xf32, #tpu.memory_space<vmem>>, %arg20: memref<32x128xf32, #tpu.memory_space<vmem>>, %arg21: memref<32x128xf32, #tpu.memory_space<vmem>>, %arg22: memref<1x128xf32, #tpu.memory_space<vmem>>, %arg23: memref<32x128xf32, #tpu.memory_space<vmem>>, %arg24: memref<1x128xf32, #tpu.memory_space<vmem>>, %arg25: memref<128x8xf32, #tpu.memory_space<vmem>>, %arg26: memref<8x128xf32, #tpu.memory_space<vmem>>, %arg27: memref<1x8x8xf32, #tpu.memory_space<vmem>>, %arg28: memref<1x64x128xf32, #tpu.memory_space<vmem>>, %arg29: memref<64x128xf32, #tpu.memory_space<vmem>>, %arg30: memref<64x32xf32, #tpu.memory_space<vmem>>, %arg31: memref<64x128xf32, #tpu.memory_space<vmem>>, %arg32: memref<64x32xf32, #tpu.memory_space<vmem>>) attributes {dimension_semantics = [#tpu.dimension_semantics<parallel>], iteration_bounds = array<i64: 1>, scalar_prefetch = 0 : i64, scratch_operands = 4 : i64, tpu.core_type = #tpu.core_type<tc>, window_params = [{transform_indices = @transform_0, window_bounds = array<i64: 1, 64, 16>}, {transform_indices = @transform_1, window_bounds = array<i64: 1, 8, 4>}, {transform_indices = @transform_2, window_bounds = array<i64: 1, 8, 2>}, {pipeline_mode = #tpu.pipeline_mode<synchronous>, transform_indices = @transform_3, window_bounds = array<i64: 16, 128>}, {pipeline_mode = #tpu.pipeline_mode<synchronous>, transform_indices = @transform_4, window_bounds = array<i64: 1, 128>}, {pipeline_mode = #tpu.pipeline_mode<synchronous>, transform_indices = @transform_5, window_bounds = array<i64: 32, 128>}, {pipeline_mode = #tpu.pipeline_mode<synchronous>, transform_indices = @transform_6, window_bounds = array<i64: 32, 128>}, {pipeline_mode = #tpu.pipeline_mode<synchronous>, transform_indices = @transform_7, window_bounds = array<i64: 32, 128>}, {pipeline_mode = #tpu.pipeline_mode<synchronous>, transform_indices = @transform_8, window_bounds = array<i64: 1, 128>}, {pipeline_mode = #tpu.pipeline_mode<synchronous>, transform_indices = @transform_9, window_bounds = array<i64: 32, 8>}, {pipeline_mode = #tpu.pipeline_mode<synchronous>, transform_indices = @transform_10, window_bounds = array<i64: 1, 8>}, {pipeline_mode = #tpu.pipeline_mode<synchronous>, transform_indices = @transform_11, window_bounds = array<i64: 4, 257>}, {pipeline_mode = #tpu.pipeline_mode<synchronous>, transform_indices = @transform_12, window_bounds = array<i64: 2, 257>}, {pipeline_mode = #tpu.pipeline_mode<synchronous>, transform_indices = @transform_13, window_bounds = array<i64: 1, 257>}, {pipeline_mode = #tpu.pipeline_mode<synchronous>, transform_indices = @transform_14, window_bounds = array<i64: 16, 128>}, {pipeline_mode = #tpu.pipeline_mode<synchronous>, transform_indices = @transform_15, window_bounds = array<i64: 32, 128>}, {pipeline_mode = #tpu.pipeline_mode<synchronous>, transform_indices = @transform_16, window_bounds = array<i64: 32, 128>}, {pipeline_mode = #tpu.pipeline_mode<synchronous>, transform_indices = @transform_17, window_bounds = array<i64: 32, 128>}, {pipeline_mode = #tpu.pipeline_mode<synchronous>, transform_indices = @transform_18, window_bounds = array<i64: 1, 128>}, {pipeline_mode = #tpu.pipeline_mode<synchronous>, transform_indices = @transform_19, window_bounds = array<i64: 32, 128>}, {pipeline_mode = #tpu.pipeline_mode<synchronous>, transform_indices = @transform_20, window_bounds = array<i64: 32, 128>}, {pipeline_mode = #tpu.pipeline_mode<synchronous>, transform_indices = @transform_21, window_bounds = array<i64: 1, 128>}, {pipeline_mode = #tpu.pipeline_mode<synchronous>, transform_indices = @transform_22, window_bounds = array<i64: 32, 128>}, {pipeline_mode = #tpu.pipeline_mode<synchronous>, transform_indices = @transform_23, window_bounds = array<i64: 1, 128>}, {pipeline_mode = #tpu.pipeline_mode<synchronous>, transform_indices = @transform_24, window_bounds = array<i64: 128, 8>}, {pipeline_mode = #tpu.pipeline_mode<synchronous>, transform_indices = @transform_25, window_bounds = array<i64: 8, 128>}, {transform_indices = @transform_26, window_bounds = array<i64: 1, 8, 8>}, {transform_indices = @transform_27, window_bounds = array<i64: 1, 64, 128>}]} {
    %c0 = arith.constant 0 : index
    %c0_0 = arith.constant 0 : index
    %c0_1 = arith.constant 0 : index
    %0 = vector.load %arg1[%c0, %c0_0, %c0_1] : memref<1x64x16xf32, #tpu.memory_space<vmem>>, vector<1x64x16xf32>
    %1 = vector.shape_cast %0 : vector<1x64x16xf32> to vector<64x16xf32>
    %c0_2 = arith.constant 0 : index
    %c0_3 = arith.constant 0 : index
    %c0_4 = arith.constant 0 : index
    %2 = vector.load %arg2[%c0_2, %c0_3, %c0_4] : memref<1x8x4xf32, #tpu.memory_space<vmem>>, vector<1x8x4xf32>
    %3 = vector.shape_cast %2 : vector<1x8x4xf32> to vector<8x4xf32>
    %c0_5 = arith.constant 0 : index
    %c0_6 = arith.constant 0 : index
    %c0_7 = arith.constant 0 : index
    %4 = vector.load %arg3[%c0_5, %c0_6, %c0_7] : memref<1x8x2xf32, #tpu.memory_space<vmem>>, vector<1x8x2xf32>
    %5 = vector.shape_cast %4 : vector<1x8x2xf32> to vector<8x2xf32>
    %c0_8 = arith.constant 0 : index
    %c0_9 = arith.constant 0 : index
    %6 = vector.load %arg13[%c0_8, %c0_9] : memref<2x257xf32, #tpu.memory_space<vmem>>, vector<2x257xf32>
    %cst = arith.constant dense<0.000000e+00> : vector<8x257xf32>
    %7 = tpu.matmul %5, %6, %cst {dimension_numbers = #tpu.dot_dimension_numbers<[1], [0], [0], [1], [0, 0, 1, 1], [], []>} : vector<8x2xf32>, vector<2x257xf32>, vector<8x257xf32> -> vector<8x257xf32>
    %c0_10 = arith.constant 0 : index
    %c0_11 = arith.constant 0 : index
    %8 = vector.load %arg14[%c0_10, %c0_11] : memref<1x257xf32, #tpu.memory_space<vmem>>, vector<1x257xf32>
    %9 = vector.broadcast %8 : vector<1x257xf32> to vector<8x257xf32>
    %10 = arith.addf %7, %9 : vector<8x257xf32>
    %c0_12 = arith.constant 0 : index
    %c0_13 = arith.constant 0 : index
    %11 = vector.load %arg4[%c0_12, %c0_13] : memref<16x128xf32, #tpu.memory_space<vmem>>, vector<16x128xf32>
    %cst_14 = arith.constant dense<0.000000e+00> : vector<64x128xf32>
    %12 = tpu.matmul %1, %11, %cst_14 {dimension_numbers = #tpu.dot_dimension_numbers<[1], [0], [0], [1], [0, 0, 1, 1], [], []>} : vector<64x16xf32>, vector<16x128xf32>, vector<64x128xf32> -> vector<64x128xf32>
    %c0_15 = arith.constant 0 : index
    %c0_16 = arith.constant 0 : index
    %13 = vector.load %arg5[%c0_15, %c0_16] : memref<1x128xf32, #tpu.memory_space<vmem>>, vector<1x128xf32>
    %14 = vector.broadcast %13 : vector<1x128xf32> to vector<64x128xf32>
    %15 = arith.addf %12, %14 : vector<64x128xf32>
    %c0_17 = arith.constant 0 : index
    %c0_18 = arith.constant 0 : index
    %16 = vector.load %arg29[%c0_17, %c0_18] : memref<64x128xf32, #tpu.memory_space<vmem>>, vector<64x128xf32>
    tpu.vector_store %arg29[%c0_17, %c0_18], %15 {strides = array<i32>} : memref<64x128xf32, #tpu.memory_space<vmem>>, vector<64x128xf32>,
    %cst_19 = arith.constant 0.000000e+00 : f32
    %17 = vector.broadcast %cst_19 : f32 to vector<8x32xf32>
    %c0_20 = arith.constant 0 : index
    %c0_21 = arith.constant 0 : index
    %18 = vector.load %arg6[%c0_20, %c0_21] : memref<32x128xf32, #tpu.memory_space<vmem>>, vector<32x128xf32>
    %c0_i32 = arith.constant 0 : i32
    %c8_i32 = arith.constant 8 : i32
    %19 = arith.muli %c0_i32, %c8_i32 : i32
    %20 = tpu.assume_multiple %19, 8 : i32
    %21 = arith.index_cast %20 : i32 to index
    %c0_22 = arith.constant 0 : index
    %22 = vector.load %arg29[%21, %c0_22] : memref<64x128xf32, #tpu.memory_space<vmem>>, vector<8x128xf32>
    %cst_23 = arith.constant dense<0.000000e+00> : vector<8x128xf32>
    %23 = tpu.matmul %17, %18, %cst_23 {dimension_numbers = #tpu.dot_dimension_numbers<[1], [0], [0], [1], [0, 0, 1, 1], [], []>} : vector<8x32xf32>, vector<32x128xf32>, vector<8x128xf32> -> vector<8x128xf32>
    %24 = arith.addf %22, %23 : vector<8x128xf32>
    %25 = arith.negf %24 : vector<8x128xf32>
    %26 = math.exp %25 : vector<8x128xf32>
    %cst_24 = arith.constant 1.000000e+00 : f32
    %27 = vector.broadcast %cst_24 : f32 to vector<8x128xf32>
    %28 = arith.addf %27, %26 : vector<8x128xf32>
    %29 = arith.divf %27, %28 : vector<8x128xf32>
    %30 = vector.extract_strided_slice %24 {offsets = [0, 64], sizes = [8, 32], strides = [1, 1]} : vector<8x128xf32> to vector<8x32xf32>
    %31 = math.tanh %30 : vector<8x32xf32>
    %32 = vector.extract_strided_slice %29 {offsets = [0, 32], sizes = [8, 32], strides = [1, 1]} : vector<8x128xf32> to vector<8x32xf32>
    %33 = arith.mulf %32, %17 : vector<8x32xf32>
    %34 = vector.extract_strided_slice %29 {offsets = [0, 0], sizes = [8, 32], strides = [1, 1]} : vector<8x128xf32> to vector<8x32xf32>
    %35 = arith.mulf %34, %31 : vector<8x32xf32>
    %36 = arith.addf %33, %35 : vector<8x32xf32>
    %37 = vector.extract_strided_slice %29 {offsets = [0, 96], sizes = [8, 32], strides = [1, 1]} : vector<8x128xf32> to vector<8x32xf32>
    %38 = math.tanh %36 : vector<8x32xf32>
    %39 = arith.mulf %37, %38 : vector<8x32xf32>
    %40 = arith.index_cast %20 : i32 to index
    %c0_25 = arith.constant 0 : index
    %41 = vector.load %arg30[%40, %c0_25] : memref<64x32xf32, #tpu.memory_space<vmem>>, vector<8x32xf32>
    tpu.vector_store %arg30[%40, %c0_25], %39 {strides = array<i32>} : memref<64x32xf32, #tpu.memory_space<vmem>>, vector<8x32xf32>,
    %c1_i32 = arith.constant 1 : i32
    %c8_i32_26 = arith.constant 8 : i32
    %42 = arith.muli %c1_i32, %c8_i32_26 : i32
    %43 = tpu.assume_multiple %42, 8 : i32
    %44 = arith.index_cast %43 : i32 to index
    %c0_27 = arith.constant 0 : index
    %45 = vector.load %arg29[%44, %c0_27] : memref<64x128xf32, #tpu.memory_space<vmem>>, vector<8x128xf32>
    %cst_28 = arith.constant dense<0.000000e+00> : vector<8x128xf32>
    %46 = tpu.matmul %39, %18, %cst_28 {dimension_numbers = #tpu.dot_dimension_numbers<[1], [0], [0], [1], [0, 0, 1, 1], [], []>} : vector<8x32xf32>, vector<32x128xf32>, vector<8x128xf32> -> vector<8x128xf32>
    %47 = arith.addf %45, %46 : vector<8x128xf32>
    %48 = arith.negf %47 : vector<8x128xf32>
    %49 = math.exp %48 : vector<8x128xf32>
    %cst_29 = arith.constant 1.000000e+00 : f32
    %50 = vector.broadcast %cst_29 : f32 to vector<8x128xf32>
    %51 = arith.addf %50, %49 : vector<8x128xf32>
    %52 = arith.divf %50, %51 : vector<8x128xf32>
    %53 = vector.extract_strided_slice %47 {offsets = [0, 64], sizes = [8, 32], strides = [1, 1]} : vector<8x128xf32> to vector<8x32xf32>
    %54 = math.tanh %53 : vector<8x32xf32>
    %55 = vector.extract_strided_slice %52 {offsets = [0, 32], sizes = [8, 32], strides = [1, 1]} : vector<8x128xf32> to vector<8x32xf32>
    %56 = arith.mulf %55, %36 : vector<8x32xf32>
    %57 = vector.extract_strided_slice %52 {offsets = [0, 0], sizes = [8, 32], strides = [1, 1]} : vector<8x128xf32> to vector<8x32xf32>
    %58 = arith.mulf %57, %54 : vector<8x32xf32>
    %59 = arith.addf %56, %58 : vector<8x32xf32>
    %60 = vector.extract_strided_slice %52 {offsets = [0, 96], sizes = [8, 32], strides = [1, 1]} : vector<8x128xf32> to vector<8x32xf32>
    %61 = math.tanh %59 : vector<8x32xf32>
    %62 = arith.mulf %60, %61 : vector<8x32xf32>
    %63 = arith.index_cast %43 : i32 to index
    %c0_30 = arith.constant 0 : index
    %64 = vector.load %arg30[%63, %c0_30] : memref<64x32xf32, #tpu.memory_space<vmem>>, vector<8x32xf32>
    tpu.vector_store %arg30[%63, %c0_30], %62 {strides = array<i32>} : memref<64x32xf32, #tpu.memory_space<vmem>>, vector<8x32xf32>,
    %c2_i32 = arith.constant 2 : i32
    %c8_i32_31 = arith.constant 8 : i32
    %65 = arith.muli %c2_i32, %c8_i32_31 : i32
    %66 = tpu.assume_multiple %65, 8 : i32
    %67 = arith.index_cast %66 : i32 to index
    %c0_32 = arith.constant 0 : index
    %68 = vector.load %arg29[%67, %c0_32] : memref<64x128xf32, #tpu.memory_space<vmem>>, vector<8x128xf32>
    %cst_33 = arith.constant dense<0.000000e+00> : vector<8x128xf32>
    %69 = tpu.matmul %62, %18, %cst_33 {dimension_numbers = #tpu.dot_dimension_numbers<[1], [0], [0], [1], [0, 0, 1, 1], [], []>} : vector<8x32xf32>, vector<32x128xf32>, vector<8x128xf32> -> vector<8x128xf32>
    %70 = arith.addf %68, %69 : vector<8x128xf32>
    %71 = arith.negf %70 : vector<8x128xf32>
    %72 = math.exp %71 : vector<8x128xf32>
    %cst_34 = arith.constant 1.000000e+00 : f32
    %73 = vector.broadcast %cst_34 : f32 to vector<8x128xf32>
    %74 = arith.addf %73, %72 : vector<8x128xf32>
    %75 = arith.divf %73, %74 : vector<8x128xf32>
    %76 = vector.extract_strided_slice %70 {offsets = [0, 64], sizes = [8, 32], strides = [1, 1]} : vector<8x128xf32> to vector<8x32xf32>
    %77 = math.tanh %76 : vector<8x32xf32>
    %78 = vector.extract_strided_slice %75 {offsets = [0, 32], sizes = [8, 32], strides = [1, 1]} : vector<8x128xf32> to vector<8x32xf32>
    %79 = arith.mulf %78, %59 : vector<8x32xf32>
    %80 = vector.extract_strided_slice %75 {offsets = [0, 0], sizes = [8, 32], strides = [1, 1]} : vector<8x128xf32> to vector<8x32xf32>
    %81 = arith.mulf %80, %77 : vector<8x32xf32>
    %82 = arith.addf %79, %81 : vector<8x32xf32>
    %83 = vector.extract_strided_slice %75 {offsets = [0, 96], sizes = [8, 32], strides = [1, 1]} : vector<8x128xf32> to vector<8x32xf32>
    %84 = math.tanh %82 : vector<8x32xf32>
    %85 = arith.mulf %83, %84 : vector<8x32xf32>
    %86 = arith.index_cast %66 : i32 to index
    %c0_35 = arith.constant 0 : index
    %87 = vector.load %arg30[%86, %c0_35] : memref<64x32xf32, #tpu.memory_space<vmem>>, vector<8x32xf32>
    tpu.vector_store %arg30[%86, %c0_35], %85 {strides = array<i32>} : memref<64x32xf32, #tpu.memory_space<vmem>>, vector<8x32xf32>,
    %c3_i32 = arith.constant 3 : i32
    %c8_i32_36 = arith.constant 8 : i32
    %88 = arith.muli %c3_i32, %c8_i32_36 : i32
    %89 = tpu.assume_multiple %88, 8 : i32
    %90 = arith.index_cast %89 : i32 to index
    %c0_37 = arith.constant 0 : index
    %91 = vector.load %arg29[%90, %c0_37] : memref<64x128xf32, #tpu.memory_space<vmem>>, vector<8x128xf32>
    %cst_38 = arith.constant dense<0.000000e+00> : vector<8x128xf32>
    %92 = tpu.matmul %85, %18, %cst_38 {dimension_numbers = #tpu.dot_dimension_numbers<[1], [0], [0], [1], [0, 0, 1, 1], [], []>} : vector<8x32xf32>, vector<32x128xf32>, vector<8x128xf32> -> vector<8x128xf32>
    %93 = arith.addf %91, %92 : vector<8x128xf32>
    %94 = arith.negf %93 : vector<8x128xf32>
    %95 = math.exp %94 : vector<8x128xf32>
    %cst_39 = arith.constant 1.000000e+00 : f32
    %96 = vector.broadcast %cst_39 : f32 to vector<8x128xf32>
    %97 = arith.addf %96, %95 : vector<8x128xf32>
    %98 = arith.divf %96, %97 : vector<8x128xf32>
    %99 = vector.extract_strided_slice %93 {offsets = [0, 64], sizes = [8, 32], strides = [1, 1]} : vector<8x128xf32> to vector<8x32xf32>
    %100 = math.tanh %99 : vector<8x32xf32>
    %101 = vector.extract_strided_slice %98 {offsets = [0, 32], sizes = [8, 32], strides = [1, 1]} : vector<8x128xf32> to vector<8x32xf32>
    %102 = arith.mulf %101, %82 : vector<8x32xf32>
    %103 = vector.extract_strided_slice %98 {offsets = [0, 0], sizes = [8, 32], strides = [1, 1]} : vector<8x128xf32> to vector<8x32xf32>
    %104 = arith.mulf %103, %100 : vector<8x32xf32>
    %105 = arith.addf %102, %104 : vector<8x32xf32>
    %106 = vector.extract_strided_slice %98 {offsets = [0, 96], sizes = [8, 32], strides = [1, 1]} : vector<8x128xf32> to vector<8x32xf32>
    %107 = math.tanh %105 : vector<8x32xf32>
    %108 = arith.mulf %106, %107 : vector<8x32xf32>
    %109 = arith.index_cast %89 : i32 to index
    %c0_40 = arith.constant 0 : index
    %110 = vector.load %arg30[%109, %c0_40] : memref<64x32xf32, #tpu.memory_space<vmem>>, vector<8x32xf32>
    tpu.vector_store %arg30[%109, %c0_40], %108 {strides = array<i32>} : memref<64x32xf32, #tpu.memory_space<vmem>>, vector<8x32xf32>,
    %c4_i32 = arith.constant 4 : i32
    %c8_i32_41 = arith.constant 8 : i32
    %111 = arith.muli %c4_i32, %c8_i32_41 : i32
    %112 = tpu.assume_multiple %111, 8 : i32
    %113 = arith.index_cast %112 : i32 to index
    %c0_42 = arith.constant 0 : index
    %114 = vector.load %arg29[%113, %c0_42] : memref<64x128xf32, #tpu.memory_space<vmem>>, vector<8x128xf32>
    %cst_43 = arith.constant dense<0.000000e+00> : vector<8x128xf32>
    %115 = tpu.matmul %108, %18, %cst_43 {dimension_numbers = #tpu.dot_dimension_numbers<[1], [0], [0], [1], [0, 0, 1, 1], [], []>} : vector<8x32xf32>, vector<32x128xf32>, vector<8x128xf32> -> vector<8x128xf32>
    %116 = arith.addf %114, %115 : vector<8x128xf32>
    %117 = arith.negf %116 : vector<8x128xf32>
    %118 = math.exp %117 : vector<8x128xf32>
    %cst_44 = arith.constant 1.000000e+00 : f32
    %119 = vector.broadcast %cst_44 : f32 to vector<8x128xf32>
    %120 = arith.addf %119, %118 : vector<8x128xf32>
    %121 = arith.divf %119, %120 : vector<8x128xf32>
    %122 = vector.extract_strided_slice %116 {offsets = [0, 64], sizes = [8, 32], strides = [1, 1]} : vector<8x128xf32> to vector<8x32xf32>
    %123 = math.tanh %122 : vector<8x32xf32>
    %124 = vector.extract_strided_slice %121 {offsets = [0, 32], sizes = [8, 32], strides = [1, 1]} : vector<8x128xf32> to vector<8x32xf32>
    %125 = arith.mulf %124, %105 : vector<8x32xf32>
    %126 = vector.extract_strided_slice %121 {offsets = [0, 0], sizes = [8, 32], strides = [1, 1]} : vector<8x128xf32> to vector<8x32xf32>
    %127 = arith.mulf %126, %123 : vector<8x32xf32>
    %128 = arith.addf %125, %127 : vector<8x32xf32>
    %129 = vector.extract_strided_slice %121 {offsets = [0, 96], sizes = [8, 32], strides = [1, 1]} : vector<8x128xf32> to vector<8x32xf32>
    %130 = math.tanh %128 : vector<8x32xf32>
    %131 = arith.mulf %129, %130 : vector<8x32xf32>
    %132 = arith.index_cast %112 : i32 to index
    %c0_45 = arith.constant 0 : index
    %133 = vector.load %arg30[%132, %c0_45] : memref<64x32xf32, #tpu.memory_space<vmem>>, vector<8x32xf32>
    tpu.vector_store %arg30[%132, %c0_45], %131 {strides = array<i32>} : memref<64x32xf32, #tpu.memory_space<vmem>>, vector<8x32xf32>,
    %c5_i32 = arith.constant 5 : i32
    %c8_i32_46 = arith.constant 8 : i32
    %134 = arith.muli %c5_i32, %c8_i32_46 : i32
    %135 = tpu.assume_multiple %134, 8 : i32
    %136 = arith.index_cast %135 : i32 to index
    %c0_47 = arith.constant 0 : index
    %137 = vector.load %arg29[%136, %c0_47] : memref<64x128xf32, #tpu.memory_space<vmem>>, vector<8x128xf32>
    %cst_48 = arith.constant dense<0.000000e+00> : vector<8x128xf32>
    %138 = tpu.matmul %131, %18, %cst_48 {dimension_numbers = #tpu.dot_dimension_numbers<[1], [0], [0], [1], [0, 0, 1, 1], [], []>} : vector<8x32xf32>, vector<32x128xf32>, vector<8x128xf32> -> vector<8x128xf32>
    %139 = arith.addf %137, %138 : vector<8x128xf32>
    %140 = arith.negf %139 : vector<8x128xf32>
    %141 = math.exp %140 : vector<8x128xf32>
    %cst_49 = arith.constant 1.000000e+00 : f32
    %142 = vector.broadcast %cst_49 : f32 to vector<8x128xf32>
    %143 = arith.addf %142, %141 : vector<8x128xf32>
    %144 = arith.divf %142, %143 : vector<8x128xf32>
    %145 = vector.extract_strided_slice %139 {offsets = [0, 64], sizes = [8, 32], strides = [1, 1]} : vector<8x128xf32> to vector<8x32xf32>
    %146 = math.tanh %145 : vector<8x32xf32>
    %147 = vector.extract_strided_slice %144 {offsets = [0, 32], sizes = [8, 32], strides = [1, 1]} : vector<8x128xf32> to vector<8x32xf32>
    %148 = arith.mulf %147, %128 : vector<8x32xf32>
    %149 = vector.extract_strided_slice %144 {offsets = [0, 0], sizes = [8, 32], strides = [1, 1]} : vector<8x128xf32> to vector<8x32xf32>
    %150 = arith.mulf %149, %146 : vector<8x32xf32>
    %151 = arith.addf %148, %150 : vector<8x32xf32>
    %152 = vector.extract_strided_slice %144 {offsets = [0, 96], sizes = [8, 32], strides = [1, 1]} : vector<8x128xf32> to vector<8x32xf32>
    %153 = math.tanh %151 : vector<8x32xf32>
    %154 = arith.mulf %152, %153 : vector<8x32xf32>
    %155 = arith.index_cast %135 : i32 to index
    %c0_50 = arith.constant 0 : index
    %156 = vector.load %arg30[%155, %c0_50] : memref<64x32xf32, #tpu.memory_space<vmem>>, vector<8x32xf32>
    tpu.vector_store %arg30[%155, %c0_50], %154 {strides = array<i32>} : memref<64x32xf32, #tpu.memory_space<vmem>>, vector<8x32xf32>,
    %c6_i32 = arith.constant 6 : i32
    %c8_i32_51 = arith.constant 8 : i32
    %157 = arith.muli %c6_i32, %c8_i32_51 : i32
    %158 = tpu.assume_multiple %157, 8 : i32
    %159 = arith.index_cast %158 : i32 to index
    %c0_52 = arith.constant 0 : index
    %160 = vector.load %arg29[%159, %c0_52] : memref<64x128xf32, #tpu.memory_space<vmem>>, vector<8x128xf32>
    %cst_53 = arith.constant dense<0.000000e+00> : vector<8x128xf32>
    %161 = tpu.matmul %154, %18, %cst_53 {dimension_numbers = #tpu.dot_dimension_numbers<[1], [0], [0], [1], [0, 0, 1, 1], [], []>} : vector<8x32xf32>, vector<32x128xf32>, vector<8x128xf32> -> vector<8x128xf32>
    %162 = arith.addf %160, %161 : vector<8x128xf32>
    %163 = arith.negf %162 : vector<8x128xf32>
    %164 = math.exp %163 : vector<8x128xf32>
    %cst_54 = arith.constant 1.000000e+00 : f32
    %165 = vector.broadcast %cst_54 : f32 to vector<8x128xf32>
    %166 = arith.addf %165, %164 : vector<8x128xf32>
    %167 = arith.divf %165, %166 : vector<8x128xf32>
    %168 = vector.extract_strided_slice %162 {offsets = [0, 64], sizes = [8, 32], strides = [1, 1]} : vector<8x128xf32> to vector<8x32xf32>
    %169 = math.tanh %168 : vector<8x32xf32>
    %170 = vector.extract_strided_slice %167 {offsets = [0, 32], sizes = [8, 32], strides = [1, 1]} : vector<8x128xf32> to vector<8x32xf32>
    %171 = arith.mulf %170, %151 : vector<8x32xf32>
    %172 = vector.extract_strided_slice %167 {offsets = [0, 0], sizes = [8, 32], strides = [1, 1]} : vector<8x128xf32> to vector<8x32xf32>
    %173 = arith.mulf %172, %169 : vector<8x32xf32>
    %174 = arith.addf %171, %173 : vector<8x32xf32>
    %175 = vector.extract_strided_slice %167 {offsets = [0, 96], sizes = [8, 32], strides = [1, 1]} : vector<8x128xf32> to vector<8x32xf32>
    %176 = math.tanh %174 : vector<8x32xf32>
    %177 = arith.mulf %175, %176 : vector<8x32xf32>
    %178 = arith.index_cast %158 : i32 to index
    %c0_55 = arith.constant 0 : index
    %179 = vector.load %arg30[%178, %c0_55] : memref<64x32xf32, #tpu.memory_space<vmem>>, vector<8x32xf32>
    tpu.vector_store %arg30[%178, %c0_55], %177 {strides = array<i32>} : memref<64x32xf32, #tpu.memory_space<vmem>>, vector<8x32xf32>,
    %c7_i32 = arith.constant 7 : i32
    %c8_i32_56 = arith.constant 8 : i32
    %180 = arith.muli %c7_i32, %c8_i32_56 : i32
    %181 = tpu.assume_multiple %180, 8 : i32
    %182 = arith.index_cast %181 : i32 to index
    %c0_57 = arith.constant 0 : index
    %183 = vector.load %arg29[%182, %c0_57] : memref<64x128xf32, #tpu.memory_space<vmem>>, vector<8x128xf32>
    %cst_58 = arith.constant dense<0.000000e+00> : vector<8x128xf32>
    %184 = tpu.matmul %177, %18, %cst_58 {dimension_numbers = #tpu.dot_dimension_numbers<[1], [0], [0], [1], [0, 0, 1, 1], [], []>} : vector<8x32xf32>, vector<32x128xf32>, vector<8x128xf32> -> vector<8x128xf32>
    %185 = arith.addf %183, %184 : vector<8x128xf32>
    %186 = arith.negf %185 : vector<8x128xf32>
    %187 = math.exp %186 : vector<8x128xf32>
    %cst_59 = arith.constant 1.000000e+00 : f32
    %188 = vector.broadcast %cst_59 : f32 to vector<8x128xf32>
    %189 = arith.addf %188, %187 : vector<8x128xf32>
    %190 = arith.divf %188, %189 : vector<8x128xf32>
    %191 = vector.extract_strided_slice %185 {offsets = [0, 64], sizes = [8, 32], strides = [1, 1]} : vector<8x128xf32> to vector<8x32xf32>
    %192 = math.tanh %191 : vector<8x32xf32>
    %193 = vector.extract_strided_slice %190 {offsets = [0, 32], sizes = [8, 32], strides = [1, 1]} : vector<8x128xf32> to vector<8x32xf32>
    %194 = arith.mulf %193, %174 : vector<8x32xf32>
    %195 = vector.extract_strided_slice %190 {offsets = [0, 0], sizes = [8, 32], strides = [1, 1]} : vector<8x128xf32> to vector<8x32xf32>
    %196 = arith.mulf %195, %192 : vector<8x32xf32>
    %197 = arith.addf %194, %196 : vector<8x32xf32>
    %198 = vector.extract_strided_slice %190 {offsets = [0, 96], sizes = [8, 32], strides = [1, 1]} : vector<8x128xf32> to vector<8x32xf32>
    %199 = math.tanh %197 : vector<8x32xf32>
    %200 = arith.mulf %198, %199 : vector<8x32xf32>
    %201 = arith.index_cast %181 : i32 to index
    %c0_60 = arith.constant 0 : index
    %202 = vector.load %arg30[%201, %c0_60] : memref<64x32xf32, #tpu.memory_space<vmem>>, vector<8x32xf32>
    tpu.vector_store %arg30[%201, %c0_60], %200 {strides = array<i32>} : memref<64x32xf32, #tpu.memory_space<vmem>>, vector<8x32xf32>,
    %c8_i32_61 = arith.constant 8 : i32
    %c0_62 = arith.constant 0 : index
    %c0_63 = arith.constant 0 : index
    %203 = vector.load %arg7[%c0_62, %c0_63] : memref<32x128xf32, #tpu.memory_space<vmem>>, vector<32x128xf32>
    %c0_64 = arith.constant 0 : index
    %c0_65 = arith.constant 0 : index
    %204 = vector.load %arg8[%c0_64, %c0_65] : memref<32x128xf32, #tpu.memory_space<vmem>>, vector<32x128xf32>
    %c0_66 = arith.constant 0 : index
    %c0_67 = arith.constant 0 : index
    %205 = vector.load %arg9[%c0_66, %c0_67] : memref<1x128xf32, #tpu.memory_space<vmem>>, vector<1x128xf32>
    %c0_68 = arith.constant 0 : index
    %c0_69 = arith.constant 0 : index
    %206 = vector.load %arg30[%c0_68, %c0_69] : memref<64x32xf32, #tpu.memory_space<vmem>>, vector<64x32xf32>
    %cst_70 = arith.constant dense<0.000000e+00> : vector<64x128xf32>
    %207 = tpu.matmul %206, %203, %cst_70 {dimension_numbers = #tpu.dot_dimension_numbers<[1], [0], [0], [1], [0, 0, 1, 1], [], []>} : vector<64x32xf32>, vector<32x128xf32>, vector<64x128xf32> -> vector<64x128xf32>
    %208 = vector.broadcast %205 : vector<1x128xf32> to vector<64x128xf32>
    %209 = arith.addf %207, %208 : vector<64x128xf32>
    %c0_71 = arith.constant 0 : index
    %c0_72 = arith.constant 0 : index
    %210 = vector.load %arg29[%c0_71, %c0_72] : memref<64x128xf32, #tpu.memory_space<vmem>>, vector<64x128xf32>
    tpu.vector_store %arg29[%c0_71, %c0_72], %209 {strides = array<i32>} : memref<64x128xf32, #tpu.memory_space<vmem>>, vector<64x128xf32>,
    %c0_i32_73 = arith.constant 0 : i32
    %c8_i32_74 = arith.constant 8 : i32
    %211 = arith.muli %c0_i32_73, %c8_i32_74 : i32
    %212 = tpu.assume_multiple %211, 8 : i32
    %213 = arith.index_cast %212 : i32 to index
    %c0_75 = arith.constant 0 : index
    %214 = vector.load %arg29[%213, %c0_75] : memref<64x128xf32, #tpu.memory_space<vmem>>, vector<8x128xf32>
    %cst_76 = arith.constant dense<0.000000e+00> : vector<8x128xf32>
    %215 = tpu.matmul %17, %204, %cst_76 {dimension_numbers = #tpu.dot_dimension_numbers<[1], [0], [0], [1], [0, 0, 1, 1], [], []>} : vector<8x32xf32>, vector<32x128xf32>, vector<8x128xf32> -> vector<8x128xf32>
    %216 = arith.addf %214, %215 : vector<8x128xf32>
    %217 = arith.negf %216 : vector<8x128xf32>
    %218 = math.exp %217 : vector<8x128xf32>
    %cst_77 = arith.constant 1.000000e+00 : f32
    %219 = vector.broadcast %cst_77 : f32 to vector<8x128xf32>
    %220 = arith.addf %219, %218 : vector<8x128xf32>
    %221 = arith.divf %219, %220 : vector<8x128xf32>
    %222 = vector.extract_strided_slice %216 {offsets = [0, 64], sizes = [8, 32], strides = [1, 1]} : vector<8x128xf32> to vector<8x32xf32>
    %223 = math.tanh %222 : vector<8x32xf32>
    %224 = vector.extract_strided_slice %221 {offsets = [0, 32], sizes = [8, 32], strides = [1, 1]} : vector<8x128xf32> to vector<8x32xf32>
    %225 = arith.mulf %224, %17 : vector<8x32xf32>
    %226 = vector.extract_strided_slice %221 {offsets = [0, 0], sizes = [8, 32], strides = [1, 1]} : vector<8x128xf32> to vector<8x32xf32>
    %227 = arith.mulf %226, %223 : vector<8x32xf32>
    %228 = arith.addf %225, %227 : vector<8x32xf32>
    %229 = vector.extract_strided_slice %221 {offsets = [0, 96], sizes = [8, 32], strides = [1, 1]} : vector<8x128xf32> to vector<8x32xf32>
    %230 = math.tanh %228 : vector<8x32xf32>
    %231 = arith.mulf %229, %230 : vector<8x32xf32>
    %232 = arith.index_cast %212 : i32 to index
    %c0_78 = arith.constant 0 : index
    %233 = vector.load %arg30[%232, %c0_78] : memref<64x32xf32, #tpu.memory_space<vmem>>, vector<8x32xf32>
    tpu.vector_store %arg30[%232, %c0_78], %231 {strides = array<i32>} : memref<64x32xf32, #tpu.memory_space<vmem>>, vector<8x32xf32>,
    %c1_i32_79 = arith.constant 1 : i32
    %c8_i32_80 = arith.constant 8 : i32
    %234 = arith.muli %c1_i32_79, %c8_i32_80 : i32
    %235 = tpu.assume_multiple %234, 8 : i32
    %236 = arith.index_cast %235 : i32 to index
    %c0_81 = arith.constant 0 : index
    %237 = vector.load %arg29[%236, %c0_81] : memref<64x128xf32, #tpu.memory_space<vmem>>, vector<8x128xf32>
    %cst_82 = arith.constant dense<0.000000e+00> : vector<8x128xf32>
    %238 = tpu.matmul %231, %204, %cst_82 {dimension_numbers = #tpu.dot_dimension_numbers<[1], [0], [0], [1], [0, 0, 1, 1], [], []>} : vector<8x32xf32>, vector<32x128xf32>, vector<8x128xf32> -> vector<8x128xf32>
    %239 = arith.addf %237, %238 : vector<8x128xf32>
    %240 = arith.negf %239 : vector<8x128xf32>
    %241 = math.exp %240 : vector<8x128xf32>
    %cst_83 = arith.constant 1.000000e+00 : f32
    %242 = vector.broadcast %cst_83 : f32 to vector<8x128xf32>
    %243 = arith.addf %242, %241 : vector<8x128xf32>
    %244 = arith.divf %242, %243 : vector<8x128xf32>
    %245 = vector.extract_strided_slice %239 {offsets = [0, 64], sizes = [8, 32], strides = [1, 1]} : vector<8x128xf32> to vector<8x32xf32>
    %246 = math.tanh %245 : vector<8x32xf32>
    %247 = vector.extract_strided_slice %244 {offsets = [0, 32], sizes = [8, 32], strides = [1, 1]} : vector<8x128xf32> to vector<8x32xf32>
    %248 = arith.mulf %247, %228 : vector<8x32xf32>
    %249 = vector.extract_strided_slice %244 {offsets = [0, 0], sizes = [8, 32], strides = [1, 1]} : vector<8x128xf32> to vector<8x32xf32>
    %250 = arith.mulf %249, %246 : vector<8x32xf32>
    %251 = arith.addf %248, %250 : vector<8x32xf32>
    %252 = vector.extract_strided_slice %244 {offsets = [0, 96], sizes = [8, 32], strides = [1, 1]} : vector<8x128xf32> to vector<8x32xf32>
    %253 = math.tanh %251 : vector<8x32xf32>
    %254 = arith.mulf %252, %253 : vector<8x32xf32>
    %255 = arith.index_cast %235 : i32 to index
    %c0_84 = arith.constant 0 : index
    %256 = vector.load %arg30[%255, %c0_84] : memref<64x32xf32, #tpu.memory_space<vmem>>, vector<8x32xf32>
    tpu.vector_store %arg30[%255, %c0_84], %254 {strides = array<i32>} : memref<64x32xf32, #tpu.memory_space<vmem>>, vector<8x32xf32>,
    %c2_i32_85 = arith.constant 2 : i32
    %c8_i32_86 = arith.constant 8 : i32
    %257 = arith.muli %c2_i32_85, %c8_i32_86 : i32
    %258 = tpu.assume_multiple %257, 8 : i32
    %259 = arith.index_cast %258 : i32 to index
    %c0_87 = arith.constant 0 : index
    %260 = vector.load %arg29[%259, %c0_87] : memref<64x128xf32, #tpu.memory_space<vmem>>, vector<8x128xf32>
    %cst_88 = arith.constant dense<0.000000e+00> : vector<8x128xf32>
    %261 = tpu.matmul %254, %204, %cst_88 {dimension_numbers = #tpu.dot_dimension_numbers<[1], [0], [0], [1], [0, 0, 1, 1], [], []>} : vector<8x32xf32>, vector<32x128xf32>, vector<8x128xf32> -> vector<8x128xf32>
    %262 = arith.addf %260, %261 : vector<8x128xf32>
    %263 = arith.negf %262 : vector<8x128xf32>
    %264 = math.exp %263 : vector<8x128xf32>
    %cst_89 = arith.constant 1.000000e+00 : f32
    %265 = vector.broadcast %cst_89 : f32 to vector<8x128xf32>
    %266 = arith.addf %265, %264 : vector<8x128xf32>
    %267 = arith.divf %265, %266 : vector<8x128xf32>
    %268 = vector.extract_strided_slice %262 {offsets = [0, 64], sizes = [8, 32], strides = [1, 1]} : vector<8x128xf32> to vector<8x32xf32>
    %269 = math.tanh %268 : vector<8x32xf32>
    %270 = vector.extract_strided_slice %267 {offsets = [0, 32], sizes = [8, 32], strides = [1, 1]} : vector<8x128xf32> to vector<8x32xf32>
    %271 = arith.mulf %270, %251 : vector<8x32xf32>
    %272 = vector.extract_strided_slice %267 {offsets = [0, 0], sizes = [8, 32], strides = [1, 1]} : vector<8x128xf32> to vector<8x32xf32>
    %273 = arith.mulf %272, %269 : vector<8x32xf32>
    %274 = arith.addf %271, %273 : vector<8x32xf32>
    %275 = vector.extract_strided_slice %267 {offsets = [0, 96], sizes = [8, 32], strides = [1, 1]} : vector<8x128xf32> to vector<8x32xf32>
    %276 = math.tanh %274 : vector<8x32xf32>
    %277 = arith.mulf %275, %276 : vector<8x32xf32>
    %278 = arith.index_cast %258 : i32 to index
    %c0_90 = arith.constant 0 : index
    %279 = vector.load %arg30[%278, %c0_90] : memref<64x32xf32, #tpu.memory_space<vmem>>, vector<8x32xf32>
    tpu.vector_store %arg30[%278, %c0_90], %277 {strides = array<i32>} : memref<64x32xf32, #tpu.memory_space<vmem>>, vector<8x32xf32>,
    %c3_i32_91 = arith.constant 3 : i32
    %c8_i32_92 = arith.constant 8 : i32
    %280 = arith.muli %c3_i32_91, %c8_i32_92 : i32
    %281 = tpu.assume_multiple %280, 8 : i32
    %282 = arith.index_cast %281 : i32 to index
    %c0_93 = arith.constant 0 : index
    %283 = vector.load %arg29[%282, %c0_93] : memref<64x128xf32, #tpu.memory_space<vmem>>, vector<8x128xf32>
    %cst_94 = arith.constant dense<0.000000e+00> : vector<8x128xf32>
    %284 = tpu.matmul %277, %204, %cst_94 {dimension_numbers = #tpu.dot_dimension_numbers<[1], [0], [0], [1], [0, 0, 1, 1], [], []>} : vector<8x32xf32>, vector<32x128xf32>, vector<8x128xf32> -> vector<8x128xf32>
    %285 = arith.addf %283, %284 : vector<8x128xf32>
    %286 = arith.negf %285 : vector<8x128xf32>
    %287 = math.exp %286 : vector<8x128xf32>
    %cst_95 = arith.constant 1.000000e+00 : f32
    %288 = vector.broadcast %cst_95 : f32 to vector<8x128xf32>
    %289 = arith.addf %288, %287 : vector<8x128xf32>
    %290 = arith.divf %288, %289 : vector<8x128xf32>
    %291 = vector.extract_strided_slice %285 {offsets = [0, 64], sizes = [8, 32], strides = [1, 1]} : vector<8x128xf32> to vector<8x32xf32>
    %292 = math.tanh %291 : vector<8x32xf32>
    %293 = vector.extract_strided_slice %290 {offsets = [0, 32], sizes = [8, 32], strides = [1, 1]} : vector<8x128xf32> to vector<8x32xf32>
    %294 = arith.mulf %293, %274 : vector<8x32xf32>
    %295 = vector.extract_strided_slice %290 {offsets = [0, 0], sizes = [8, 32], strides = [1, 1]} : vector<8x128xf32> to vector<8x32xf32>
    %296 = arith.mulf %295, %292 : vector<8x32xf32>
    %297 = arith.addf %294, %296 : vector<8x32xf32>
    %298 = vector.extract_strided_slice %290 {offsets = [0, 96], sizes = [8, 32], strides = [1, 1]} : vector<8x128xf32> to vector<8x32xf32>
    %299 = math.tanh %297 : vector<8x32xf32>
    %300 = arith.mulf %298, %299 : vector<8x32xf32>
    %301 = arith.index_cast %281 : i32 to index
    %c0_96 = arith.constant 0 : index
    %302 = vector.load %arg30[%301, %c0_96] : memref<64x32xf32, #tpu.memory_space<vmem>>, vector<8x32xf32>
    tpu.vector_store %arg30[%301, %c0_96], %300 {strides = array<i32>} : memref<64x32xf32, #tpu.memory_space<vmem>>, vector<8x32xf32>,
    %c4_i32_97 = arith.constant 4 : i32
    %c8_i32_98 = arith.constant 8 : i32
    %303 = arith.muli %c4_i32_97, %c8_i32_98 : i32
    %304 = tpu.assume_multiple %303, 8 : i32
    %305 = arith.index_cast %304 : i32 to index
    %c0_99 = arith.constant 0 : index
    %306 = vector.load %arg29[%305, %c0_99] : memref<64x128xf32, #tpu.memory_space<vmem>>, vector<8x128xf32>
    %cst_100 = arith.constant dense<0.000000e+00> : vector<8x128xf32>
    %307 = tpu.matmul %300, %204, %cst_100 {dimension_numbers = #tpu.dot_dimension_numbers<[1], [0], [0], [1], [0, 0, 1, 1], [], []>} : vector<8x32xf32>, vector<32x128xf32>, vector<8x128xf32> -> vector<8x128xf32>
    %308 = arith.addf %306, %307 : vector<8x128xf32>
    %309 = arith.negf %308 : vector<8x128xf32>
    %310 = math.exp %309 : vector<8x128xf32>
    %cst_101 = arith.constant 1.000000e+00 : f32
    %311 = vector.broadcast %cst_101 : f32 to vector<8x128xf32>
    %312 = arith.addf %311, %310 : vector<8x128xf32>
    %313 = arith.divf %311, %312 : vector<8x128xf32>
    %314 = vector.extract_strided_slice %308 {offsets = [0, 64], sizes = [8, 32], strides = [1, 1]} : vector<8x128xf32> to vector<8x32xf32>
    %315 = math.tanh %314 : vector<8x32xf32>
    %316 = vector.extract_strided_slice %313 {offsets = [0, 32], sizes = [8, 32], strides = [1, 1]} : vector<8x128xf32> to vector<8x32xf32>
    %317 = arith.mulf %316, %297 : vector<8x32xf32>
    %318 = vector.extract_strided_slice %313 {offsets = [0, 0], sizes = [8, 32], strides = [1, 1]} : vector<8x128xf32> to vector<8x32xf32>
    %319 = arith.mulf %318, %315 : vector<8x32xf32>
    %320 = arith.addf %317, %319 : vector<8x32xf32>
    %321 = vector.extract_strided_slice %313 {offsets = [0, 96], sizes = [8, 32], strides = [1, 1]} : vector<8x128xf32> to vector<8x32xf32>
    %322 = math.tanh %320 : vector<8x32xf32>
    %323 = arith.mulf %321, %322 : vector<8x32xf32>
    %324 = arith.index_cast %304 : i32 to index
    %c0_102 = arith.constant 0 : index
    %325 = vector.load %arg30[%324, %c0_102] : memref<64x32xf32, #tpu.memory_space<vmem>>, vector<8x32xf32>
    tpu.vector_store %arg30[%324, %c0_102], %323 {strides = array<i32>} : memref<64x32xf32, #tpu.memory_space<vmem>>, vector<8x32xf32>,
    %c5_i32_103 = arith.constant 5 : i32
    %c8_i32_104 = arith.constant 8 : i32
    %326 = arith.muli %c5_i32_103, %c8_i32_104 : i32
    %327 = tpu.assume_multiple %326, 8 : i32
    %328 = arith.index_cast %327 : i32 to index
    %c0_105 = arith.constant 0 : index
    %329 = vector.load %arg29[%328, %c0_105] : memref<64x128xf32, #tpu.memory_space<vmem>>, vector<8x128xf32>
    %cst_106 = arith.constant dense<0.000000e+00> : vector<8x128xf32>
    %330 = tpu.matmul %323, %204, %cst_106 {dimension_numbers = #tpu.dot_dimension_numbers<[1], [0], [0], [1], [0, 0, 1, 1], [], []>} : vector<8x32xf32>, vector<32x128xf32>, vector<8x128xf32> -> vector<8x128xf32>
    %331 = arith.addf %329, %330 : vector<8x128xf32>
    %332 = arith.negf %331 : vector<8x128xf32>
    %333 = math.exp %332 : vector<8x128xf32>
    %cst_107 = arith.constant 1.000000e+00 : f32
    %334 = vector.broadcast %cst_107 : f32 to vector<8x128xf32>
    %335 = arith.addf %334, %333 : vector<8x128xf32>
    %336 = arith.divf %334, %335 : vector<8x128xf32>
    %337 = vector.extract_strided_slice %331 {offsets = [0, 64], sizes = [8, 32], strides = [1, 1]} : vector<8x128xf32> to vector<8x32xf32>
    %338 = math.tanh %337 : vector<8x32xf32>
    %339 = vector.extract_strided_slice %336 {offsets = [0, 32], sizes = [8, 32], strides = [1, 1]} : vector<8x128xf32> to vector<8x32xf32>
    %340 = arith.mulf %339, %320 : vector<8x32xf32>
    %341 = vector.extract_strided_slice %336 {offsets = [0, 0], sizes = [8, 32], strides = [1, 1]} : vector<8x128xf32> to vector<8x32xf32>
    %342 = arith.mulf %341, %338 : vector<8x32xf32>
    %343 = arith.addf %340, %342 : vector<8x32xf32>
    %344 = vector.extract_strided_slice %336 {offsets = [0, 96], sizes = [8, 32], strides = [1, 1]} : vector<8x128xf32> to vector<8x32xf32>
    %345 = math.tanh %343 : vector<8x32xf32>
    %346 = arith.mulf %344, %345 : vector<8x32xf32>
    %347 = arith.index_cast %327 : i32 to index
    %c0_108 = arith.constant 0 : index
    %348 = vector.load %arg30[%347, %c0_108] : memref<64x32xf32, #tpu.memory_space<vmem>>, vector<8x32xf32>
    tpu.vector_store %arg30[%347, %c0_108], %346 {strides = array<i32>} : memref<64x32xf32, #tpu.memory_space<vmem>>, vector<8x32xf32>,
    %c6_i32_109 = arith.constant 6 : i32
    %c8_i32_110 = arith.constant 8 : i32
    %349 = arith.muli %c6_i32_109, %c8_i32_110 : i32
    %350 = tpu.assume_multiple %349, 8 : i32
    %351 = arith.index_cast %350 : i32 to index
    %c0_111 = arith.constant 0 : index
    %352 = vector.load %arg29[%351, %c0_111] : memref<64x128xf32, #tpu.memory_space<vmem>>, vector<8x128xf32>
    %cst_112 = arith.constant dense<0.000000e+00> : vector<8x128xf32>
    %353 = tpu.matmul %346, %204, %cst_112 {dimension_numbers = #tpu.dot_dimension_numbers<[1], [0], [0], [1], [0, 0, 1, 1], [], []>} : vector<8x32xf32>, vector<32x128xf32>, vector<8x128xf32> -> vector<8x128xf32>
    %354 = arith.addf %352, %353 : vector<8x128xf32>
    %355 = arith.negf %354 : vector<8x128xf32>
    %356 = math.exp %355 : vector<8x128xf32>
    %cst_113 = arith.constant 1.000000e+00 : f32
    %357 = vector.broadcast %cst_113 : f32 to vector<8x128xf32>
    %358 = arith.addf %357, %356 : vector<8x128xf32>
    %359 = arith.divf %357, %358 : vector<8x128xf32>
    %360 = vector.extract_strided_slice %354 {offsets = [0, 64], sizes = [8, 32], strides = [1, 1]} : vector<8x128xf32> to vector<8x32xf32>
    %361 = math.tanh %360 : vector<8x32xf32>
    %362 = vector.extract_strided_slice %359 {offsets = [0, 32], sizes = [8, 32], strides = [1, 1]} : vector<8x128xf32> to vector<8x32xf32>
    %363 = arith.mulf %362, %343 : vector<8x32xf32>
    %364 = vector.extract_strided_slice %359 {offsets = [0, 0], sizes = [8, 32], strides = [1, 1]} : vector<8x128xf32> to vector<8x32xf32>
    %365 = arith.mulf %364, %361 : vector<8x32xf32>
    %366 = arith.addf %363, %365 : vector<8x32xf32>
    %367 = vector.extract_strided_slice %359 {offsets = [0, 96], sizes = [8, 32], strides = [1, 1]} : vector<8x128xf32> to vector<8x32xf32>
    %368 = math.tanh %366 : vector<8x32xf32>
    %369 = arith.mulf %367, %368 : vector<8x32xf32>
    %370 = arith.index_cast %350 : i32 to index
    %c0_114 = arith.constant 0 : index
    %371 = vector.load %arg30[%370, %c0_114] : memref<64x32xf32, #tpu.memory_space<vmem>>, vector<8x32xf32>
    tpu.vector_store %arg30[%370, %c0_114], %369 {strides = array<i32>} : memref<64x32xf32, #tpu.memory_space<vmem>>, vector<8x32xf32>,
    %c7_i32_115 = arith.constant 7 : i32
    %c8_i32_116 = arith.constant 8 : i32
    %372 = arith.muli %c7_i32_115, %c8_i32_116 : i32
    %373 = tpu.assume_multiple %372, 8 : i32
    %374 = arith.index_cast %373 : i32 to index
    %c0_117 = arith.constant 0 : index
    %375 = vector.load %arg29[%374, %c0_117] : memref<64x128xf32, #tpu.memory_space<vmem>>, vector<8x128xf32>
    %cst_118 = arith.constant dense<0.000000e+00> : vector<8x128xf32>
    %376 = tpu.matmul %369, %204, %cst_118 {dimension_numbers = #tpu.dot_dimension_numbers<[1], [0], [0], [1], [0, 0, 1, 1], [], []>} : vector<8x32xf32>, vector<32x128xf32>, vector<8x128xf32> -> vector<8x128xf32>
    %377 = arith.addf %375, %376 : vector<8x128xf32>
    %378 = arith.negf %377 : vector<8x128xf32>
    %379 = math.exp %378 : vector<8x128xf32>
    %cst_119 = arith.constant 1.000000e+00 : f32
    %380 = vector.broadcast %cst_119 : f32 to vector<8x128xf32>
    %381 = arith.addf %380, %379 : vector<8x128xf32>
    %382 = arith.divf %380, %381 : vector<8x128xf32>
    %383 = vector.extract_strided_slice %377 {offsets = [0, 64], sizes = [8, 32], strides = [1, 1]} : vector<8x128xf32> to vector<8x32xf32>
    %384 = math.tanh %383 : vector<8x32xf32>
    %385 = vector.extract_strided_slice %382 {offsets = [0, 32], sizes = [8, 32], strides = [1, 1]} : vector<8x128xf32> to vector<8x32xf32>
    %386 = arith.mulf %385, %366 : vector<8x32xf32>
    %387 = vector.extract_strided_slice %382 {offsets = [0, 0], sizes = [8, 32], strides = [1, 1]} : vector<8x128xf32> to vector<8x32xf32>
    %388 = arith.mulf %387, %384 : vector<8x32xf32>
    %389 = arith.addf %386, %388 : vector<8x32xf32>
    %390 = vector.extract_strided_slice %382 {offsets = [0, 96], sizes = [8, 32], strides = [1, 1]} : vector<8x128xf32> to vector<8x32xf32>
    %391 = math.tanh %389 : vector<8x32xf32>
    %392 = arith.mulf %390, %391 : vector<8x32xf32>
    %393 = arith.index_cast %373 : i32 to index
    %c0_120 = arith.constant 0 : index
    %394 = vector.load %arg30[%393, %c0_120] : memref<64x32xf32, #tpu.memory_space<vmem>>, vector<8x32xf32>
    tpu.vector_store %arg30[%393, %c0_120], %392 {strides = array<i32>} : memref<64x32xf32, #tpu.memory_space<vmem>>, vector<8x32xf32>,
    %c8_i32_121 = arith.constant 8 : i32
    %c56 = arith.constant 56 : index
    %c0_122 = arith.constant 0 : index
    %395 = vector.load %arg30[%c56, %c0_122] : memref<64x32xf32, #tpu.memory_space<vmem>>, vector<8x32xf32>
    %c0_123 = arith.constant 0 : index
    %c0_124 = arith.constant 0 : index
    %396 = vector.load %arg10[%c0_123, %c0_124] : memref<32x8xf32, #tpu.memory_space<vmem>>, vector<32x8xf32>
    %cst_125 = arith.constant dense<0.000000e+00> : vector<8x8xf32>
    %397 = tpu.matmul %395, %396, %cst_125 {dimension_numbers = #tpu.dot_dimension_numbers<[1], [0], [0], [1], [0, 0, 1, 1], [], []>} : vector<8x32xf32>, vector<32x8xf32>, vector<8x8xf32> -> vector<8x8xf32>
    %c0_126 = arith.constant 0 : index
    %c0_127 = arith.constant 0 : index
    %398 = vector.load %arg11[%c0_126, %c0_127] : memref<1x8xf32, #tpu.memory_space<vmem>>, vector<1x8xf32>
    %399 = vector.broadcast %398 : vector<1x8xf32> to vector<8x8xf32>
    %400 = arith.addf %397, %399 : vector<8x8xf32>
    %c0_128 = arith.constant 0 : index
    %c0_129 = arith.constant 0 : index
    %c0_130 = arith.constant 0 : index
    %401 = vector.load %arg27[%c0_128, %c0_129, %c0_130] : memref<1x8x8xf32, #tpu.memory_space<vmem>>, vector<1x8x8xf32>
    %402 = vector.shape_cast %401 : vector<1x8x8xf32> to vector<8x8xf32>
    %403 = vector.shape_cast %400 : vector<8x8xf32> to vector<1x8x8xf32>
    tpu.vector_store %arg27[%c0_128, %c0_129, %c0_130], %403 {strides = array<i32>} : memref<1x8x8xf32, #tpu.memory_space<vmem>>, vector<1x8x8xf32>,
    %404 = vector.extract_strided_slice %400 {offsets = [0, 0], sizes = [8, 4], strides = [1, 1]} : vector<8x8xf32> to vector<8x4xf32>
    %405 = vector.extract_strided_slice %400 {offsets = [0, 4], sizes = [8, 4], strides = [1, 1]} : vector<8x8xf32> to vector<8x4xf32>
    %cst_131 = arith.constant 5.000000e-01 : f32
    %406 = vector.broadcast %cst_131 : f32 to vector<8x4xf32>
    %407 = arith.mulf %406, %405 : vector<8x4xf32>
    %408 = math.exp %407 : vector<8x4xf32>
    %409 = arith.mulf %408, %3 : vector<8x4xf32>
    %410 = arith.addf %404, %409 : vector<8x4xf32>
    %c0_132 = arith.constant 0 : index
    %c0_133 = arith.constant 0 : index
    %411 = vector.load %arg12[%c0_132, %c0_133] : memref<4x257xf32, #tpu.memory_space<vmem>>, vector<4x257xf32>
    %cst_134 = arith.constant dense<0.000000e+00> : vector<8x257xf32>
    %412 = tpu.matmul %410, %411, %cst_134 {dimension_numbers = #tpu.dot_dimension_numbers<[1], [0], [0], [1], [0, 0, 1, 1], [], []>} : vector<8x4xf32>, vector<4x257xf32>, vector<8x257xf32> -> vector<8x257xf32>
    %413 = arith.addf %412, %10 : vector<8x257xf32>
    %414 = vector.extract_strided_slice %413 {offsets = [0, 0], sizes = [8, 128], strides = [1, 1]} : vector<8x257xf32> to vector<8x128xf32>
    %415 = vector.extract_strided_slice %413 {offsets = [0, 128], sizes = [8, 128], strides = [1, 1]} : vector<8x257xf32> to vector<8x128xf32>
    %416 = vector.extract_strided_slice %413 {offsets = [0, 256], sizes = [8, 1], strides = [1, 1]} : vector<8x257xf32> to vector<8x1xf32>
    %417 = vector.shape_cast %416 : vector<8x1xf32> to vector<8x1xf32>
    %418 = vector.broadcast %417 : vector<8x1xf32> to vector<8x32xf32>
    %c0_135 = arith.constant 0 : index
    %c0_136 = arith.constant 0 : index
    %419 = vector.load %arg31[%c0_135, %c0_136] : memref<64x128xf32, #tpu.memory_space<vmem>>, vector<8x128xf32>
    tpu.vector_store %arg31[%c0_135, %c0_136], %415 {strides = array<i32>} : memref<64x128xf32, #tpu.memory_space<vmem>>, vector<8x128xf32>,
    %420 = vector.extract_strided_slice %1 {offsets = [0, 0], sizes = [56, 16], strides = [1, 1]} : vector<64x16xf32> to vector<56x16xf32>
    %c0_137 = arith.constant 0 : index
    %c0_138 = arith.constant 0 : index
    %421 = vector.load %arg15[%c0_137, %c0_138] : memref<16x128xf32, #tpu.memory_space<vmem>>, vector<16x128xf32>
    %cst_139 = arith.constant dense<0.000000e+00> : vector<56x128xf32>
    %422 = tpu.matmul %420, %421, %cst_139 {dimension_numbers = #tpu.dot_dimension_numbers<[1], [0], [0], [1], [0, 0, 1, 1], [], []>} : vector<56x16xf32>, vector<16x128xf32>, vector<56x128xf32> -> vector<56x128xf32>
    %423 = tpu.concatenate %414, %414, %414, %414, %414, %414, %414 in 0 : vector<8x128xf32>, vector<8x128xf32>, vector<8x128xf32>, vector<8x128xf32>, vector<8x128xf32>, vector<8x128xf32>, vector<8x128xf32> -> vector<56x128xf32>
    %424 = arith.addf %422, %423 : vector<56x128xf32>
    %c8 = arith.constant 8 : index
    %c0_140 = arith.constant 0 : index
    %425 = vector.load %arg31[%c8, %c0_140] : memref<64x128xf32, #tpu.memory_space<vmem>>, vector<56x128xf32>
    tpu.vector_store %arg31[%c8, %c0_140], %424 {strides = array<i32>} : memref<64x128xf32, #tpu.memory_space<vmem>>, vector<56x128xf32>,
    %c0_141 = arith.constant 0 : index
    %c0_142 = arith.constant 0 : index
    %426 = vector.load %arg16[%c0_141, %c0_142] : memref<32x128xf32, #tpu.memory_space<vmem>>, vector<32x128xf32>
    %c0_i32_143 = arith.constant 0 : i32
    %c8_i32_144 = arith.constant 8 : i32
    %427 = arith.muli %c0_i32_143, %c8_i32_144 : i32
    %428 = tpu.assume_multiple %427, 8 : i32
    %429 = arith.index_cast %428 : i32 to index
    %c0_145 = arith.constant 0 : index
    %430 = vector.load %arg31[%429, %c0_145] : memref<64x128xf32, #tpu.memory_space<vmem>>, vector<8x128xf32>
    %cst_146 = arith.constant dense<0.000000e+00> : vector<8x128xf32>
    %431 = tpu.matmul %418, %426, %cst_146 {dimension_numbers = #tpu.dot_dimension_numbers<[1], [0], [0], [1], [0, 0, 1, 1], [], []>} : vector<8x32xf32>, vector<32x128xf32>, vector<8x128xf32> -> vector<8x128xf32>
    %432 = arith.addf %430, %431 : vector<8x128xf32>
    %433 = arith.negf %432 : vector<8x128xf32>
    %434 = math.exp %433 : vector<8x128xf32>
    %cst_147 = arith.constant 1.000000e+00 : f32
    %435 = vector.broadcast %cst_147 : f32 to vector<8x128xf32>
    %436 = arith.addf %435, %434 : vector<8x128xf32>
    %437 = arith.divf %435, %436 : vector<8x128xf32>
    %438 = vector.extract_strided_slice %432 {offsets = [0, 64], sizes = [8, 32], strides = [1, 1]} : vector<8x128xf32> to vector<8x32xf32>
    %439 = math.tanh %438 : vector<8x32xf32>
    %440 = vector.extract_strided_slice %437 {offsets = [0, 32], sizes = [8, 32], strides = [1, 1]} : vector<8x128xf32> to vector<8x32xf32>
    %441 = arith.mulf %440, %418 : vector<8x32xf32>
    %442 = vector.extract_strided_slice %437 {offsets = [0, 0], sizes = [8, 32], strides = [1, 1]} : vector<8x128xf32> to vector<8x32xf32>
    %443 = arith.mulf %442, %439 : vector<8x32xf32>
    %444 = arith.addf %441, %443 : vector<8x32xf32>
    %445 = vector.extract_strided_slice %437 {offsets = [0, 96], sizes = [8, 32], strides = [1, 1]} : vector<8x128xf32> to vector<8x32xf32>
    %446 = math.tanh %444 : vector<8x32xf32>
    %447 = arith.mulf %445, %446 : vector<8x32xf32>
    %448 = arith.index_cast %428 : i32 to index
    %c0_148 = arith.constant 0 : index
    %449 = vector.load %arg32[%448, %c0_148] : memref<64x32xf32, #tpu.memory_space<vmem>>, vector<8x32xf32>
    tpu.vector_store %arg32[%448, %c0_148], %447 {strides = array<i32>} : memref<64x32xf32, #tpu.memory_space<vmem>>, vector<8x32xf32>,
    %c1_i32_149 = arith.constant 1 : i32
    %c8_i32_150 = arith.constant 8 : i32
    %450 = arith.muli %c1_i32_149, %c8_i32_150 : i32
    %451 = tpu.assume_multiple %450, 8 : i32
    %452 = arith.index_cast %451 : i32 to index
    %c0_151 = arith.constant 0 : index
    %453 = vector.load %arg31[%452, %c0_151] : memref<64x128xf32, #tpu.memory_space<vmem>>, vector<8x128xf32>
    %cst_152 = arith.constant dense<0.000000e+00> : vector<8x128xf32>
    %454 = tpu.matmul %447, %426, %cst_152 {dimension_numbers = #tpu.dot_dimension_numbers<[1], [0], [0], [1], [0, 0, 1, 1], [], []>} : vector<8x32xf32>, vector<32x128xf32>, vector<8x128xf32> -> vector<8x128xf32>
    %455 = arith.addf %453, %454 : vector<8x128xf32>
    %456 = arith.negf %455 : vector<8x128xf32>
    %457 = math.exp %456 : vector<8x128xf32>
    %cst_153 = arith.constant 1.000000e+00 : f32
    %458 = vector.broadcast %cst_153 : f32 to vector<8x128xf32>
    %459 = arith.addf %458, %457 : vector<8x128xf32>
    %460 = arith.divf %458, %459 : vector<8x128xf32>
    %461 = vector.extract_strided_slice %455 {offsets = [0, 64], sizes = [8, 32], strides = [1, 1]} : vector<8x128xf32> to vector<8x32xf32>
    %462 = math.tanh %461 : vector<8x32xf32>
    %463 = vector.extract_strided_slice %460 {offsets = [0, 32], sizes = [8, 32], strides = [1, 1]} : vector<8x128xf32> to vector<8x32xf32>
    %464 = arith.mulf %463, %444 : vector<8x32xf32>
    %465 = vector.extract_strided_slice %460 {offsets = [0, 0], sizes = [8, 32], strides = [1, 1]} : vector<8x128xf32> to vector<8x32xf32>
    %466 = arith.mulf %465, %462 : vector<8x32xf32>
    %467 = arith.addf %464, %466 : vector<8x32xf32>
    %468 = vector.extract_strided_slice %460 {offsets = [0, 96], sizes = [8, 32], strides = [1, 1]} : vector<8x128xf32> to vector<8x32xf32>
    %469 = math.tanh %467 : vector<8x32xf32>
    %470 = arith.mulf %468, %469 : vector<8x32xf32>
    %471 = arith.index_cast %451 : i32 to index
    %c0_154 = arith.constant 0 : index
    %472 = vector.load %arg32[%471, %c0_154] : memref<64x32xf32, #tpu.memory_space<vmem>>, vector<8x32xf32>
    tpu.vector_store %arg32[%471, %c0_154], %470 {strides = array<i32>} : memref<64x32xf32, #tpu.memory_space<vmem>>, vector<8x32xf32>,
    %c2_i32_155 = arith.constant 2 : i32
    %c8_i32_156 = arith.constant 8 : i32
    %473 = arith.muli %c2_i32_155, %c8_i32_156 : i32
    %474 = tpu.assume_multiple %473, 8 : i32
    %475 = arith.index_cast %474 : i32 to index
    %c0_157 = arith.constant 0 : index
    %476 = vector.load %arg31[%475, %c0_157] : memref<64x128xf32, #tpu.memory_space<vmem>>, vector<8x128xf32>
    %cst_158 = arith.constant dense<0.000000e+00> : vector<8x128xf32>
    %477 = tpu.matmul %470, %426, %cst_158 {dimension_numbers = #tpu.dot_dimension_numbers<[1], [0], [0], [1], [0, 0, 1, 1], [], []>} : vector<8x32xf32>, vector<32x128xf32>, vector<8x128xf32> -> vector<8x128xf32>
    %478 = arith.addf %476, %477 : vector<8x128xf32>
    %479 = arith.negf %478 : vector<8x128xf32>
    %480 = math.exp %479 : vector<8x128xf32>
    %cst_159 = arith.constant 1.000000e+00 : f32
    %481 = vector.broadcast %cst_159 : f32 to vector<8x128xf32>
    %482 = arith.addf %481, %480 : vector<8x128xf32>
    %483 = arith.divf %481, %482 : vector<8x128xf32>
    %484 = vector.extract_strided_slice %478 {offsets = [0, 64], sizes = [8, 32], strides = [1, 1]} : vector<8x128xf32> to vector<8x32xf32>
    %485 = math.tanh %484 : vector<8x32xf32>
    %486 = vector.extract_strided_slice %483 {offsets = [0, 32], sizes = [8, 32], strides = [1, 1]} : vector<8x128xf32> to vector<8x32xf32>
    %487 = arith.mulf %486, %467 : vector<8x32xf32>
    %488 = vector.extract_strided_slice %483 {offsets = [0, 0], sizes = [8, 32], strides = [1, 1]} : vector<8x128xf32> to vector<8x32xf32>
    %489 = arith.mulf %488, %485 : vector<8x32xf32>
    %490 = arith.addf %487, %489 : vector<8x32xf32>
    %491 = vector.extract_strided_slice %483 {offsets = [0, 96], sizes = [8, 32], strides = [1, 1]} : vector<8x128xf32> to vector<8x32xf32>
    %492 = math.tanh %490 : vector<8x32xf32>
    %493 = arith.mulf %491, %492 : vector<8x32xf32>
    %494 = arith.index_cast %474 : i32 to index
    %c0_160 = arith.constant 0 : index
    %495 = vector.load %arg32[%494, %c0_160] : memref<64x32xf32, #tpu.memory_space<vmem>>, vector<8x32xf32>
    tpu.vector_store %arg32[%494, %c0_160], %493 {strides = array<i32>} : memref<64x32xf32, #tpu.memory_space<vmem>>, vector<8x32xf32>,
    %c3_i32_161 = arith.constant 3 : i32
    %c8_i32_162 = arith.constant 8 : i32
    %496 = arith.muli %c3_i32_161, %c8_i32_162 : i32
    %497 = tpu.assume_multiple %496, 8 : i32
    %498 = arith.index_cast %497 : i32 to index
    %c0_163 = arith.constant 0 : index
    %499 = vector.load %arg31[%498, %c0_163] : memref<64x128xf32, #tpu.memory_space<vmem>>, vector<8x128xf32>
    %cst_164 = arith.constant dense<0.000000e+00> : vector<8x128xf32>
    %500 = tpu.matmul %493, %426, %cst_164 {dimension_numbers = #tpu.dot_dimension_numbers<[1], [0], [0], [1], [0, 0, 1, 1], [], []>} : vector<8x32xf32>, vector<32x128xf32>, vector<8x128xf32> -> vector<8x128xf32>
    %501 = arith.addf %499, %500 : vector<8x128xf32>
    %502 = arith.negf %501 : vector<8x128xf32>
    %503 = math.exp %502 : vector<8x128xf32>
    %cst_165 = arith.constant 1.000000e+00 : f32
    %504 = vector.broadcast %cst_165 : f32 to vector<8x128xf32>
    %505 = arith.addf %504, %503 : vector<8x128xf32>
    %506 = arith.divf %504, %505 : vector<8x128xf32>
    %507 = vector.extract_strided_slice %501 {offsets = [0, 64], sizes = [8, 32], strides = [1, 1]} : vector<8x128xf32> to vector<8x32xf32>
    %508 = math.tanh %507 : vector<8x32xf32>
    %509 = vector.extract_strided_slice %506 {offsets = [0, 32], sizes = [8, 32], strides = [1, 1]} : vector<8x128xf32> to vector<8x32xf32>
    %510 = arith.mulf %509, %490 : vector<8x32xf32>
    %511 = vector.extract_strided_slice %506 {offsets = [0, 0], sizes = [8, 32], strides = [1, 1]} : vector<8x128xf32> to vector<8x32xf32>
    %512 = arith.mulf %511, %508 : vector<8x32xf32>
    %513 = arith.addf %510, %512 : vector<8x32xf32>
    %514 = vector.extract_strided_slice %506 {offsets = [0, 96], sizes = [8, 32], strides = [1, 1]} : vector<8x128xf32> to vector<8x32xf32>
    %515 = math.tanh %513 : vector<8x32xf32>
    %516 = arith.mulf %514, %515 : vector<8x32xf32>
    %517 = arith.index_cast %497 : i32 to index
    %c0_166 = arith.constant 0 : index
    %518 = vector.load %arg32[%517, %c0_166] : memref<64x32xf32, #tpu.memory_space<vmem>>, vector<8x32xf32>
    tpu.vector_store %arg32[%517, %c0_166], %516 {strides = array<i32>} : memref<64x32xf32, #tpu.memory_space<vmem>>, vector<8x32xf32>,
    %c4_i32_167 = arith.constant 4 : i32
    %c8_i32_168 = arith.constant 8 : i32
    %519 = arith.muli %c4_i32_167, %c8_i32_168 : i32
    %520 = tpu.assume_multiple %519, 8 : i32
    %521 = arith.index_cast %520 : i32 to index
    %c0_169 = arith.constant 0 : index
    %522 = vector.load %arg31[%521, %c0_169] : memref<64x128xf32, #tpu.memory_space<vmem>>, vector<8x128xf32>
    %cst_170 = arith.constant dense<0.000000e+00> : vector<8x128xf32>
    %523 = tpu.matmul %516, %426, %cst_170 {dimension_numbers = #tpu.dot_dimension_numbers<[1], [0], [0], [1], [0, 0, 1, 1], [], []>} : vector<8x32xf32>, vector<32x128xf32>, vector<8x128xf32> -> vector<8x128xf32>
    %524 = arith.addf %522, %523 : vector<8x128xf32>
    %525 = arith.negf %524 : vector<8x128xf32>
    %526 = math.exp %525 : vector<8x128xf32>
    %cst_171 = arith.constant 1.000000e+00 : f32
    %527 = vector.broadcast %cst_171 : f32 to vector<8x128xf32>
    %528 = arith.addf %527, %526 : vector<8x128xf32>
    %529 = arith.divf %527, %528 : vector<8x128xf32>
    %530 = vector.extract_strided_slice %524 {offsets = [0, 64], sizes = [8, 32], strides = [1, 1]} : vector<8x128xf32> to vector<8x32xf32>
    %531 = math.tanh %530 : vector<8x32xf32>
    %532 = vector.extract_strided_slice %529 {offsets = [0, 32], sizes = [8, 32], strides = [1, 1]} : vector<8x128xf32> to vector<8x32xf32>
    %533 = arith.mulf %532, %513 : vector<8x32xf32>
    %534 = vector.extract_strided_slice %529 {offsets = [0, 0], sizes = [8, 32], strides = [1, 1]} : vector<8x128xf32> to vector<8x32xf32>
    %535 = arith.mulf %534, %531 : vector<8x32xf32>
    %536 = arith.addf %533, %535 : vector<8x32xf32>
    %537 = vector.extract_strided_slice %529 {offsets = [0, 96], sizes = [8, 32], strides = [1, 1]} : vector<8x128xf32> to vector<8x32xf32>
    %538 = math.tanh %536 : vector<8x32xf32>
    %539 = arith.mulf %537, %538 : vector<8x32xf32>
    %540 = arith.index_cast %520 : i32 to index
    %c0_172 = arith.constant 0 : index
    %541 = vector.load %arg32[%540, %c0_172] : memref<64x32xf32, #tpu.memory_space<vmem>>, vector<8x32xf32>
    tpu.vector_store %arg32[%540, %c0_172], %539 {strides = array<i32>} : memref<64x32xf32, #tpu.memory_space<vmem>>, vector<8x32xf32>,
    %c5_i32_173 = arith.constant 5 : i32
    %c8_i32_174 = arith.constant 8 : i32
    %542 = arith.muli %c5_i32_173, %c8_i32_174 : i32
    %543 = tpu.assume_multiple %542, 8 : i32
    %544 = arith.index_cast %543 : i32 to index
    %c0_175 = arith.constant 0 : index
    %545 = vector.load %arg31[%544, %c0_175] : memref<64x128xf32, #tpu.memory_space<vmem>>, vector<8x128xf32>
    %cst_176 = arith.constant dense<0.000000e+00> : vector<8x128xf32>
    %546 = tpu.matmul %539, %426, %cst_176 {dimension_numbers = #tpu.dot_dimension_numbers<[1], [0], [0], [1], [0, 0, 1, 1], [], []>} : vector<8x32xf32>, vector<32x128xf32>, vector<8x128xf32> -> vector<8x128xf32>
    %547 = arith.addf %545, %546 : vector<8x128xf32>
    %548 = arith.negf %547 : vector<8x128xf32>
    %549 = math.exp %548 : vector<8x128xf32>
    %cst_177 = arith.constant 1.000000e+00 : f32
    %550 = vector.broadcast %cst_177 : f32 to vector<8x128xf32>
    %551 = arith.addf %550, %549 : vector<8x128xf32>
    %552 = arith.divf %550, %551 : vector<8x128xf32>
    %553 = vector.extract_strided_slice %547 {offsets = [0, 64], sizes = [8, 32], strides = [1, 1]} : vector<8x128xf32> to vector<8x32xf32>
    %554 = math.tanh %553 : vector<8x32xf32>
    %555 = vector.extract_strided_slice %552 {offsets = [0, 32], sizes = [8, 32], strides = [1, 1]} : vector<8x128xf32> to vector<8x32xf32>
    %556 = arith.mulf %555, %536 : vector<8x32xf32>
    %557 = vector.extract_strided_slice %552 {offsets = [0, 0], sizes = [8, 32], strides = [1, 1]} : vector<8x128xf32> to vector<8x32xf32>
    %558 = arith.mulf %557, %554 : vector<8x32xf32>
    %559 = arith.addf %556, %558 : vector<8x32xf32>
    %560 = vector.extract_strided_slice %552 {offsets = [0, 96], sizes = [8, 32], strides = [1, 1]} : vector<8x128xf32> to vector<8x32xf32>
    %561 = math.tanh %559 : vector<8x32xf32>
    %562 = arith.mulf %560, %561 : vector<8x32xf32>
    %563 = arith.index_cast %543 : i32 to index
    %c0_178 = arith.constant 0 : index
    %564 = vector.load %arg32[%563, %c0_178] : memref<64x32xf32, #tpu.memory_space<vmem>>, vector<8x32xf32>
    tpu.vector_store %arg32[%563, %c0_178], %562 {strides = array<i32>} : memref<64x32xf32, #tpu.memory_space<vmem>>, vector<8x32xf32>,
    %c6_i32_179 = arith.constant 6 : i32
    %c8_i32_180 = arith.constant 8 : i32
    %565 = arith.muli %c6_i32_179, %c8_i32_180 : i32
    %566 = tpu.assume_multiple %565, 8 : i32
    %567 = arith.index_cast %566 : i32 to index
    %c0_181 = arith.constant 0 : index
    %568 = vector.load %arg31[%567, %c0_181] : memref<64x128xf32, #tpu.memory_space<vmem>>, vector<8x128xf32>
    %cst_182 = arith.constant dense<0.000000e+00> : vector<8x128xf32>
    %569 = tpu.matmul %562, %426, %cst_182 {dimension_numbers = #tpu.dot_dimension_numbers<[1], [0], [0], [1], [0, 0, 1, 1], [], []>} : vector<8x32xf32>, vector<32x128xf32>, vector<8x128xf32> -> vector<8x128xf32>
    %570 = arith.addf %568, %569 : vector<8x128xf32>
    %571 = arith.negf %570 : vector<8x128xf32>
    %572 = math.exp %571 : vector<8x128xf32>
    %cst_183 = arith.constant 1.000000e+00 : f32
    %573 = vector.broadcast %cst_183 : f32 to vector<8x128xf32>
    %574 = arith.addf %573, %572 : vector<8x128xf32>
    %575 = arith.divf %573, %574 : vector<8x128xf32>
    %576 = vector.extract_strided_slice %570 {offsets = [0, 64], sizes = [8, 32], strides = [1, 1]} : vector<8x128xf32> to vector<8x32xf32>
    %577 = math.tanh %576 : vector<8x32xf32>
    %578 = vector.extract_strided_slice %575 {offsets = [0, 32], sizes = [8, 32], strides = [1, 1]} : vector<8x128xf32> to vector<8x32xf32>
    %579 = arith.mulf %578, %559 : vector<8x32xf32>
    %580 = vector.extract_strided_slice %575 {offsets = [0, 0], sizes = [8, 32], strides = [1, 1]} : vector<8x128xf32> to vector<8x32xf32>
    %581 = arith.mulf %580, %577 : vector<8x32xf32>
    %582 = arith.addf %579, %581 : vector<8x32xf32>
    %583 = vector.extract_strided_slice %575 {offsets = [0, 96], sizes = [8, 32], strides = [1, 1]} : vector<8x128xf32> to vector<8x32xf32>
    %584 = math.tanh %582 : vector<8x32xf32>
    %585 = arith.mulf %583, %584 : vector<8x32xf32>
    %586 = arith.index_cast %566 : i32 to index
    %c0_184 = arith.constant 0 : index
    %587 = vector.load %arg32[%586, %c0_184] : memref<64x32xf32, #tpu.memory_space<vmem>>, vector<8x32xf32>
    tpu.vector_store %arg32[%586, %c0_184], %585 {strides = array<i32>} : memref<64x32xf32, #tpu.memory_space<vmem>>, vector<8x32xf32>,
    %c7_i32_185 = arith.constant 7 : i32
    %c8_i32_186 = arith.constant 8 : i32
    %588 = arith.muli %c7_i32_185, %c8_i32_186 : i32
    %589 = tpu.assume_multiple %588, 8 : i32
    %590 = arith.index_cast %589 : i32 to index
    %c0_187 = arith.constant 0 : index
    %591 = vector.load %arg31[%590, %c0_187] : memref<64x128xf32, #tpu.memory_space<vmem>>, vector<8x128xf32>
    %cst_188 = arith.constant dense<0.000000e+00> : vector<8x128xf32>
    %592 = tpu.matmul %585, %426, %cst_188 {dimension_numbers = #tpu.dot_dimension_numbers<[1], [0], [0], [1], [0, 0, 1, 1], [], []>} : vector<8x32xf32>, vector<32x128xf32>, vector<8x128xf32> -> vector<8x128xf32>
    %593 = arith.addf %591, %592 : vector<8x128xf32>
    %594 = arith.negf %593 : vector<8x128xf32>
    %595 = math.exp %594 : vector<8x128xf32>
    %cst_189 = arith.constant 1.000000e+00 : f32
    %596 = vector.broadcast %cst_189 : f32 to vector<8x128xf32>
    %597 = arith.addf %596, %595 : vector<8x128xf32>
    %598 = arith.divf %596, %597 : vector<8x128xf32>
    %599 = vector.extract_strided_slice %593 {offsets = [0, 64], sizes = [8, 32], strides = [1, 1]} : vector<8x128xf32> to vector<8x32xf32>
    %600 = math.tanh %599 : vector<8x32xf32>
    %601 = vector.extract_strided_slice %598 {offsets = [0, 32], sizes = [8, 32], strides = [1, 1]} : vector<8x128xf32> to vector<8x32xf32>
    %602 = arith.mulf %601, %582 : vector<8x32xf32>
    %603 = vector.extract_strided_slice %598 {offsets = [0, 0], sizes = [8, 32], strides = [1, 1]} : vector<8x128xf32> to vector<8x32xf32>
    %604 = arith.mulf %603, %600 : vector<8x32xf32>
    %605 = arith.addf %602, %604 : vector<8x32xf32>
    %606 = vector.extract_strided_slice %598 {offsets = [0, 96], sizes = [8, 32], strides = [1, 1]} : vector<8x128xf32> to vector<8x32xf32>
    %607 = math.tanh %605 : vector<8x32xf32>
    %608 = arith.mulf %606, %607 : vector<8x32xf32>
    %609 = arith.index_cast %589 : i32 to index
    %c0_190 = arith.constant 0 : index
    %610 = vector.load %arg32[%609, %c0_190] : memref<64x32xf32, #tpu.memory_space<vmem>>, vector<8x32xf32>
    tpu.vector_store %arg32[%609, %c0_190], %608 {strides = array<i32>} : memref<64x32xf32, #tpu.memory_space<vmem>>, vector<8x32xf32>,
    %c8_i32_191 = arith.constant 8 : i32
    %c0_192 = arith.constant 0 : index
    %c0_193 = arith.constant 0 : index
    %611 = vector.load %arg17[%c0_192, %c0_193] : memref<32x128xf32, #tpu.memory_space<vmem>>, vector<32x128xf32>
    %c0_194 = arith.constant 0 : index
    %c0_195 = arith.constant 0 : index
    %612 = vector.load %arg18[%c0_194, %c0_195] : memref<32x128xf32, #tpu.memory_space<vmem>>, vector<32x128xf32>
    %c0_196 = arith.constant 0 : index
    %c0_197 = arith.constant 0 : index
    %613 = vector.load %arg19[%c0_196, %c0_197] : memref<1x128xf32, #tpu.memory_space<vmem>>, vector<1x128xf32>
    %c0_198 = arith.constant 0 : index
    %c0_199 = arith.constant 0 : index
    %614 = vector.load %arg32[%c0_198, %c0_199] : memref<64x32xf32, #tpu.memory_space<vmem>>, vector<64x32xf32>
    %cst_200 = arith.constant dense<0.000000e+00> : vector<64x128xf32>
    %615 = tpu.matmul %614, %611, %cst_200 {dimension_numbers = #tpu.dot_dimension_numbers<[1], [0], [0], [1], [0, 0, 1, 1], [], []>} : vector<64x32xf32>, vector<32x128xf32>, vector<64x128xf32> -> vector<64x128xf32>
    %616 = vector.broadcast %613 : vector<1x128xf32> to vector<64x128xf32>
    %617 = arith.addf %615, %616 : vector<64x128xf32>
    %c0_201 = arith.constant 0 : index
    %c0_202 = arith.constant 0 : index
    %618 = vector.load %arg31[%c0_201, %c0_202] : memref<64x128xf32, #tpu.memory_space<vmem>>, vector<64x128xf32>
    tpu.vector_store %arg31[%c0_201, %c0_202], %617 {strides = array<i32>} : memref<64x128xf32, #tpu.memory_space<vmem>>, vector<64x128xf32>,
    %c0_i32_203 = arith.constant 0 : i32
    %c8_i32_204 = arith.constant 8 : i32
    %619 = arith.muli %c0_i32_203, %c8_i32_204 : i32
    %620 = tpu.assume_multiple %619, 8 : i32
    %621 = arith.index_cast %620 : i32 to index
    %c0_205 = arith.constant 0 : index
    %622 = vector.load %arg31[%621, %c0_205] : memref<64x128xf32, #tpu.memory_space<vmem>>, vector<8x128xf32>
    %cst_206 = arith.constant dense<0.000000e+00> : vector<8x128xf32>
    %623 = tpu.matmul %418, %612, %cst_206 {dimension_numbers = #tpu.dot_dimension_numbers<[1], [0], [0], [1], [0, 0, 1, 1], [], []>} : vector<8x32xf32>, vector<32x128xf32>, vector<8x128xf32> -> vector<8x128xf32>
    %624 = arith.addf %622, %623 : vector<8x128xf32>
    %625 = arith.negf %624 : vector<8x128xf32>
    %626 = math.exp %625 : vector<8x128xf32>
    %cst_207 = arith.constant 1.000000e+00 : f32
    %627 = vector.broadcast %cst_207 : f32 to vector<8x128xf32>
    %628 = arith.addf %627, %626 : vector<8x128xf32>
    %629 = arith.divf %627, %628 : vector<8x128xf32>
    %630 = vector.extract_strided_slice %624 {offsets = [0, 64], sizes = [8, 32], strides = [1, 1]} : vector<8x128xf32> to vector<8x32xf32>
    %631 = math.tanh %630 : vector<8x32xf32>
    %632 = vector.extract_strided_slice %629 {offsets = [0, 32], sizes = [8, 32], strides = [1, 1]} : vector<8x128xf32> to vector<8x32xf32>
    %633 = arith.mulf %632, %418 : vector<8x32xf32>
    %634 = vector.extract_strided_slice %629 {offsets = [0, 0], sizes = [8, 32], strides = [1, 1]} : vector<8x128xf32> to vector<8x32xf32>
    %635 = arith.mulf %634, %631 : vector<8x32xf32>
    %636 = arith.addf %633, %635 : vector<8x32xf32>
    %637 = vector.extract_strided_slice %629 {offsets = [0, 96], sizes = [8, 32], strides = [1, 1]} : vector<8x128xf32> to vector<8x32xf32>
    %638 = math.tanh %636 : vector<8x32xf32>
    %639 = arith.mulf %637, %638 : vector<8x32xf32>
    %640 = arith.index_cast %620 : i32 to index
    %c0_208 = arith.constant 0 : index
    %641 = vector.load %arg32[%640, %c0_208] : memref<64x32xf32, #tpu.memory_space<vmem>>, vector<8x32xf32>
    tpu.vector_store %arg32[%640, %c0_208], %639 {strides = array<i32>} : memref<64x32xf32, #tpu.memory_space<vmem>>, vector<8x32xf32>,
    %c1_i32_209 = arith.constant 1 : i32
    %c8_i32_210 = arith.constant 8 : i32
    %642 = arith.muli %c1_i32_209, %c8_i32_210 : i32
    %643 = tpu.assume_multiple %642, 8 : i32
    %644 = arith.index_cast %643 : i32 to index
    %c0_211 = arith.constant 0 : index
    %645 = vector.load %arg31[%644, %c0_211] : memref<64x128xf32, #tpu.memory_space<vmem>>, vector<8x128xf32>
    %cst_212 = arith.constant dense<0.000000e+00> : vector<8x128xf32>
    %646 = tpu.matmul %639, %612, %cst_212 {dimension_numbers = #tpu.dot_dimension_numbers<[1], [0], [0], [1], [0, 0, 1, 1], [], []>} : vector<8x32xf32>, vector<32x128xf32>, vector<8x128xf32> -> vector<8x128xf32>
    %647 = arith.addf %645, %646 : vector<8x128xf32>
    %648 = arith.negf %647 : vector<8x128xf32>
    %649 = math.exp %648 : vector<8x128xf32>
    %cst_213 = arith.constant 1.000000e+00 : f32
    %650 = vector.broadcast %cst_213 : f32 to vector<8x128xf32>
    %651 = arith.addf %650, %649 : vector<8x128xf32>
    %652 = arith.divf %650, %651 : vector<8x128xf32>
    %653 = vector.extract_strided_slice %647 {offsets = [0, 64], sizes = [8, 32], strides = [1, 1]} : vector<8x128xf32> to vector<8x32xf32>
    %654 = math.tanh %653 : vector<8x32xf32>
    %655 = vector.extract_strided_slice %652 {offsets = [0, 32], sizes = [8, 32], strides = [1, 1]} : vector<8x128xf32> to vector<8x32xf32>
    %656 = arith.mulf %655, %636 : vector<8x32xf32>
    %657 = vector.extract_strided_slice %652 {offsets = [0, 0], sizes = [8, 32], strides = [1, 1]} : vector<8x128xf32> to vector<8x32xf32>
    %658 = arith.mulf %657, %654 : vector<8x32xf32>
    %659 = arith.addf %656, %658 : vector<8x32xf32>
    %660 = vector.extract_strided_slice %652 {offsets = [0, 96], sizes = [8, 32], strides = [1, 1]} : vector<8x128xf32> to vector<8x32xf32>
    %661 = math.tanh %659 : vector<8x32xf32>
    %662 = arith.mulf %660, %661 : vector<8x32xf32>
    %663 = arith.index_cast %643 : i32 to index
    %c0_214 = arith.constant 0 : index
    %664 = vector.load %arg32[%663, %c0_214] : memref<64x32xf32, #tpu.memory_space<vmem>>, vector<8x32xf32>
    tpu.vector_store %arg32[%663, %c0_214], %662 {strides = array<i32>} : memref<64x32xf32, #tpu.memory_space<vmem>>, vector<8x32xf32>,
    %c2_i32_215 = arith.constant 2 : i32
    %c8_i32_216 = arith.constant 8 : i32
    %665 = arith.muli %c2_i32_215, %c8_i32_216 : i32
    %666 = tpu.assume_multiple %665, 8 : i32
    %667 = arith.index_cast %666 : i32 to index
    %c0_217 = arith.constant 0 : index
    %668 = vector.load %arg31[%667, %c0_217] : memref<64x128xf32, #tpu.memory_space<vmem>>, vector<8x128xf32>
    %cst_218 = arith.constant dense<0.000000e+00> : vector<8x128xf32>
    %669 = tpu.matmul %662, %612, %cst_218 {dimension_numbers = #tpu.dot_dimension_numbers<[1], [0], [0], [1], [0, 0, 1, 1], [], []>} : vector<8x32xf32>, vector<32x128xf32>, vector<8x128xf32> -> vector<8x128xf32>
    %670 = arith.addf %668, %669 : vector<8x128xf32>
    %671 = arith.negf %670 : vector<8x128xf32>
    %672 = math.exp %671 : vector<8x128xf32>
    %cst_219 = arith.constant 1.000000e+00 : f32
    %673 = vector.broadcast %cst_219 : f32 to vector<8x128xf32>
    %674 = arith.addf %673, %672 : vector<8x128xf32>
    %675 = arith.divf %673, %674 : vector<8x128xf32>
    %676 = vector.extract_strided_slice %670 {offsets = [0, 64], sizes = [8, 32], strides = [1, 1]} : vector<8x128xf32> to vector<8x32xf32>
    %677 = math.tanh %676 : vector<8x32xf32>
    %678 = vector.extract_strided_slice %675 {offsets = [0, 32], sizes = [8, 32], strides = [1, 1]} : vector<8x128xf32> to vector<8x32xf32>
    %679 = arith.mulf %678, %659 : vector<8x32xf32>
    %680 = vector.extract_strided_slice %675 {offsets = [0, 0], sizes = [8, 32], strides = [1, 1]} : vector<8x128xf32> to vector<8x32xf32>
    %681 = arith.mulf %680, %677 : vector<8x32xf32>
    %682 = arith.addf %679, %681 : vector<8x32xf32>
    %683 = vector.extract_strided_slice %675 {offsets = [0, 96], sizes = [8, 32], strides = [1, 1]} : vector<8x128xf32> to vector<8x32xf32>
    %684 = math.tanh %682 : vector<8x32xf32>
    %685 = arith.mulf %683, %684 : vector<8x32xf32>
    %686 = arith.index_cast %666 : i32 to index
    %c0_220 = arith.constant 0 : index
    %687 = vector.load %arg32[%686, %c0_220] : memref<64x32xf32, #tpu.memory_space<vmem>>, vector<8x32xf32>
    tpu.vector_store %arg32[%686, %c0_220], %685 {strides = array<i32>} : memref<64x32xf32, #tpu.memory_space<vmem>>, vector<8x32xf32>,
    %c3_i32_221 = arith.constant 3 : i32
    %c8_i32_222 = arith.constant 8 : i32
    %688 = arith.muli %c3_i32_221, %c8_i32_222 : i32
    %689 = tpu.assume_multiple %688, 8 : i32
    %690 = arith.index_cast %689 : i32 to index
    %c0_223 = arith.constant 0 : index
    %691 = vector.load %arg31[%690, %c0_223] : memref<64x128xf32, #tpu.memory_space<vmem>>, vector<8x128xf32>
    %cst_224 = arith.constant dense<0.000000e+00> : vector<8x128xf32>
    %692 = tpu.matmul %685, %612, %cst_224 {dimension_numbers = #tpu.dot_dimension_numbers<[1], [0], [0], [1], [0, 0, 1, 1], [], []>} : vector<8x32xf32>, vector<32x128xf32>, vector<8x128xf32> -> vector<8x128xf32>
    %693 = arith.addf %691, %692 : vector<8x128xf32>
    %694 = arith.negf %693 : vector<8x128xf32>
    %695 = math.exp %694 : vector<8x128xf32>
    %cst_225 = arith.constant 1.000000e+00 : f32
    %696 = vector.broadcast %cst_225 : f32 to vector<8x128xf32>
    %697 = arith.addf %696, %695 : vector<8x128xf32>
    %698 = arith.divf %696, %697 : vector<8x128xf32>
    %699 = vector.extract_strided_slice %693 {offsets = [0, 64], sizes = [8, 32], strides = [1, 1]} : vector<8x128xf32> to vector<8x32xf32>
    %700 = math.tanh %699 : vector<8x32xf32>
    %701 = vector.extract_strided_slice %698 {offsets = [0, 32], sizes = [8, 32], strides = [1, 1]} : vector<8x128xf32> to vector<8x32xf32>
    %702 = arith.mulf %701, %682 : vector<8x32xf32>
    %703 = vector.extract_strided_slice %698 {offsets = [0, 0], sizes = [8, 32], strides = [1, 1]} : vector<8x128xf32> to vector<8x32xf32>
    %704 = arith.mulf %703, %700 : vector<8x32xf32>
    %705 = arith.addf %702, %704 : vector<8x32xf32>
    %706 = vector.extract_strided_slice %698 {offsets = [0, 96], sizes = [8, 32], strides = [1, 1]} : vector<8x128xf32> to vector<8x32xf32>
    %707 = math.tanh %705 : vector<8x32xf32>
    %708 = arith.mulf %706, %707 : vector<8x32xf32>
    %709 = arith.index_cast %689 : i32 to index
    %c0_226 = arith.constant 0 : index
    %710 = vector.load %arg32[%709, %c0_226] : memref<64x32xf32, #tpu.memory_space<vmem>>, vector<8x32xf32>
    tpu.vector_store %arg32[%709, %c0_226], %708 {strides = array<i32>} : memref<64x32xf32, #tpu.memory_space<vmem>>, vector<8x32xf32>,
    %c4_i32_227 = arith.constant 4 : i32
    %c8_i32_228 = arith.constant 8 : i32
    %711 = arith.muli %c4_i32_227, %c8_i32_228 : i32
    %712 = tpu.assume_multiple %711, 8 : i32
    %713 = arith.index_cast %712 : i32 to index
    %c0_229 = arith.constant 0 : index
    %714 = vector.load %arg31[%713, %c0_229] : memref<64x128xf32, #tpu.memory_space<vmem>>, vector<8x128xf32>
    %cst_230 = arith.constant dense<0.000000e+00> : vector<8x128xf32>
    %715 = tpu.matmul %708, %612, %cst_230 {dimension_numbers = #tpu.dot_dimension_numbers<[1], [0], [0], [1], [0, 0, 1, 1], [], []>} : vector<8x32xf32>, vector<32x128xf32>, vector<8x128xf32> -> vector<8x128xf32>
    %716 = arith.addf %714, %715 : vector<8x128xf32>
    %717 = arith.negf %716 : vector<8x128xf32>
    %718 = math.exp %717 : vector<8x128xf32>
    %cst_231 = arith.constant 1.000000e+00 : f32
    %719 = vector.broadcast %cst_231 : f32 to vector<8x128xf32>
    %720 = arith.addf %719, %718 : vector<8x128xf32>
    %721 = arith.divf %719, %720 : vector<8x128xf32>
    %722 = vector.extract_strided_slice %716 {offsets = [0, 64], sizes = [8, 32], strides = [1, 1]} : vector<8x128xf32> to vector<8x32xf32>
    %723 = math.tanh %722 : vector<8x32xf32>
    %724 = vector.extract_strided_slice %721 {offsets = [0, 32], sizes = [8, 32], strides = [1, 1]} : vector<8x128xf32> to vector<8x32xf32>
    %725 = arith.mulf %724, %705 : vector<8x32xf32>
    %726 = vector.extract_strided_slice %721 {offsets = [0, 0], sizes = [8, 32], strides = [1, 1]} : vector<8x128xf32> to vector<8x32xf32>
    %727 = arith.mulf %726, %723 : vector<8x32xf32>
    %728 = arith.addf %725, %727 : vector<8x32xf32>
    %729 = vector.extract_strided_slice %721 {offsets = [0, 96], sizes = [8, 32], strides = [1, 1]} : vector<8x128xf32> to vector<8x32xf32>
    %730 = math.tanh %728 : vector<8x32xf32>
    %731 = arith.mulf %729, %730 : vector<8x32xf32>
    %732 = arith.index_cast %712 : i32 to index
    %c0_232 = arith.constant 0 : index
    %733 = vector.load %arg32[%732, %c0_232] : memref<64x32xf32, #tpu.memory_space<vmem>>, vector<8x32xf32>
    tpu.vector_store %arg32[%732, %c0_232], %731 {strides = array<i32>} : memref<64x32xf32, #tpu.memory_space<vmem>>, vector<8x32xf32>,
    %c5_i32_233 = arith.constant 5 : i32
    %c8_i32_234 = arith.constant 8 : i32
    %734 = arith.muli %c5_i32_233, %c8_i32_234 : i32
    %735 = tpu.assume_multiple %734, 8 : i32
    %736 = arith.index_cast %735 : i32 to index
    %c0_235 = arith.constant 0 : index
    %737 = vector.load %arg31[%736, %c0_235] : memref<64x128xf32, #tpu.memory_space<vmem>>, vector<8x128xf32>
    %cst_236 = arith.constant dense<0.000000e+00> : vector<8x128xf32>
    %738 = tpu.matmul %731, %612, %cst_236 {dimension_numbers = #tpu.dot_dimension_numbers<[1], [0], [0], [1], [0, 0, 1, 1], [], []>} : vector<8x32xf32>, vector<32x128xf32>, vector<8x128xf32> -> vector<8x128xf32>
    %739 = arith.addf %737, %738 : vector<8x128xf32>
    %740 = arith.negf %739 : vector<8x128xf32>
    %741 = math.exp %740 : vector<8x128xf32>
    %cst_237 = arith.constant 1.000000e+00 : f32
    %742 = vector.broadcast %cst_237 : f32 to vector<8x128xf32>
    %743 = arith.addf %742, %741 : vector<8x128xf32>
    %744 = arith.divf %742, %743 : vector<8x128xf32>
    %745 = vector.extract_strided_slice %739 {offsets = [0, 64], sizes = [8, 32], strides = [1, 1]} : vector<8x128xf32> to vector<8x32xf32>
    %746 = math.tanh %745 : vector<8x32xf32>
    %747 = vector.extract_strided_slice %744 {offsets = [0, 32], sizes = [8, 32], strides = [1, 1]} : vector<8x128xf32> to vector<8x32xf32>
    %748 = arith.mulf %747, %728 : vector<8x32xf32>
    %749 = vector.extract_strided_slice %744 {offsets = [0, 0], sizes = [8, 32], strides = [1, 1]} : vector<8x128xf32> to vector<8x32xf32>
    %750 = arith.mulf %749, %746 : vector<8x32xf32>
    %751 = arith.addf %748, %750 : vector<8x32xf32>
    %752 = vector.extract_strided_slice %744 {offsets = [0, 96], sizes = [8, 32], strides = [1, 1]} : vector<8x128xf32> to vector<8x32xf32>
    %753 = math.tanh %751 : vector<8x32xf32>
    %754 = arith.mulf %752, %753 : vector<8x32xf32>
    %755 = arith.index_cast %735 : i32 to index
    %c0_238 = arith.constant 0 : index
    %756 = vector.load %arg32[%755, %c0_238] : memref<64x32xf32, #tpu.memory_space<vmem>>, vector<8x32xf32>
    tpu.vector_store %arg32[%755, %c0_238], %754 {strides = array<i32>} : memref<64x32xf32, #tpu.memory_space<vmem>>, vector<8x32xf32>,
    %c6_i32_239 = arith.constant 6 : i32
    %c8_i32_240 = arith.constant 8 : i32
    %757 = arith.muli %c6_i32_239, %c8_i32_240 : i32
    %758 = tpu.assume_multiple %757, 8 : i32
    %759 = arith.index_cast %758 : i32 to index
    %c0_241 = arith.constant 0 : index
    %760 = vector.load %arg31[%759, %c0_241] : memref<64x128xf32, #tpu.memory_space<vmem>>, vector<8x128xf32>
    %cst_242 = arith.constant dense<0.000000e+00> : vector<8x128xf32>
    %761 = tpu.matmul %754, %612, %cst_242 {dimension_numbers = #tpu.dot_dimension_numbers<[1], [0], [0], [1], [0, 0, 1, 1], [], []>} : vector<8x32xf32>, vector<32x128xf32>, vector<8x128xf32> -> vector<8x128xf32>
    %762 = arith.addf %760, %761 : vector<8x128xf32>
    %763 = arith.negf %762 : vector<8x128xf32>
    %764 = math.exp %763 : vector<8x128xf32>
    %cst_243 = arith.constant 1.000000e+00 : f32
    %765 = vector.broadcast %cst_243 : f32 to vector<8x128xf32>
    %766 = arith.addf %765, %764 : vector<8x128xf32>
    %767 = arith.divf %765, %766 : vector<8x128xf32>
    %768 = vector.extract_strided_slice %762 {offsets = [0, 64], sizes = [8, 32], strides = [1, 1]} : vector<8x128xf32> to vector<8x32xf32>
    %769 = math.tanh %768 : vector<8x32xf32>
    %770 = vector.extract_strided_slice %767 {offsets = [0, 32], sizes = [8, 32], strides = [1, 1]} : vector<8x128xf32> to vector<8x32xf32>
    %771 = arith.mulf %770, %751 : vector<8x32xf32>
    %772 = vector.extract_strided_slice %767 {offsets = [0, 0], sizes = [8, 32], strides = [1, 1]} : vector<8x128xf32> to vector<8x32xf32>
    %773 = arith.mulf %772, %769 : vector<8x32xf32>
    %774 = arith.addf %771, %773 : vector<8x32xf32>
    %775 = vector.extract_strided_slice %767 {offsets = [0, 96], sizes = [8, 32], strides = [1, 1]} : vector<8x128xf32> to vector<8x32xf32>
    %776 = math.tanh %774 : vector<8x32xf32>
    %777 = arith.mulf %775, %776 : vector<8x32xf32>
    %778 = arith.index_cast %758 : i32 to index
    %c0_244 = arith.constant 0 : index
    %779 = vector.load %arg32[%778, %c0_244] : memref<64x32xf32, #tpu.memory_space<vmem>>, vector<8x32xf32>
    tpu.vector_store %arg32[%778, %c0_244], %777 {strides = array<i32>} : memref<64x32xf32, #tpu.memory_space<vmem>>, vector<8x32xf32>,
    %c7_i32_245 = arith.constant 7 : i32
    %c8_i32_246 = arith.constant 8 : i32
    %780 = arith.muli %c7_i32_245, %c8_i32_246 : i32
    %781 = tpu.assume_multiple %780, 8 : i32
    %782 = arith.index_cast %781 : i32 to index
    %c0_247 = arith.constant 0 : index
    %783 = vector.load %arg31[%782, %c0_247] : memref<64x128xf32, #tpu.memory_space<vmem>>, vector<8x128xf32>
    %cst_248 = arith.constant dense<0.000000e+00> : vector<8x128xf32>
    %784 = tpu.matmul %777, %612, %cst_248 {dimension_numbers = #tpu.dot_dimension_numbers<[1], [0], [0], [1], [0, 0, 1, 1], [], []>} : vector<8x32xf32>, vector<32x128xf32>, vector<8x128xf32> -> vector<8x128xf32>
    %785 = arith.addf %783, %784 : vector<8x128xf32>
    %786 = arith.negf %785 : vector<8x128xf32>
    %787 = math.exp %786 : vector<8x128xf32>
    %cst_249 = arith.constant 1.000000e+00 : f32
    %788 = vector.broadcast %cst_249 : f32 to vector<8x128xf32>
    %789 = arith.addf %788, %787 : vector<8x128xf32>
    %790 = arith.divf %788, %789 : vector<8x128xf32>
    %791 = vector.extract_strided_slice %785 {offsets = [0, 64], sizes = [8, 32], strides = [1, 1]} : vector<8x128xf32> to vector<8x32xf32>
    %792 = math.tanh %791 : vector<8x32xf32>
    %793 = vector.extract_strided_slice %790 {offsets = [0, 32], sizes = [8, 32], strides = [1, 1]} : vector<8x128xf32> to vector<8x32xf32>
    %794 = arith.mulf %793, %774 : vector<8x32xf32>
    %795 = vector.extract_strided_slice %790 {offsets = [0, 0], sizes = [8, 32], strides = [1, 1]} : vector<8x128xf32> to vector<8x32xf32>
    %796 = arith.mulf %795, %792 : vector<8x32xf32>
    %797 = arith.addf %794, %796 : vector<8x32xf32>
    %798 = vector.extract_strided_slice %790 {offsets = [0, 96], sizes = [8, 32], strides = [1, 1]} : vector<8x128xf32> to vector<8x32xf32>
    %799 = math.tanh %797 : vector<8x32xf32>
    %800 = arith.mulf %798, %799 : vector<8x32xf32>
    %801 = arith.index_cast %781 : i32 to index
    %c0_250 = arith.constant 0 : index
    %802 = vector.load %arg32[%801, %c0_250] : memref<64x32xf32, #tpu.memory_space<vmem>>, vector<8x32xf32>
    tpu.vector_store %arg32[%801, %c0_250], %800 {strides = array<i32>} : memref<64x32xf32, #tpu.memory_space<vmem>>, vector<8x32xf32>,
    %c8_i32_251 = arith.constant 8 : i32
    %c0_252 = arith.constant 0 : index
    %c0_253 = arith.constant 0 : index
    %803 = vector.load %arg20[%c0_252, %c0_253] : memref<32x128xf32, #tpu.memory_space<vmem>>, vector<32x128xf32>
    %c0_254 = arith.constant 0 : index
    %c0_255 = arith.constant 0 : index
    %804 = vector.load %arg21[%c0_254, %c0_255] : memref<32x128xf32, #tpu.memory_space<vmem>>, vector<32x128xf32>
    %c0_256 = arith.constant 0 : index
    %c0_257 = arith.constant 0 : index
    %805 = vector.load %arg22[%c0_256, %c0_257] : memref<1x128xf32, #tpu.memory_space<vmem>>, vector<1x128xf32>
    %c0_258 = arith.constant 0 : index
    %c0_259 = arith.constant 0 : index
    %806 = vector.load %arg32[%c0_258, %c0_259] : memref<64x32xf32, #tpu.memory_space<vmem>>, vector<64x32xf32>
    %cst_260 = arith.constant dense<0.000000e+00> : vector<64x128xf32>
    %807 = tpu.matmul %806, %803, %cst_260 {dimension_numbers = #tpu.dot_dimension_numbers<[1], [0], [0], [1], [0, 0, 1, 1], [], []>} : vector<64x32xf32>, vector<32x128xf32>, vector<64x128xf32> -> vector<64x128xf32>
    %808 = vector.broadcast %805 : vector<1x128xf32> to vector<64x128xf32>
    %809 = arith.addf %807, %808 : vector<64x128xf32>
    %c0_261 = arith.constant 0 : index
    %c0_262 = arith.constant 0 : index
    %810 = vector.load %arg31[%c0_261, %c0_262] : memref<64x128xf32, #tpu.memory_space<vmem>>, vector<64x128xf32>
    tpu.vector_store %arg31[%c0_261, %c0_262], %809 {strides = array<i32>} : memref<64x128xf32, #tpu.memory_space<vmem>>, vector<64x128xf32>,
    %c0_i32_263 = arith.constant 0 : i32
    %c8_i32_264 = arith.constant 8 : i32
    %811 = arith.muli %c0_i32_263, %c8_i32_264 : i32
    %812 = tpu.assume_multiple %811, 8 : i32
    %813 = arith.index_cast %812 : i32 to index
    %c0_265 = arith.constant 0 : index
    %814 = vector.load %arg31[%813, %c0_265] : memref<64x128xf32, #tpu.memory_space<vmem>>, vector<8x128xf32>
    %cst_266 = arith.constant dense<0.000000e+00> : vector<8x128xf32>
    %815 = tpu.matmul %418, %804, %cst_266 {dimension_numbers = #tpu.dot_dimension_numbers<[1], [0], [0], [1], [0, 0, 1, 1], [], []>} : vector<8x32xf32>, vector<32x128xf32>, vector<8x128xf32> -> vector<8x128xf32>
    %816 = arith.addf %814, %815 : vector<8x128xf32>
    %817 = arith.negf %816 : vector<8x128xf32>
    %818 = math.exp %817 : vector<8x128xf32>
    %cst_267 = arith.constant 1.000000e+00 : f32
    %819 = vector.broadcast %cst_267 : f32 to vector<8x128xf32>
    %820 = arith.addf %819, %818 : vector<8x128xf32>
    %821 = arith.divf %819, %820 : vector<8x128xf32>
    %822 = vector.extract_strided_slice %816 {offsets = [0, 64], sizes = [8, 32], strides = [1, 1]} : vector<8x128xf32> to vector<8x32xf32>
    %823 = math.tanh %822 : vector<8x32xf32>
    %824 = vector.extract_strided_slice %821 {offsets = [0, 32], sizes = [8, 32], strides = [1, 1]} : vector<8x128xf32> to vector<8x32xf32>
    %825 = arith.mulf %824, %418 : vector<8x32xf32>
    %826 = vector.extract_strided_slice %821 {offsets = [0, 0], sizes = [8, 32], strides = [1, 1]} : vector<8x128xf32> to vector<8x32xf32>
    %827 = arith.mulf %826, %823 : vector<8x32xf32>
    %828 = arith.addf %825, %827 : vector<8x32xf32>
    %829 = vector.extract_strided_slice %821 {offsets = [0, 96], sizes = [8, 32], strides = [1, 1]} : vector<8x128xf32> to vector<8x32xf32>
    %830 = math.tanh %828 : vector<8x32xf32>
    %831 = arith.mulf %829, %830 : vector<8x32xf32>
    %832 = arith.index_cast %812 : i32 to index
    %c0_268 = arith.constant 0 : index
    %833 = vector.load %arg32[%832, %c0_268] : memref<64x32xf32, #tpu.memory_space<vmem>>, vector<8x32xf32>
    tpu.vector_store %arg32[%832, %c0_268], %831 {strides = array<i32>} : memref<64x32xf32, #tpu.memory_space<vmem>>, vector<8x32xf32>,
    %c1_i32_269 = arith.constant 1 : i32
    %c8_i32_270 = arith.constant 8 : i32
    %834 = arith.muli %c1_i32_269, %c8_i32_270 : i32
    %835 = tpu.assume_multiple %834, 8 : i32
    %836 = arith.index_cast %835 : i32 to index
    %c0_271 = arith.constant 0 : index
    %837 = vector.load %arg31[%836, %c0_271] : memref<64x128xf32, #tpu.memory_space<vmem>>, vector<8x128xf32>
    %cst_272 = arith.constant dense<0.000000e+00> : vector<8x128xf32>
    %838 = tpu.matmul %831, %804, %cst_272 {dimension_numbers = #tpu.dot_dimension_numbers<[1], [0], [0], [1], [0, 0, 1, 1], [], []>} : vector<8x32xf32>, vector<32x128xf32>, vector<8x128xf32> -> vector<8x128xf32>
    %839 = arith.addf %837, %838 : vector<8x128xf32>
    %840 = arith.negf %839 : vector<8x128xf32>
    %841 = math.exp %840 : vector<8x128xf32>
    %cst_273 = arith.constant 1.000000e+00 : f32
    %842 = vector.broadcast %cst_273 : f32 to vector<8x128xf32>
    %843 = arith.addf %842, %841 : vector<8x128xf32>
    %844 = arith.divf %842, %843 : vector<8x128xf32>
    %845 = vector.extract_strided_slice %839 {offsets = [0, 64], sizes = [8, 32], strides = [1, 1]} : vector<8x128xf32> to vector<8x32xf32>
    %846 = math.tanh %845 : vector<8x32xf32>
    %847 = vector.extract_strided_slice %844 {offsets = [0, 32], sizes = [8, 32], strides = [1, 1]} : vector<8x128xf32> to vector<8x32xf32>
    %848 = arith.mulf %847, %828 : vector<8x32xf32>
    %849 = vector.extract_strided_slice %844 {offsets = [0, 0], sizes = [8, 32], strides = [1, 1]} : vector<8x128xf32> to vector<8x32xf32>
    %850 = arith.mulf %849, %846 : vector<8x32xf32>
    %851 = arith.addf %848, %850 : vector<8x32xf32>
    %852 = vector.extract_strided_slice %844 {offsets = [0, 96], sizes = [8, 32], strides = [1, 1]} : vector<8x128xf32> to vector<8x32xf32>
    %853 = math.tanh %851 : vector<8x32xf32>
    %854 = arith.mulf %852, %853 : vector<8x32xf32>
    %855 = arith.index_cast %835 : i32 to index
    %c0_274 = arith.constant 0 : index
    %856 = vector.load %arg32[%855, %c0_274] : memref<64x32xf32, #tpu.memory_space<vmem>>, vector<8x32xf32>
    tpu.vector_store %arg32[%855, %c0_274], %854 {strides = array<i32>} : memref<64x32xf32, #tpu.memory_space<vmem>>, vector<8x32xf32>,
    %c2_i32_275 = arith.constant 2 : i32
    %c8_i32_276 = arith.constant 8 : i32
    %857 = arith.muli %c2_i32_275, %c8_i32_276 : i32
    %858 = tpu.assume_multiple %857, 8 : i32
    %859 = arith.index_cast %858 : i32 to index
    %c0_277 = arith.constant 0 : index
    %860 = vector.load %arg31[%859, %c0_277] : memref<64x128xf32, #tpu.memory_space<vmem>>, vector<8x128xf32>
    %cst_278 = arith.constant dense<0.000000e+00> : vector<8x128xf32>
    %861 = tpu.matmul %854, %804, %cst_278 {dimension_numbers = #tpu.dot_dimension_numbers<[1], [0], [0], [1], [0, 0, 1, 1], [], []>} : vector<8x32xf32>, vector<32x128xf32>, vector<8x128xf32> -> vector<8x128xf32>
    %862 = arith.addf %860, %861 : vector<8x128xf32>
    %863 = arith.negf %862 : vector<8x128xf32>
    %864 = math.exp %863 : vector<8x128xf32>
    %cst_279 = arith.constant 1.000000e+00 : f32
    %865 = vector.broadcast %cst_279 : f32 to vector<8x128xf32>
    %866 = arith.addf %865, %864 : vector<8x128xf32>
    %867 = arith.divf %865, %866 : vector<8x128xf32>
    %868 = vector.extract_strided_slice %862 {offsets = [0, 64], sizes = [8, 32], strides = [1, 1]} : vector<8x128xf32> to vector<8x32xf32>
    %869 = math.tanh %868 : vector<8x32xf32>
    %870 = vector.extract_strided_slice %867 {offsets = [0, 32], sizes = [8, 32], strides = [1, 1]} : vector<8x128xf32> to vector<8x32xf32>
    %871 = arith.mulf %870, %851 : vector<8x32xf32>
    %872 = vector.extract_strided_slice %867 {offsets = [0, 0], sizes = [8, 32], strides = [1, 1]} : vector<8x128xf32> to vector<8x32xf32>
    %873 = arith.mulf %872, %869 : vector<8x32xf32>
    %874 = arith.addf %871, %873 : vector<8x32xf32>
    %875 = vector.extract_strided_slice %867 {offsets = [0, 96], sizes = [8, 32], strides = [1, 1]} : vector<8x128xf32> to vector<8x32xf32>
    %876 = math.tanh %874 : vector<8x32xf32>
    %877 = arith.mulf %875, %876 : vector<8x32xf32>
    %878 = arith.index_cast %858 : i32 to index
    %c0_280 = arith.constant 0 : index
    %879 = vector.load %arg32[%878, %c0_280] : memref<64x32xf32, #tpu.memory_space<vmem>>, vector<8x32xf32>
    tpu.vector_store %arg32[%878, %c0_280], %877 {strides = array<i32>} : memref<64x32xf32, #tpu.memory_space<vmem>>, vector<8x32xf32>,
    %c3_i32_281 = arith.constant 3 : i32
    %c8_i32_282 = arith.constant 8 : i32
    %880 = arith.muli %c3_i32_281, %c8_i32_282 : i32
    %881 = tpu.assume_multiple %880, 8 : i32
    %882 = arith.index_cast %881 : i32 to index
    %c0_283 = arith.constant 0 : index
    %883 = vector.load %arg31[%882, %c0_283] : memref<64x128xf32, #tpu.memory_space<vmem>>, vector<8x128xf32>
    %cst_284 = arith.constant dense<0.000000e+00> : vector<8x128xf32>
    %884 = tpu.matmul %877, %804, %cst_284 {dimension_numbers = #tpu.dot_dimension_numbers<[1], [0], [0], [1], [0, 0, 1, 1], [], []>} : vector<8x32xf32>, vector<32x128xf32>, vector<8x128xf32> -> vector<8x128xf32>
    %885 = arith.addf %883, %884 : vector<8x128xf32>
    %886 = arith.negf %885 : vector<8x128xf32>
    %887 = math.exp %886 : vector<8x128xf32>
    %cst_285 = arith.constant 1.000000e+00 : f32
    %888 = vector.broadcast %cst_285 : f32 to vector<8x128xf32>
    %889 = arith.addf %888, %887 : vector<8x128xf32>
    %890 = arith.divf %888, %889 : vector<8x128xf32>
    %891 = vector.extract_strided_slice %885 {offsets = [0, 64], sizes = [8, 32], strides = [1, 1]} : vector<8x128xf32> to vector<8x32xf32>
    %892 = math.tanh %891 : vector<8x32xf32>
    %893 = vector.extract_strided_slice %890 {offsets = [0, 32], sizes = [8, 32], strides = [1, 1]} : vector<8x128xf32> to vector<8x32xf32>
    %894 = arith.mulf %893, %874 : vector<8x32xf32>
    %895 = vector.extract_strided_slice %890 {offsets = [0, 0], sizes = [8, 32], strides = [1, 1]} : vector<8x128xf32> to vector<8x32xf32>
    %896 = arith.mulf %895, %892 : vector<8x32xf32>
    %897 = arith.addf %894, %896 : vector<8x32xf32>
    %898 = vector.extract_strided_slice %890 {offsets = [0, 96], sizes = [8, 32], strides = [1, 1]} : vector<8x128xf32> to vector<8x32xf32>
    %899 = math.tanh %897 : vector<8x32xf32>
    %900 = arith.mulf %898, %899 : vector<8x32xf32>
    %901 = arith.index_cast %881 : i32 to index
    %c0_286 = arith.constant 0 : index
    %902 = vector.load %arg32[%901, %c0_286] : memref<64x32xf32, #tpu.memory_space<vmem>>, vector<8x32xf32>
    tpu.vector_store %arg32[%901, %c0_286], %900 {strides = array<i32>} : memref<64x32xf32, #tpu.memory_space<vmem>>, vector<8x32xf32>,
    %c4_i32_287 = arith.constant 4 : i32
    %c8_i32_288 = arith.constant 8 : i32
    %903 = arith.muli %c4_i32_287, %c8_i32_288 : i32
    %904 = tpu.assume_multiple %903, 8 : i32
    %905 = arith.index_cast %904 : i32 to index
    %c0_289 = arith.constant 0 : index
    %906 = vector.load %arg31[%905, %c0_289] : memref<64x128xf32, #tpu.memory_space<vmem>>, vector<8x128xf32>
    %cst_290 = arith.constant dense<0.000000e+00> : vector<8x128xf32>
    %907 = tpu.matmul %900, %804, %cst_290 {dimension_numbers = #tpu.dot_dimension_numbers<[1], [0], [0], [1], [0, 0, 1, 1], [], []>} : vector<8x32xf32>, vector<32x128xf32>, vector<8x128xf32> -> vector<8x128xf32>
    %908 = arith.addf %906, %907 : vector<8x128xf32>
    %909 = arith.negf %908 : vector<8x128xf32>
    %910 = math.exp %909 : vector<8x128xf32>
    %cst_291 = arith.constant 1.000000e+00 : f32
    %911 = vector.broadcast %cst_291 : f32 to vector<8x128xf32>
    %912 = arith.addf %911, %910 : vector<8x128xf32>
    %913 = arith.divf %911, %912 : vector<8x128xf32>
    %914 = vector.extract_strided_slice %908 {offsets = [0, 64], sizes = [8, 32], strides = [1, 1]} : vector<8x128xf32> to vector<8x32xf32>
    %915 = math.tanh %914 : vector<8x32xf32>
    %916 = vector.extract_strided_slice %913 {offsets = [0, 32], sizes = [8, 32], strides = [1, 1]} : vector<8x128xf32> to vector<8x32xf32>
    %917 = arith.mulf %916, %897 : vector<8x32xf32>
    %918 = vector.extract_strided_slice %913 {offsets = [0, 0], sizes = [8, 32], strides = [1, 1]} : vector<8x128xf32> to vector<8x32xf32>
    %919 = arith.mulf %918, %915 : vector<8x32xf32>
    %920 = arith.addf %917, %919 : vector<8x32xf32>
    %921 = vector.extract_strided_slice %913 {offsets = [0, 96], sizes = [8, 32], strides = [1, 1]} : vector<8x128xf32> to vector<8x32xf32>
    %922 = math.tanh %920 : vector<8x32xf32>
    %923 = arith.mulf %921, %922 : vector<8x32xf32>
    %924 = arith.index_cast %904 : i32 to index
    %c0_292 = arith.constant 0 : index
    %925 = vector.load %arg32[%924, %c0_292] : memref<64x32xf32, #tpu.memory_space<vmem>>, vector<8x32xf32>
    tpu.vector_store %arg32[%924, %c0_292], %923 {strides = array<i32>} : memref<64x32xf32, #tpu.memory_space<vmem>>, vector<8x32xf32>,
    %c5_i32_293 = arith.constant 5 : i32
    %c8_i32_294 = arith.constant 8 : i32
    %926 = arith.muli %c5_i32_293, %c8_i32_294 : i32
    %927 = tpu.assume_multiple %926, 8 : i32
    %928 = arith.index_cast %927 : i32 to index
    %c0_295 = arith.constant 0 : index
    %929 = vector.load %arg31[%928, %c0_295] : memref<64x128xf32, #tpu.memory_space<vmem>>, vector<8x128xf32>
    %cst_296 = arith.constant dense<0.000000e+00> : vector<8x128xf32>
    %930 = tpu.matmul %923, %804, %cst_296 {dimension_numbers = #tpu.dot_dimension_numbers<[1], [0], [0], [1], [0, 0, 1, 1], [], []>} : vector<8x32xf32>, vector<32x128xf32>, vector<8x128xf32> -> vector<8x128xf32>
    %931 = arith.addf %929, %930 : vector<8x128xf32>
    %932 = arith.negf %931 : vector<8x128xf32>
    %933 = math.exp %932 : vector<8x128xf32>
    %cst_297 = arith.constant 1.000000e+00 : f32
    %934 = vector.broadcast %cst_297 : f32 to vector<8x128xf32>
    %935 = arith.addf %934, %933 : vector<8x128xf32>
    %936 = arith.divf %934, %935 : vector<8x128xf32>
    %937 = vector.extract_strided_slice %931 {offsets = [0, 64], sizes = [8, 32], strides = [1, 1]} : vector<8x128xf32> to vector<8x32xf32>
    %938 = math.tanh %937 : vector<8x32xf32>
    %939 = vector.extract_strided_slice %936 {offsets = [0, 32], sizes = [8, 32], strides = [1, 1]} : vector<8x128xf32> to vector<8x32xf32>
    %940 = arith.mulf %939, %920 : vector<8x32xf32>
    %941 = vector.extract_strided_slice %936 {offsets = [0, 0], sizes = [8, 32], strides = [1, 1]} : vector<8x128xf32> to vector<8x32xf32>
    %942 = arith.mulf %941, %938 : vector<8x32xf32>
    %943 = arith.addf %940, %942 : vector<8x32xf32>
    %944 = vector.extract_strided_slice %936 {offsets = [0, 96], sizes = [8, 32], strides = [1, 1]} : vector<8x128xf32> to vector<8x32xf32>
    %945 = math.tanh %943 : vector<8x32xf32>
    %946 = arith.mulf %944, %945 : vector<8x32xf32>
    %947 = arith.index_cast %927 : i32 to index
    %c0_298 = arith.constant 0 : index
    %948 = vector.load %arg32[%947, %c0_298] : memref<64x32xf32, #tpu.memory_space<vmem>>, vector<8x32xf32>
    tpu.vector_store %arg32[%947, %c0_298], %946 {strides = array<i32>} : memref<64x32xf32, #tpu.memory_space<vmem>>, vector<8x32xf32>,
    %c6_i32_299 = arith.constant 6 : i32
    %c8_i32_300 = arith.constant 8 : i32
    %949 = arith.muli %c6_i32_299, %c8_i32_300 : i32
    %950 = tpu.assume_multiple %949, 8 : i32
    %951 = arith.index_cast %950 : i32 to index
    %c0_301 = arith.constant 0 : index
    %952 = vector.load %arg31[%951, %c0_301] : memref<64x128xf32, #tpu.memory_space<vmem>>, vector<8x128xf32>
    %cst_302 = arith.constant dense<0.000000e+00> : vector<8x128xf32>
    %953 = tpu.matmul %946, %804, %cst_302 {dimension_numbers = #tpu.dot_dimension_numbers<[1], [0], [0], [1], [0, 0, 1, 1], [], []>} : vector<8x32xf32>, vector<32x128xf32>, vector<8x128xf32> -> vector<8x128xf32>
    %954 = arith.addf %952, %953 : vector<8x128xf32>
    %955 = arith.negf %954 : vector<8x128xf32>
    %956 = math.exp %955 : vector<8x128xf32>
    %cst_303 = arith.constant 1.000000e+00 : f32
    %957 = vector.broadcast %cst_303 : f32 to vector<8x128xf32>
    %958 = arith.addf %957, %956 : vector<8x128xf32>
    %959 = arith.divf %957, %958 : vector<8x128xf32>
    %960 = vector.extract_strided_slice %954 {offsets = [0, 64], sizes = [8, 32], strides = [1, 1]} : vector<8x128xf32> to vector<8x32xf32>
    %961 = math.tanh %960 : vector<8x32xf32>
    %962 = vector.extract_strided_slice %959 {offsets = [0, 32], sizes = [8, 32], strides = [1, 1]} : vector<8x128xf32> to vector<8x32xf32>
    %963 = arith.mulf %962, %943 : vector<8x32xf32>
    %964 = vector.extract_strided_slice %959 {offsets = [0, 0], sizes = [8, 32], strides = [1, 1]} : vector<8x128xf32> to vector<8x32xf32>
    %965 = arith.mulf %964, %961 : vector<8x32xf32>
    %966 = arith.addf %963, %965 : vector<8x32xf32>
    %967 = vector.extract_strided_slice %959 {offsets = [0, 96], sizes = [8, 32], strides = [1, 1]} : vector<8x128xf32> to vector<8x32xf32>
    %968 = math.tanh %966 : vector<8x32xf32>
    %969 = arith.mulf %967, %968 : vector<8x32xf32>
    %970 = arith.index_cast %950 : i32 to index
    %c0_304 = arith.constant 0 : index
    %971 = vector.load %arg32[%970, %c0_304] : memref<64x32xf32, #tpu.memory_space<vmem>>, vector<8x32xf32>
    tpu.vector_store %arg32[%970, %c0_304], %969 {strides = array<i32>} : memref<64x32xf32, #tpu.memory_space<vmem>>, vector<8x32xf32>,
    %c7_i32_305 = arith.constant 7 : i32
    %c8_i32_306 = arith.constant 8 : i32
    %972 = arith.muli %c7_i32_305, %c8_i32_306 : i32
    %973 = tpu.assume_multiple %972, 8 : i32
    %974 = arith.index_cast %973 : i32 to index
    %c0_307 = arith.constant 0 : index
    %975 = vector.load %arg31[%974, %c0_307] : memref<64x128xf32, #tpu.memory_space<vmem>>, vector<8x128xf32>
    %cst_308 = arith.constant dense<0.000000e+00> : vector<8x128xf32>
    %976 = tpu.matmul %969, %804, %cst_308 {dimension_numbers = #tpu.dot_dimension_numbers<[1], [0], [0], [1], [0, 0, 1, 1], [], []>} : vector<8x32xf32>, vector<32x128xf32>, vector<8x128xf32> -> vector<8x128xf32>
    %977 = arith.addf %975, %976 : vector<8x128xf32>
    %978 = arith.negf %977 : vector<8x128xf32>
    %979 = math.exp %978 : vector<8x128xf32>
    %cst_309 = arith.constant 1.000000e+00 : f32
    %980 = vector.broadcast %cst_309 : f32 to vector<8x128xf32>
    %981 = arith.addf %980, %979 : vector<8x128xf32>
    %982 = arith.divf %980, %981 : vector<8x128xf32>
    %983 = vector.extract_strided_slice %977 {offsets = [0, 64], sizes = [8, 32], strides = [1, 1]} : vector<8x128xf32> to vector<8x32xf32>
    %984 = math.tanh %983 : vector<8x32xf32>
    %985 = vector.extract_strided_slice %982 {offsets = [0, 32], sizes = [8, 32], strides = [1, 1]} : vector<8x128xf32> to vector<8x32xf32>
    %986 = arith.mulf %985, %966 : vector<8x32xf32>
    %987 = vector.extract_strided_slice %982 {offsets = [0, 0], sizes = [8, 32], strides = [1, 1]} : vector<8x128xf32> to vector<8x32xf32>
    %988 = arith.mulf %987, %984 : vector<8x32xf32>
    %989 = arith.addf %986, %988 : vector<8x32xf32>
    %990 = vector.extract_strided_slice %982 {offsets = [0, 96], sizes = [8, 32], strides = [1, 1]} : vector<8x128xf32> to vector<8x32xf32>
    %991 = math.tanh %989 : vector<8x32xf32>
    %992 = arith.mulf %990, %991 : vector<8x32xf32>
    %993 = arith.index_cast %973 : i32 to index
    %c0_310 = arith.constant 0 : index
    %994 = vector.load %arg32[%993, %c0_310] : memref<64x32xf32, #tpu.memory_space<vmem>>, vector<8x32xf32>
    tpu.vector_store %arg32[%993, %c0_310], %992 {strides = array<i32>} : memref<64x32xf32, #tpu.memory_space<vmem>>, vector<8x32xf32>,
    %c8_i32_311 = arith.constant 8 : i32
    %c0_312 = arith.constant 0 : index
    %c0_313 = arith.constant 0 : index
    %995 = vector.load %arg32[%c0_312, %c0_313] : memref<64x32xf32, #tpu.memory_space<vmem>>, vector<64x32xf32>
    %c0_314 = arith.constant 0 : index
    %c0_315 = arith.constant 0 : index
    %996 = vector.load %arg23[%c0_314, %c0_315] : memref<32x128xf32, #tpu.memory_space<vmem>>, vector<32x128xf32>
    %cst_316 = arith.constant dense<0.000000e+00> : vector<64x128xf32>
    %997 = tpu.matmul %995, %996, %cst_316 {dimension_numbers = #tpu.dot_dimension_numbers<[1], [0], [0], [1], [0, 0, 1, 1], [], []>} : vector<64x32xf32>, vector<32x128xf32>, vector<64x128xf32> -> vector<64x128xf32>
    %c0_317 = arith.constant 0 : index
    %c0_318 = arith.constant 0 : index
    %998 = vector.load %arg24[%c0_317, %c0_318] : memref<1x128xf32, #tpu.memory_space<vmem>>, vector<1x128xf32>
    %999 = vector.broadcast %998 : vector<1x128xf32> to vector<64x128xf32>
    %1000 = arith.addf %997, %999 : vector<64x128xf32>
    %1001 = tpu.iota {dimensions = array<i32: 1>} : vector<1x128xi32>
    %c26_i32 = arith.constant 26 : i32
    %1002 = vector.broadcast %c26_i32 : i32 to vector<1x128xi32>
    %1003 = arith.cmpi slt, %1001, %1002 : vector<1x128xi32>
    %cst_319 = arith.constant -1.000000e+30 : f32
    %1004 = vector.shape_cast %1003 : vector<1x128xi1> to vector<1x128xi1>
    %1005 = vector.broadcast %1004 : vector<1x128xi1> to vector<64x128xi1>
    %1006 = vector.broadcast %cst_319 : f32 to vector<64x128xf32>
    %1007 = arith.select %1005, %1000, %1006 : vector<64x128xi1>, vector<64x128xf32>
    %cst_320 = arith.constant dense<0xFF800000> : vector<64xf32>
    %1008 = vector.multi_reduction <maximumf>, %1007, %cst_320 [1] : vector<64x128xf32> to vector<64xf32>
    %1009 = vector.shape_cast %1008 : vector<64xf32> to vector<64x1xf32>
    %1010 = vector.broadcast %1009 : vector<64x1xf32> to vector<64x128xf32>
    %1011 = arith.subf %1000, %1010 : vector<64x128xf32>
    %1012 = math.exp %1011 : vector<64x128xf32>
    %1013 = arith.extui %1003 : vector<1x128xi1> to vector<1x128xi32>
    %1014 = arith.sitofp %1013 : vector<1x128xi32> to vector<1x128xf32>
    %1015 = vector.broadcast %1014 : vector<1x128xf32> to vector<64x128xf32>
    %1016 = arith.mulf %1012, %1015 : vector<64x128xf32>
    %c0_321 = arith.constant 0 : index
    %c0_322 = arith.constant 0 : index
    %1017 = vector.load %arg25[%c0_321, %c0_322] : memref<128x8xf32, #tpu.memory_space<vmem>>, vector<128x8xf32>
    %cst_323 = arith.constant dense<0.000000e+00> : vector<64x8xf32>
    %1018 = tpu.matmul %1016, %1017, %cst_323 {dimension_numbers = #tpu.dot_dimension_numbers<[1], [0], [0], [1], [0, 0, 1, 1], [], []>} : vector<64x128xf32>, vector<128x8xf32>, vector<64x8xf32> -> vector<64x8xf32>
    %c0_324 = arith.constant 0 : index
    %c0_325 = arith.constant 0 : index
    %1019 = vector.load %arg26[%c0_324, %c0_325] : memref<8x128xf32, #tpu.memory_space<vmem>>, vector<8x128xf32>
    %cst_326 = arith.constant dense<0.000000e+00> : vector<64x128xf32>
    %1020 = tpu.matmul %1018, %1019, %cst_326 {dimension_numbers = #tpu.dot_dimension_numbers<[1], [0], [0], [1], [0, 0, 1, 1], [], []>} : vector<64x8xf32>, vector<8x128xf32>, vector<64x128xf32> -> vector<64x128xf32>
    %cst_327 = arith.constant 1.000000e-30 : f32
    %1021 = vector.broadcast %cst_327 : f32 to vector<64x128xf32>
    %1022 = arith.maximumf %1020, %1021 : vector<64x128xf32>
    %cst_328 = arith.constant 1.000000e+00 : f32
    %1023 = vector.shape_cast %1003 : vector<1x128xi1> to vector<1x128xi1>
    %1024 = vector.broadcast %1023 : vector<1x128xi1> to vector<64x128xi1>
    %1025 = vector.broadcast %cst_328 : f32 to vector<64x128xf32>
    %1026 = arith.select %1024, %1022, %1025 : vector<64x128xi1>, vector<64x128xf32>
    %1027 = tpu.reciprocal %1026 {approx = true} : vector<64x128xf32> -> vector<64x128xf32>
    %1028 = arith.mulf %1026, %1027 : vector<64x128xf32>
    %cst_329 = arith.constant 2.000000e+00 : f32
    %1029 = vector.broadcast %cst_329 : f32 to vector<64x128xf32>
    %1030 = arith.subf %1029, %1028 : vector<64x128xf32>
    %1031 = arith.mulf %1027, %1030 : vector<64x128xf32>
    %1032 = arith.mulf %1016, %1031 : vector<64x128xf32>
    %c0_330 = arith.constant 0 : index
    %c0_331 = arith.constant 0 : index
    %c0_332 = arith.constant 0 : index
    %1033 = vector.load %arg28[%c0_330, %c0_331, %c0_332] : memref<1x64x128xf32, #tpu.memory_space<vmem>>, vector<1x64x128xf32>
    %1034 = vector.shape_cast %1033 : vector<1x64x128xf32> to vector<64x128xf32>
    %1035 = vector.shape_cast %1032 : vector<64x128xf32> to vector<1x64x128xf32>
    tpu.vector_store %arg28[%c0_330, %c0_331, %c0_332], %1035 {strides = array<i32>} : memref<1x64x128xf32, #tpu.memory_space<vmem>>, vector<1x64x128xf32>,
    return
  }
  func.func @transform_0(%arg0: i32) -> (i32, i32, i32) {
    %c0_i32 = arith.constant 0 : i32
    %c0_i32_0 = arith.constant 0 : i32
    %c0_i32_1 = arith.constant 0 : i32
    return %arg0, %c0_i32, %c0_i32_0 : i32, i32, i32
  }
  func.func @transform_1(%arg0: i32) -> (i32, i32, i32) {
    %c0_i32 = arith.constant 0 : i32
    %c0_i32_0 = arith.constant 0 : i32
    %c0_i32_1 = arith.constant 0 : i32
    return %arg0, %c0_i32, %c0_i32_0 : i32, i32, i32
  }
  func.func @transform_2(%arg0: i32) -> (i32, i32, i32) {
    %c0_i32 = arith.constant 0 : i32
    %c0_i32_0 = arith.constant 0 : i32
    %c0_i32_1 = arith.constant 0 : i32
    return %arg0, %c0_i32, %c0_i32_0 : i32, i32, i32
  }
  func.func @transform_3(%arg0: i32) -> (i32, i32) {
    %c0_i32 = arith.constant 0 : i32
    %c0_i32_0 = arith.constant 0 : i32
    %c0_i32_1 = arith.constant 0 : i32
    return %c0_i32, %c0_i32_0 : i32, i32
  }
  func.func @transform_4(%arg0: i32) -> (i32, i32) {
    %c0_i32 = arith.constant 0 : i32
    %c0_i32_0 = arith.constant 0 : i32
    %c0_i32_1 = arith.constant 0 : i32
    return %c0_i32, %c0_i32_0 : i32, i32
  }
  func.func @transform_5(%arg0: i32) -> (i32, i32) {
    %c0_i32 = arith.constant 0 : i32
    %c0_i32_0 = arith.constant 0 : i32
    %c0_i32_1 = arith.constant 0 : i32
    return %c0_i32, %c0_i32_0 : i32, i32
  }
  func.func @transform_6(%arg0: i32) -> (i32, i32) {
    %c0_i32 = arith.constant 0 : i32
    %c0_i32_0 = arith.constant 0 : i32
    %c0_i32_1 = arith.constant 0 : i32
    return %c0_i32, %c0_i32_0 : i32, i32
  }
  func.func @transform_7(%arg0: i32) -> (i32, i32) {
    %c0_i32 = arith.constant 0 : i32
    %c0_i32_0 = arith.constant 0 : i32
    %c0_i32_1 = arith.constant 0 : i32
    return %c0_i32, %c0_i32_0 : i32, i32
  }
  func.func @transform_8(%arg0: i32) -> (i32, i32) {
    %c0_i32 = arith.constant 0 : i32
    %c0_i32_0 = arith.constant 0 : i32
    %c0_i32_1 = arith.constant 0 : i32
    return %c0_i32, %c0_i32_0 : i32, i32
  }
  func.func @transform_9(%arg0: i32) -> (i32, i32) {
    %c0_i32 = arith.constant 0 : i32
    %c0_i32_0 = arith.constant 0 : i32
    %c0_i32_1 = arith.constant 0 : i32
    return %c0_i32, %c0_i32_0 : i32, i32
  }
  func.func @transform_10(%arg0: i32) -> (i32, i32) {
    %c0_i32 = arith.constant 0 : i32
    %c0_i32_0 = arith.constant 0 : i32
    %c0_i32_1 = arith.constant 0 : i32
    return %c0_i32, %c0_i32_0 : i32, i32
  }
  func.func @transform_11(%arg0: i32) -> (i32, i32) {
    %c0_i32 = arith.constant 0 : i32
    %c0_i32_0 = arith.constant 0 : i32
    %c0_i32_1 = arith.constant 0 : i32
    return %c0_i32, %c0_i32_0 : i32, i32
  }
  func.func @transform_12(%arg0: i32) -> (i32, i32) {
    %c0_i32 = arith.constant 0 : i32
    %c0_i32_0 = arith.constant 0 : i32
    %c0_i32_1 = arith.constant 0 : i32
    return %c0_i32, %c0_i32_0 : i32, i32
  }
  func.func @transform_13(%arg0: i32) -> (i32, i32) {
    %c0_i32 = arith.constant 0 : i32
    %c0_i32_0 = arith.constant 0 : i32
    %c0_i32_1 = arith.constant 0 : i32
    return %c0_i32, %c0_i32_0 : i32, i32
  }
  func.func @transform_14(%arg0: i32) -> (i32, i32) {
    %c0_i32 = arith.constant 0 : i32
    %c0_i32_0 = arith.constant 0 : i32
    %c0_i32_1 = arith.constant 0 : i32
    return %c0_i32, %c0_i32_0 : i32, i32
  }
  func.func @transform_15(%arg0: i32) -> (i32, i32) {
    %c0_i32 = arith.constant 0 : i32
    %c0_i32_0 = arith.constant 0 : i32
    %c0_i32_1 = arith.constant 0 : i32
    return %c0_i32, %c0_i32_0 : i32, i32
  }
  func.func @transform_16(%arg0: i32) -> (i32, i32) {
    %c0_i32 = arith.constant 0 : i32
    %c0_i32_0 = arith.constant 0 : i32
    %c0_i32_1 = arith.constant 0 : i32
    return %c0_i32, %c0_i32_0 : i32, i32
  }
  func.func @transform_17(%arg0: i32) -> (i32, i32) {
    %c0_i32 = arith.constant 0 : i32
    %c0_i32_0 = arith.constant 0 : i32
    %c0_i32_1 = arith.constant 0 : i32
    return %c0_i32, %c0_i32_0 : i32, i32
  }
  func.func @transform_18(%arg0: i32) -> (i32, i32) {
    %c0_i32 = arith.constant 0 : i32
    %c0_i32_0 = arith.constant 0 : i32
    %c0_i32_1 = arith.constant 0 : i32
    return %c0_i32, %c0_i32_0 : i32, i32
  }
  func.func @transform_19(%arg0: i32) -> (i32, i32) {
    %c0_i32 = arith.constant 0 : i32
    %c0_i32_0 = arith.constant 0 : i32
    %c0_i32_1 = arith.constant 0 : i32
    return %c0_i32, %c0_i32_0 : i32, i32
  }
  func.func @transform_20(%arg0: i32) -> (i32, i32) {
    %c0_i32 = arith.constant 0 : i32
    %c0_i32_0 = arith.constant 0 : i32
    %c0_i32_1 = arith.constant 0 : i32
    return %c0_i32, %c0_i32_0 : i32, i32
  }
  func.func @transform_21(%arg0: i32) -> (i32, i32) {
    %c0_i32 = arith.constant 0 : i32
    %c0_i32_0 = arith.constant 0 : i32
    %c0_i32_1 = arith.constant 0 : i32
    return %c0_i32, %c0_i32_0 : i32, i32
  }
  func.func @transform_22(%arg0: i32) -> (i32, i32) {
    %c0_i32 = arith.constant 0 : i32
    %c0_i32_0 = arith.constant 0 : i32
    %c0_i32_1 = arith.constant 0 : i32
    return %c0_i32, %c0_i32_0 : i32, i32
  }
  func.func @transform_23(%arg0: i32) -> (i32, i32) {
    %c0_i32 = arith.constant 0 : i32
    %c0_i32_0 = arith.constant 0 : i32
    %c0_i32_1 = arith.constant 0 : i32
    return %c0_i32, %c0_i32_0 : i32, i32
  }
  func.func @transform_24(%arg0: i32) -> (i32, i32) {
    %c0_i32 = arith.constant 0 : i32
    %c0_i32_0 = arith.constant 0 : i32
    %c0_i32_1 = arith.constant 0 : i32
    return %c0_i32, %c0_i32_0 : i32, i32
  }
  func.func @transform_25(%arg0: i32) -> (i32, i32) {
    %c0_i32 = arith.constant 0 : i32
    %c0_i32_0 = arith.constant 0 : i32
    %c0_i32_1 = arith.constant 0 : i32
    return %c0_i32, %c0_i32_0 : i32, i32
  }
  func.func @transform_26(%arg0: i32) -> (i32, i32, i32) {
    %c0_i32 = arith.constant 0 : i32
    %c0_i32_0 = arith.constant 0 : i32
    %c0_i32_1 = arith.constant 0 : i32
    return %arg0, %c0_i32, %c0_i32_0 : i32, i32, i32
  }
  func.func @transform_27(%arg0: i32) -> (i32, i32, i32) {
    %c0_i32 = arith.constant 0 : i32
    %c0_i32_0 = arith.constant 0 : i32
    %c0_i32_1 = arith.constant 0 : i32
    return %arg0, %c0_i32, %c0_i32_0 : i32, i32, i32
  }
}

</mosaic_0001>

<bundles_post_ra>
// kernel: vae_forward.1
= control target key start
LH: loop header
LB: loop body
LE: loop exit
PB: predicated region body
PF: predicated region fallthrough
CT: control target
= control target key end

     0   :  { %v98_v0 = vlaneseq  ;;  %v7784_v1 = vmov 0.0   ;;  %v7785_v3 = vmov 1983009808   ;;  %vm7786_vm0 = vmmov 0   ;;  %s9079_s12 = inlined_call_operand.vmem [shape: f32[2,257], index: 12, kind: input, shape index: {}]   ;;  %s9080_s5 = inlined_call_operand.vmem [shape: f32[32,128], index: 5, kind: input, shape index: {}]   ;;  %s9081_s3 = inlined_call_operand.vmem [shape: f32[16,128], index: 3, kind: input, shape index: {}]   ;;  %s9082_s2 = inlined_call_operand.vmem [shape: f32[1,8,2], index: 2, kind: input, shape index: {}]   ;;  %s9083_s0 = inlined_call_operand.vmem [shape: f32[1,64,16], index: 0, kind: input, shape index: {}]   ;;  %s9084_s4 = inlined_call_operand.vmem [shape: f32[1,128], index: 4, kind: input, shape index: {}]   ;;  %s9085_s6 = inlined_call_operand.vmem [shape: f32[32,128], index: 6, kind: input, shape index: {}]   ;;  %s9086_s7 = inlined_call_operand.vmem [shape: f32[32,128], index: 7, kind: input, shape index: {}]   ;;  %s9087_s8 = inlined_call_operand.vmem [shape: f32[1,128], index: 8, kind: input, shape index: {}]   ;;  %s9088_s9 = inlined_call_operand.vmem [shape: f32[32,8], index: 9, kind: input, shape index: {}]   ;;  %s9089_s1 = inlined_call_operand.vmem [shape: f32[1,8,4], index: 1, kind: input, shape index: {}]   ;;  %s9090_s11 = inlined_call_operand.vmem [shape: f32[4,257], index: 11, kind: input, shape index: {}]   ;;  %s9091_s10 = inlined_call_operand.vmem [shape: f32[1,8], index: 10, kind: input, shape index: {}]   ;;  %s9092_s26 = inlined_call_operand.vmem [shape: f32[1,8,8], index: 26, kind: output, shape index: {0}]   ;;  %s9093_s14 = inlined_call_operand.vmem [shape: f32[16,128], index: 14, kind: input, shape index: {}]   ;;  %s9094_s15 = inlined_call_operand.vmem [shape: f32[32,128], index: 15, kind: input, shape index: {}]   ;;  %s9095_s13 = inlined_call_operand.vmem [shape: f32[1,257], index: 13, kind: input, shape index: {}]   ;;  %s9096_s16 = inlined_call_operand.vmem [shape: f32[32,128], index: 16, kind: input, shape index: {}]   ;;  %s9097_s17 = inlined_call_operand.vmem [shape: f32[32,128], index: 17, kind: input, shape index: {}]   ;;  %s9098_s18 = inlined_call_operand.vmem [shape: f32[1,128], index: 18, kind: input, shape index: {}]   ;;  %s9099_s19 = inlined_call_operand.vmem [shape: f32[32,128], index: 19, kind: input, shape index: {}]   ;;  %s9100_s20 = inlined_call_operand.vmem [shape: f32[32,128], index: 20, kind: input, shape index: {}]   ;;  %s9101_s21 = inlined_call_operand.vmem [shape: f32[1,128], index: 21, kind: input, shape index: {}]   ;;  %s9102_s22 = inlined_call_operand.vmem [shape: f32[32,128], index: 22, kind: input, shape index: {}]   ;;  %s9103_s23 = inlined_call_operand.vmem [shape: f32[1,128], index: 23, kind: input, shape index: {}]   ;;  %s9104_s24 = inlined_call_operand.vmem [shape: f32[128,8], index: 24, kind: input, shape index: {}]   ;;  %s9105_s25 = inlined_call_operand.vmem [shape: f32[8,128], index: 25, kind: input, shape index: {}]   ;;  %s9106_s27 = inlined_call_operand.vmem [shape: f32[1,64,128], index: 27, kind: output, shape index: {1}]  }
   0x1   :  { %9114 = sst [smem:[#allocation6_spill]] %s9079_s12  ;;  %6426 = vmatprep.subr.mxu1 %v7784_v1  ;;  %v116_v4 = vunpack.c.l.s4 %v7785_v3  ;;  %205 = vmatprep.mubr.f32.mxu0 %v7784_v1  ;;  %vm134_vm1 = vcmask 1041408   ;;  %vm130_vm2 = vcmask 15360   ;;  %v7787_v21 = vmov 0.0|0.0  }
   0x2   :  { %9115 = sst [smem:[#allocation7_spill]] %s9080_s5  ;;  %v7939_v5 = vshrl.u32 %v98_v0, 7  ;;  %6428 = vmatprep.mubr.msk.f32.mxu1 %vm7786_vm0, %v7784_v1  ;;  %vm291_vm3 = vcmask 130048   ;;  %vm434_vm4 = vcmask 261120   ;;  %vm2364_vm5 = vcmask 1043456  }
   0x3   :  { %9116 = sst [smem:[#allocation8_spill]] %s9081_s3  ;;  %v117_v7 = vunpack.c.0.s8 %v116_v4  ;;  %vm2340_vm6 = vcmask 64512   ;;  %vm2360_vm7 = vcmask 31744  }
   0x4   :  { %9117 = sst [smem:[#allocation9_spill]] %s9082_s2  ;;  %s9128_s5 = sld [smem:[#allocation8_spill]] }
   0x5   :  { %9118 = sst [smem:[#allocation10_spill]] %s9083_s0  ;;  %v120_v10 = vsub.s32 %v117_v7, %v7939_v5  ;;  %s9129_s12 = sld [smem:[#allocation9_spill]] }
   0x6   :  { %9119 = sst [smem:[#allocation11_spill]] %s9084_s4  ;;  %s9127_s4 = sld [smem:[#allocation7_spill]] }
   0x7   :  { %9120 = sst [smem:[#allocation12_spill]] %s9085_s6  ;;  %s9130_s2 = sld [smem:[#allocation10_spill]] }
   0x8   :  { %9121 = sst [smem:[#allocation13_spill]] %s9086_s7  ;;  %s7788_s7 = smov 64  }
   0x9   :  { %9122 = sst [smem:[#allocation14_spill]] %s9087_s8  ;;  %s7789_s0 = smov 32  }
   0xa   :  { %9123 = sst [smem:[#allocation15_spill]] %s9088_s9  ;;  %s9126_s8 = sld [smem:[#allocation6_spill]]  ;;  %v282_v11 = vld [vmem:[%s9128_s5] sm:$0xff]  ;;  %v283_v12 = vld [vmem:[%s9128_s5 + $0x8] sm:$0xff] }
   0xb   :  { %9124 = sst [smem:[#allocation16_spill]] %s9089_s1  ;;  %v94_v15 = vld [vmem:[%s9129_s12] sm:$0xff]  ;;  %v7066_v20 = vpack.c.bf16 %v283_v12, %v282_v11  ;;  %s9134_s29 = sld [smem:[#allocation14_spill]] }
   0xc   :  { %9125 = sst [smem:[#allocation17_spill]] %s9090_s11  ;;  %v429_v8 = vld [vmem:[%s9127_s4] sm:$0xff]  ;;  %v430_v9 = vld [vmem:[%s9127_s4 + $0x8] sm:$0xff]  ;;  %v431_v17 = vld [vmem:[%s9127_s4 + $0x10] sm:$0xff]  ;;  %s9131_s11 = sld [smem:[#allocation11_spill]] }
   0xd   :  { %v7959_v16 = vpack.c.bf16 %v430_v9, %v429_v8  ;;  %v432_v18 = vld [vmem:[%s9127_s4 + $0x18] sm:$0xff]  ;;  %v85_v22 = vld [vmem:[%s9130_s2] sm:$0xff]  ;;  %v86_v24 = vld [vmem:[%s9130_s2 + $0x8] sm:$0xff]  ;;  %s7790_s5 = smov 4   ;;  %s9137_s12 = sld [smem:[#allocation17_spill]] }
   0xe   :  { %v7975_v23 = vpack.c.bf16 %v432_v18, %v431_v17  ;;  %v87_v60 = vld [vmem:[%s9130_s2 + $0x10] sm:$0xff]  ;;  %v88_v61 = vld [vmem:[%s9130_s2 + $0x18] sm:$0xff]  ;;  %v89_v62 = vld [vmem:[%s9130_s2 + $0x20] sm:$0xff] }
   0xf   :  { %v90_v63 = vld [vmem:[%s9130_s2 + $0x28] sm:$0xff]  ;;  %v92_v3 = vld [vmem:[%s9130_s2 + $0x38] sm:$0xff] }
  0x10   :  { %v95_v2 = vld [vmem:[%s9126_s8] sm:$0x3f]  ;;  %s9132_s8 = sld [smem:[#allocation12_spill]] }
  0x11   :  { %v114_v6 = vcombine.high %v95_v2, %v95_v2  ;;  %v121_v13 = vrot.slane %v95_v2, %v120_v10  ;;  %v91_v2 = vld [vmem:[%s9130_s2 + $0x30] sm:$0xff] }
  0x12   :  { %v8004_v25 = vld [vmem:[%s9131_s11] ss:$0 sm:$0xff]  ;;  %s9133_s11 = sld [smem:[#allocation13_spill]] }
  0x13   :  { %v128_v14 = vrot.slane %v114_v6, %v120_v10  ;;  %v129_v19 = vcombine.high %v121_v13, %v121_v13 }
  0x15   :  { %6427 = vmatpush3.msk.msra.mxu1 %vm134_vm1, %v128_v14  ;;  %5966 = vmatprep.subr.msk.mxu0 %vm134_vm1, %v129_v19 }
  0x16   :  { %7070 = vmatprep.subr.bf16.mxu1 %v7787_v21  ;;  %6429 = vmatmul.mubr.msk.f32.vlgmr.msra.gmra.mrb[0].mxu1 %vm130_vm2, %v94_v15 }
  0x17   :  { %7072 = vmatpush3.bf16.msra.mxu1 %v7959_v16  ;;  %5967 = vmatpush1.msk.msra.mxu0 %vm134_vm1, %v121_v13 }
  0x18   :  { %7073 = vmatprep.subr.bf16.mxu1 %v7787_v21  ;;  %5968 = vmatmul.mubr.msk.f32.vlgmr.msra.gmra.mrb[0].mxu0 %vm130_vm2, %v94_v15 }
  0x19   :  { %7067 = vmatprep.subr.bf16.mxu0 %v7066_v20  ;;  %6435 = vmatprep.mubr.msk.f32.mxu0 %vm291_vm3, %v85_v22 }
  0x1a   :  { %7069 = vmatpush3.bf16.msra.mxu0 %v7066_v20  ;;  %6455 = vmatprep.mubr.msk.f32.mxu1 %vm7786_vm0, %v7784_v1 }
  0x1b   :  { %7075 = vmatpush3.bf16.msra.mxu1 %v7975_v23  ;;  %7082 = vmatprep.subr.bf16.mxu0 %v7787_v21 }
  0x1c   :  { %7076 = vmatprep.subr.bf16.mxu1 %v7787_v21 }
  0x1d   :  { %6436 = vmatmul.mubr.msk.f32.vlgmr.msra.gmra.mrb[2].mxu0 %vm291_vm3, %v86_v24 }
  0x1e   :  { %6456 = vmatmul.mubr.f32.vlgmr.msra.gmra.mrb[2].mxu1 %v7784_v1  ;;  %7084 = vmatpush3.bf16.msra.mxu0 %v7959_v16 }
  0x1f   :  { %7078 = vmatpush3.bf16.msra.mxu1 %v7959_v16  ;;  %6466 = vmatprep.mubr.msk.f32.mxu1 %vm7786_vm0, %v7784_v1 }
  0x20   :  { %7079 = vmatprep.subr.bf16.mxu1 %v7787_v21  ;;  %7085 = vmatprep.subr.bf16.mxu0 %v7787_v21 }
  0x21   :  { %6438 = vmatprep.mubr.msk.f32.mxu0 %vm291_vm3, %v87_v60 }
  0x22   :  { %7087 = vmatpush3.bf16.msra.mxu0 %v7975_v23 }
  0x23   :  { %7081 = vmatpush3.bf16.msra.mxu1 %v7975_v23  ;;  %7094 = vmatprep.subr.bf16.mxu0 %v7787_v21 }
  0x24   :  { %7088 = vmatprep.subr.bf16.mxu1 %v7787_v21  ;;  %6439 = vmatmul.mubr.msk.f32.gmra.mrb[4].mxu0 %vm291_vm3, %v88_v61 }
  0x25   :  { %6441 = vmatprep.mubr.msk.f32.mxu0 %vm291_vm3, %v89_v62 }
  0x28   :  { %6442 = vmatmul.mubr.msk.f32.gmra.mrb[6].mxu0 %vm291_vm3, %v90_v63 }
  0x29   :  { %6444 = vmatprep.mubr.msk.f32.mxu0 %vm291_vm3, %v91_v2 }
  0x2c   :  { %6445 = vmatmul.mubr.msk.f32.gmra.mrb[8].mxu0 %vm291_vm3, %v92_v3 }
  0x2d   :  { %6477 = vmatprep.mubr.msk.f32.mxu0 %vm7786_vm0, %v7784_v1 }
  0xf0   :  { %v6437_v26 = vpop.f32.mrb[2].mxu0 }
  0xf1   :  { %v382_v27 = vpop.f32.mrb[3].mxu0  ;;  %v504_v28 = vpop.f32.mrb[2].mxu1  ;;  %v388_v46 = vadd.f32 %v6437_v26, %v8004_v25 }
  0xf2   :  { %v383_v29 = vadd.f32 %v8004_v25, %v382_v27  ;;  %v6457_v30 = vpop.f32.mrb[3].mxu1 }
  0xf4   :  { %v508_v31 = vadd.f32 %v504_v28, %v383_v29 }
  0xf6   :  { %7423 = vtanh.f32 %v508_v31  ;;  %v5980_v33 = vmul.f32 -1.442695, %v508_v31 }
  0xf7   :  { %v6440_v8 = vpop.f32.mrb[4].mxu0 }
  0xf8   :  { %7425 = vpow2.f32 %v5980_v33  ;;  %v392_v9 = vpop.f32.mrb[5].mxu0 }
  0xf9   :  { %v393_v15 = vadd.f32 %v8004_v25, %v392_v9 }
  0xfb   :  { %v8050_v10 = vpop.f32.mrb[6].mxu0 }
  0xfc   :  { %v8052_v11 = vpop.f32.mrb[7].mxu0 }
  0xff   :  { %v8054_v12 = vpop.f32.mrb[8].mxu0 }
 0x100   :  { %v7424_v32 = vpop.eup %7423  ;;  %v8056_v13 = vpop.f32.mrb[9].mxu0 }
 0x101   :  { %518 = vrot.lane.b32.xlu0 %v7424_v32, %s7788_s7 }
 0x102   :  { %v7426_v34 = vpop.eup %7425 }
 0x103   :  { %v512_v35 = vadd.f32 1.0, %v7426_v34 }
 0x105   :  { %7427 = vrcp.f32 %v512_v35 }
 0x10f   :  { %v7428_v36 = vpop.eup %7427 }
 0x110   :  { %v516_v39 = vmul.f32 0.0, %v7428_v36 }
 0x173   :  { %v519_v37 = vpop.permute.xlu0 %518 }
 0x174   :  { %v521_v38 = vmul.f32 %v7428_v36, %v519_v37  ;;  %v398_v37 = vadd.f32 %v6440_v8, %v8004_v25 }
 0x176   :  { %523 = vrot.lane.b32.xlu0 %v521_v38, %s7789_s0 }
 0x1e8   :  { %v524_v40 = vpop.permute.xlu0 %523 }
 0x1e9   :  { %v526_v41 = vadd.f32 %v524_v40, %v516_v39 }
 0x1eb   :  { %7429 = vtanh.f32 %v526_v41 }
 0x1f5   :  { %v7430_v42 = vpop.eup %7429 }
 0x1f6   :  { %529 = vrot.lane.b32.xlu1 %v7430_v42, %s7788_s7 }
 0x268   :  { %v530_v43 = vpop.permute.xlu1 %529 }
 0x269   :  { %v532_v44 = vmul.f32 %v7428_v36, %v530_v43 }
 0x26b   :  { %534 = vrot.lane.b32.xlu1 %v532_v44, %s7789_s0 }
 0x2dd   :  { %v535_v45 = vpop.permute.xlu1 %534 }
 0x2de   :  { %537 = vst.msk [vmem:[#allocation3] sm:$0xff] %vm434_vm4, %v535_v45  ;;  %6467 = vmatmul.mubr.msk.f32.vlgmr.msra.gmra.mrb[4].mxu1 %vm434_vm4, %v535_v45 }
 0x2df   :  { %7090 = vmatpush3.bf16.msra.mxu1 %v7959_v16  ;;  %6488 = vmatprep.mubr.msk.f32.mxu1 %vm7786_vm0, %v7784_v1 }
 0x2e0   :  { %7091 = vmatprep.subr.bf16.mxu1 %v7787_v21 }
 0x2e3   :  { %7093 = vmatpush3.bf16.msra.mxu1 %v7975_v23 }
 0x2e4   :  { %7100 = vmatprep.subr.bf16.mxu1 %v7787_v21 }
 0x3b1   :  { %v608_v47 = vpop.f32.mrb[4].mxu1 }
 0x3b2   :  { %v612_v48 = vadd.f32 %v608_v47, %v388_v46  ;;  %v6468_v49 = vpop.f32.mrb[5].mxu1 }
 0x3b4   :  { %7431 = vtanh.f32 %v612_v48  ;;  %v5982_v51 = vmul.f32 -1.442695, %v612_v48 }
 0x3b6   :  { %7433 = vpow2.f32 %v5982_v51 }
 0x3be   :  { %v7432_v50 = vpop.eup %7431 }
 0x3bf   :  { %622 = vrot.lane.b32.xlu0 %v7432_v50, %s7788_s7 }
 0x3c0   :  { %v7434_v52 = vpop.eup %7433 }
 0x3c1   :  { %v616_v53 = vadd.f32 1.0, %v7434_v52 }
 0x3c3   :  { %7435 = vrcp.f32 %v616_v53 }
 0x3cd   :  { %v7436_v54 = vpop.eup %7435 }
 0x3ce   :  { %v620_v57 = vmul.f32 %v7436_v54, %v526_v41 }
 0x431   :  { %v623_v55 = vpop.permute.xlu0 %622 }
 0x432   :  { %v625_v56 = vmul.f32 %v7436_v54, %v623_v55  ;;  %v403_v55 = vadd.f32 %v8004_v25, %v8052_v11 }
 0x434   :  { %627 = vrot.lane.b32.xlu1 %v625_v56, %s7789_s0 }
 0x4a6   :  { %v628_v58 = vpop.permute.xlu1 %627 }
 0x4a7   :  { %v630_v59 = vadd.f32 %v628_v58, %v620_v57 }
 0x4a9   :  { %7437 = vtanh.f32 %v630_v59 }
 0x4b3   :  { %v7438_v4 = vpop.eup %7437 }
 0x4b4   :  { %633 = vrot.lane.b32.xlu0 %v7438_v4, %s7788_s7 }
 0x526   :  { %v634_v6 = vpop.permute.xlu0 %633 }
 0x527   :  { %v636_v7 = vmul.f32 %v7436_v54, %v634_v6 }
 0x529   :  { %638 = vrot.lane.b32.xlu1 %v636_v7, %s7789_s0 }
 0x59b   :  { %v639_v14 = vpop.permute.xlu1 %638 }
 0x59c   :  { %642 = vst.msk [vmem:[#allocation3 + $0x8] sm:$0xff] %vm434_vm4, %v639_v14  ;;  %6478 = vmatmul.mubr.msk.f32.vlgmr.msra.gmra.mrb[10].mxu0 %vm434_vm4, %v639_v14 }
 0x59d   :  { %7096 = vmatpush3.bf16.msra.mxu0 %v7959_v16  ;;  %6499 = vmatprep.mubr.msk.f32.mxu0 %vm7786_vm0, %v7784_v1 }
 0x59e   :  { %7097 = vmatprep.subr.bf16.mxu0 %v7787_v21 }
 0x5a1   :  { %7099 = vmatpush3.bf16.msra.mxu0 %v7975_v23 }
 0x5a2   :  { %7106 = vmatprep.subr.bf16.mxu0 %v7787_v21 }
 0x66f   :  { %v713_v17 = vpop.f32.mrb[10].mxu0 }
 0x670   :  { %v717_v18 = vadd.f32 %v713_v17, %v393_v15  ;;  %v6479_v19 = vpop.f32.mrb[11].mxu0  ;;  %v408_v15 = vadd.f32 %v8050_v10, %v8004_v25 }
 0x672   :  { %7439 = vtanh.f32 %v717_v18  ;;  %v5984_v22 = vmul.f32 -1.442695, %v717_v18 }
 0x674   :  { %7441 = vpow2.f32 %v5984_v22 }
 0x67c   :  { %v7440_v20 = vpop.eup %7439 }
 0x67d   :  { %727 = vrot.lane.b32.xlu0 %v7440_v20, %s7788_s7 }
 0x67e   :  { %v7442_v24 = vpop.eup %7441 }
 0x67f   :  { %v721_v26 = vadd.f32 1.0, %v7442_v24 }
 0x681   :  { %7443 = vrcp.f32 %v721_v26 }
 0x68b   :  { %v7444_v27 = vpop.eup %7443 }
 0x68c   :  { %v725_v30 = vmul.f32 %v7444_v27, %v630_v59 }
 0x6ef   :  { %v728_v28 = vpop.permute.xlu0 %727 }
 0x6f0   :  { %v730_v29 = vmul.f32 %v7444_v27, %v728_v28 }
 0x6f2   :  { %732 = vrot.lane.b32.xlu1 %v730_v29, %s7789_s0 }
 0x764   :  { %v733_v31 = vpop.permute.xlu1 %732 }
 0x765   :  { %v735_v32 = vadd.f32 %v733_v31, %v725_v30  ;;  %v1273_v30 = vld [vmem:[%s9132_s8] sm:$0xff]  ;;  %v1274_v31 = vld [vmem:[%s9132_s8 + $0x8] sm:$0xff] }
 0x767   :  { %7445 = vtanh.f32 %v735_v32 }
 0x771   :  { %v7446_v33 = vpop.eup %7445 }
 0x772   :  { %738 = vrot.lane.b32.xlu0 %v7446_v33, %s7788_s7 }
 0x7e4   :  { %v739_v34 = vpop.permute.xlu0 %738 }
 0x7e5   :  { %v741_v35 = vmul.f32 %v7444_v27, %v739_v34 }
 0x7e7   :  { %743 = vrot.lane.b32.xlu1 %v741_v35, %s7789_s0 }
 0x859   :  { %v744_v36 = vpop.permute.xlu1 %743 }
 0x85a   :  { %747 = vst.msk [vmem:[#allocation3 + $0x10] sm:$0xff] %vm434_vm4, %v744_v36  ;;  %6489 = vmatmul.mubr.msk.f32.vlgmr.msra.gmra.mrb[6].mxu1 %vm434_vm4, %v744_v36  ;;  %v1275_v36 = vld [vmem:[%s9132_s8 + $0x10] sm:$0xff] }
 0x85b   :  { %7102 = vmatpush3.bf16.msra.mxu1 %v7959_v16  ;;  %6510 = vmatprep.mubr.msk.f32.mxu1 %vm7786_vm0, %v7784_v1 }
 0x85c   :  { %7103 = vmatprep.subr.bf16.mxu1 %v7787_v21 }
 0x85f   :  { %7105 = vmatpush3.bf16.msra.mxu1 %v7975_v23 }
 0x860   :  { %7112 = vmatprep.subr.bf16.mxu1 %v7787_v21 }
 0x92d   :  { %v818_v38 = vpop.f32.mrb[6].mxu1 }
 0x92e   :  { %v822_v39 = vadd.f32 %v818_v38, %v398_v37  ;;  %v6490_v40 = vpop.f32.mrb[7].mxu1  ;;  %v1276_v37 = vld [vmem:[%s9132_s8 + $0x18] sm:$0xff] }
 0x92f   :  { %v7122_v38 = vpack.c.bf16 %v1276_v37, %v1275_v36  ;;  %v1282_v40 = vld [vmem:[#allocation3] sm:$0xff] }
 0x930   :  { %7447 = vtanh.f32 %v822_v39  ;;  %v5986_v42 = vmul.f32 -1.442695, %v822_v39 }
 0x932   :  { %7449 = vpow2.f32 %v5986_v42  ;;  %v1284_v42 = vld [vmem:[#allocation3 + $0x10] sm:$0xff] }
 0x93a   :  { %v7448_v41 = vpop.eup %7447 }
 0x93b   :  { %832 = vrot.lane.b32.xlu0 %v7448_v41, %s7788_s7  ;;  %v1283_v41 = vld [vmem:[#allocation3 + $0x8] sm:$0xff] }
 0x93c   :  { %v7450_v43 = vpop.eup %7449 }
 0x93d   :  { %v826_v44 = vadd.f32 1.0, %v7450_v43 }
 0x93f   :  { %7451 = vrcp.f32 %v826_v44 }
 0x949   :  { %v7452_v45 = vpop.eup %7451 }
 0x94a   :  { %v830_v48 = vmul.f32 %v7452_v45, %v735_v32  ;;  %v7118_v32 = vpack.c.bf16 %v1274_v31, %v1273_v30 }
 0x9ad   :  { %v833_v46 = vpop.permute.xlu0 %832 }
 0x9ae   :  { %v835_v47 = vmul.f32 %v7452_v45, %v833_v46  ;;  %v413_v46 = vadd.f32 %v8004_v25, %v8056_v13 }
 0x9b0   :  { %837 = vrot.lane.b32.xlu1 %v835_v47, %s7789_s0 }
 0xa22   :  { %v838_v49 = vpop.permute.xlu1 %837 }
 0xa23   :  { %v840_v50 = vadd.f32 %v838_v49, %v830_v48 }
 0xa25   :  { %7453 = vtanh.f32 %v840_v50 }
 0xa2f   :  { %v7454_v51 = vpop.eup %7453 }
 0xa30   :  { %843 = vrot.lane.b32.xlu0 %v7454_v51, %s7788_s7 }
 0xaa2   :  { %v844_v52 = vpop.permute.xlu0 %843 }
 0xaa3   :  { %v846_v53 = vmul.f32 %v7452_v45, %v844_v52 }
 0xaa5   :  { %848 = vrot.lane.b32.xlu1 %v846_v53, %s7789_s0 }
 0xb17   :  { %v849_v54 = vpop.permute.xlu1 %848 }
 0xb18   :  { %852 = vst.msk [vmem:[#allocation3 + $0x18] sm:$0xff] %vm434_vm4, %v849_v54  ;;  %6500 = vmatmul.mubr.msk.f32.vlgmr.msra.gmra.mrb[12].mxu0 %vm434_vm4, %v849_v54 }
 0xb19   :  { %7108 = vmatpush3.bf16.msra.mxu0 %v7959_v16  ;;  %6521 = vmatprep.mubr.msk.f32.mxu0 %vm7786_vm0, %v7784_v1 }
 0xb1a   :  { %7109 = vmatprep.subr.bf16.mxu0 %v7787_v21 }
 0xb1d   :  { %7111 = vmatpush3.bf16.msra.mxu0 %v7975_v23 }
 0xb1e   :  { %7119 = vmatprep.subr.bf16.mxu0 %v7118_v32 }
 0xb1f   :  { %v1285_v43 = vld [vmem:[#allocation3 + $0x18] sm:$0xff] }
 0xbeb   :  { %v923_v56 = vpop.f32.mrb[12].mxu0 }
 0xbec   :  { %v927_v57 = vadd.f32 %v923_v56, %v403_v55  ;;  %v6501_v58 = vpop.f32.mrb[13].mxu0 }
 0xbee   :  { %7455 = vtanh.f32 %v927_v57  ;;  %v5988_v60 = vmul.f32 -1.442695, %v927_v57 }
 0xbf0   :  { %7457 = vpow2.f32 %v5988_v60 }
 0xbf8   :  { %v7456_v59 = vpop.eup %7455 }
 0xbf9   :  { %937 = vrot.lane.b32.xlu0 %v7456_v59, %s7788_s7 }
 0xbfa   :  { %v7458_v61 = vpop.eup %7457 }
 0xbfb   :  { %v931_v62 = vadd.f32 1.0, %v7458_v61 }
 0xbfd   :  { %7459 = vrcp.f32 %v931_v62 }
 0xc07   :  { %v7460_v63 = vpop.eup %7459 }
 0xc08   :  { %v935_v4 = vmul.f32 %v7460_v63, %v840_v50 }
 0xc6b   :  { %v938_v2 = vpop.permute.xlu0 %937 }
 0xc6c   :  { %v940_v3 = vmul.f32 %v7460_v63, %v938_v2 }
 0xc6e   :  { %942 = vrot.lane.b32.xlu1 %v940_v3, %s7789_s0 }
 0xce0   :  { %v943_v6 = vpop.permute.xlu1 %942 }
 0xce1   :  { %v945_v7 = vadd.f32 %v943_v6, %v935_v4  ;;  %v1277_v4 = vld [vmem:[%s9133_s11] sm:$0xff]  ;;  %v1278_v6 = vld [vmem:[%s9133_s11 + $0x8] sm:$0xff] }
 0xce3   :  { %7461 = vtanh.f32 %v945_v7 }
 0xced   :  { %v7462_v8 = vpop.eup %7461 }
 0xcee   :  { %948 = vrot.lane.b32.xlu0 %v7462_v8, %s7788_s7  ;;  %v1279_v8 = vld [vmem:[%s9133_s11 + $0x10] sm:$0xff] }
 0xd60   :  { %v949_v9 = vpop.permute.xlu0 %948 }
 0xd61   :  { %v951_v11 = vmul.f32 %v7460_v63, %v949_v9  ;;  %v1280_v9 = vld [vmem:[%s9133_s11 + $0x18] sm:$0xff]  ;;  %s9135_s11 = sld [smem:[#allocation15_spill]] }
 0xd63   :  { %953 = vrot.lane.b32.xlu1 %v951_v11, %s7789_s0  ;;  %v8166_v11 = vpack.c.bf16 %v1280_v9, %v1279_v8 }
 0xdd5   :  { %v954_v14 = vpop.permute.xlu1 %953 }
 0xdd6   :  { %957 = vst.msk [vmem:[#allocation3 + $0x20] sm:$0xff] %vm434_vm4, %v954_v14  ;;  %6511 = vmatmul.mubr.msk.f32.vlgmr.msra.gmra.mrb[8].mxu1 %vm434_vm4, %v954_v14 }
 0xdd7   :  { %7114 = vmatpush3.bf16.msra.mxu1 %v7959_v16  ;;  %6532 = vmatprep.mubr.msk.f32.mxu1 %vm7786_vm0, %v7784_v1 }
 0xdd8   :  { %7115 = vmatprep.subr.bf16.mxu1 %v7787_v21 }
 0xddb   :  { %7117 = vmatpush3.bf16.msra.mxu1 %v7975_v23 }
 0xddc   :  { %7126 = vmatprep.subr.bf16.mxu1 %v7787_v21 }
 0xddd   :  { %v1286_v44 = vld [vmem:[#allocation3 + $0x20] sm:$0xff] }
 0xea9   :  { %v1028_v17 = vpop.f32.mrb[8].mxu1 }
 0xeaa   :  { %v1032_v18 = vadd.f32 %v1028_v17, %v408_v15  ;;  %v6512_v19 = vpop.f32.mrb[9].mxu1 }
 0xeab   :  { %v418_v19 = vadd.f32 %v8054_v12, %v8004_v25 }
 0xeac   :  { %7463 = vtanh.f32 %v1032_v18  ;;  %v5990_v16 = vmul.f32 -1.442695, %v1032_v18 }
 0xeae   :  { %7465 = vpow2.f32 %v5990_v16 }
 0xeb6   :  { %v7464_v20 = vpop.eup %7463 }
 0xeb7   :  { %1042 = vrot.lane.b32.xlu0 %v7464_v20, %s7788_s7 }
 0xeb8   :  { %v7466_v22 = vpop.eup %7465 }
 0xeb9   :  { %v1036_v24 = vadd.f32 1.0, %v7466_v22 }
 0xebb   :  { %7467 = vrcp.f32 %v1036_v24  ;;  %v8192_v24 = vld [vmem:[%s9134_s29] ss:$0 sm:$0xff]  ;;  %s9136_s29 = sld [smem:[#allocation16_spill]] }
 0xec5   :  { %v7468_v26 = vpop.eup %7467 }
 0xec6   :  { %v1040_v28 = vmul.f32 %v7468_v26, %v945_v7  ;;  %v8156_v7 = vpack.c.bf16 %v1278_v6, %v1277_v4 }
 0xf29   :  { %v1043_v27 = vpop.permute.xlu0 %1042 }
 0xf2a   :  { %v1045_v23 = vmul.f32 %v7468_v26, %v1043_v27 }
 0xf2c   :  { %1047 = vrot.lane.b32.xlu1 %v1045_v23, %s7789_s0 }
 0xf9e   :  { %v1048_v29 = vpop.permute.xlu1 %1047 }
 0xf9f   :  { %v1050_v10 = vadd.f32 %v1048_v29, %v1040_v28 }
 0xfa1   :  { %7469 = vtanh.f32 %v1050_v10 }
 0xfab   :  { %v7470_v33 = vpop.eup %7469 }
 0xfac   :  { %1053 = vrot.lane.b32.xlu0 %v7470_v33, %s7788_s7 }
0x101e   :  { %v1054_v34 = vpop.permute.xlu0 %1053 }
0x101f   :  { %v1056_v35 = vmul.f32 %v7468_v26, %v1054_v34 }
0x1021   :  { %1058 = vrot.lane.b32.xlu1 %v1056_v35, %s7789_s0 }
0x1093   :  { %v1059_v39 = vpop.permute.xlu1 %1058 }
0x1094   :  { %1062 = vst.msk [vmem:[#allocation3 + $0x28] sm:$0xff] %vm434_vm4, %v1059_v39  ;;  %6522 = vmatmul.mubr.msk.f32.vlgmr.msra.gmra.mrb[14].mxu0 %vm434_vm4, %v1059_v39 }
0x1095   :  { %7121 = vmatpush3.bf16.msra.mxu0 %v7118_v32  ;;  %6543 = vmatprep.mubr.msk.f32.mxu0 %vm434_vm4, %v1282_v40 }
0x1096   :  { %7123 = vmatprep.subr.bf16.mxu0 %v7122_v38 }
0x1099   :  { %7125 = vmatpush3.bf16.msra.mxu0 %v7122_v38 }
0x109a   :  { %7138 = vmatprep.subr.bf16.mxu0 %v7787_v21 }
0x109b   :  { %v1287_v45 = vld [vmem:[#allocation3 + $0x28] sm:$0xff] }
0x109c   :  { %6544 = vmatmul.mubr.msk.f32.vlgmr.msra.gmra.mrb[16].mxu0 %vm434_vm4, %v1283_v41 }
0x109d   :  { %6546 = vmatprep.mubr.msk.f32.mxu0 %vm434_vm4, %v1284_v42  ;;  %7140 = vmatpush3.bf16.msra.mxu0 %v8156_v7 }
0x109e   :  { %7141 = vmatprep.subr.bf16.mxu0 %v7787_v21 }
0x10a0   :  { %6547 = vmatmul.mubr.msk.f32.gmra.mrb[18].mxu0 %vm434_vm4, %v1285_v43 }
0x10a1   :  { %6549 = vmatprep.mubr.msk.f32.mxu0 %vm434_vm4, %v1286_v44  ;;  %7143 = vmatpush3.bf16.msra.mxu0 %v8166_v11 }
0x10a2   :  { %7150 = vmatprep.subr.bf16.mxu0 %v7787_v21 }
0x10a4   :  { %6550 = vmatmul.mubr.msk.f32.gmra.mrb[20].mxu0 %vm434_vm4, %v1287_v45 }
0x1167   :  { %v1133_v47 = vpop.f32.mrb[14].mxu0 }
0x1168   :  { %v1137_v48 = vadd.f32 %v1133_v47, %v413_v46  ;;  %v6523_v49 = vpop.f32.mrb[15].mxu0 }
0x116a   :  { %7471 = vtanh.f32 %v1137_v48  ;;  %v5992_v57 = vmul.f32 -1.442695, %v1137_v48 }
0x116c   :  { %7473 = vpow2.f32 %v5992_v57 }
0x116f   :  { %v8134_v50 = vpop.f32.mrb[16].mxu0 }
0x1170   :  { %v1386_v51 = vpop.f32.mrb[17].mxu0 }
0x1171   :  { %v1387_v26 = vadd.f32 %v8192_v24, %v1386_v51 }
0x1173   :  { %v8136_v52 = vpop.f32.mrb[18].mxu0 }
0x1174   :  { %v7472_v53 = vpop.eup %7471  ;;  %v8138_v54 = vpop.f32.mrb[19].mxu0 }
0x1175   :  { %1147 = vrot.lane.b32.xlu0 %v7472_v53, %s7788_s7 }
0x1176   :  { %v7474_v13 = vpop.eup %7473 }
0x1177   :  { %v8141_v55 = vpop.f32.mrb[20].mxu0  ;;  %v1141_v58 = vadd.f32 1.0, %v7474_v13  ;;  %v1392_v13 = vadd.f32 %v8134_v50, %v8192_v24 }
0x1178   :  { %v8143_v56 = vpop.f32.mrb[21].mxu0 }
0x1179   :  { %7475 = vrcp.f32 %v1141_v58 }
0x1183   :  { %v7476_v59 = vpop.eup %7475 }
0x1184   :  { %v1145_v62 = vmul.f32 %v7476_v59, %v1050_v10 }
0x11e7   :  { %v1148_v60 = vpop.permute.xlu0 %1147 }
0x11e8   :  { %v1150_v61 = vmul.f32 %v7476_v59, %v1148_v60 }
0x11ea   :  { %1152 = vrot.lane.b32.xlu1 %v1150_v61, %s7789_s0 }
0x125c   :  { %v1153_v63 = vpop.permute.xlu1 %1152 }
0x125d   :  { %v8146_v2 = vadd.f32 %v1153_v63, %v1145_v62 }
0x125f   :  { %7477 = vtanh.f32 %v8146_v2 }
0x1269   :  { %v7478_v3 = vpop.eup %7477 }
0x126a   :  { %1158 = vrot.lane.b32.xlu0 %v7478_v3, %s7788_s7 }
0x12dc   :  { %v1159_v14 = vpop.permute.xlu0 %1158 }
0x12dd   :  { %v1161_v15 = vmul.f32 %v7476_v59, %v1159_v14 }
0x12df   :  { %1163 = vrot.lane.b32.xlu1 %v1161_v15, %s7789_s0 }
0x1351   :  { %v1164_v17 = vpop.permute.xlu1 %1163 }
0x1352   :  { %1167 = vst.msk [vmem:[#allocation3 + $0x30] sm:$0xff] %vm434_vm4, %v1164_v17  ;;  %6533 = vmatmul.mubr.msk.f32.vlgmr.msra.gmra.mrb[10].mxu1 %vm434_vm4, %v1164_v17 }
0x1353   :  { %7128 = vmatpush3.bf16.msra.mxu1 %v8156_v7  ;;  %6563 = vmatprep.mubr.msk.f32.mxu1 %vm7786_vm0, %v7784_v1 }
0x1354   :  { %7129 = vmatprep.subr.bf16.mxu1 %v7787_v21 }
0x1357   :  { %7131 = vmatpush3.bf16.msra.mxu1 %v8166_v11 }
0x1358   :  { %7132 = vmatprep.subr.bf16.mxu1 %v7787_v21 }
0x1359   :  { %v1288_v18 = vld [vmem:[#allocation3 + $0x30] sm:$0xff] }
0x135a   :  { %6564 = vmatmul.mubr.f32.vlgmr.msra.gmra.mrb[12].mxu1 %v7784_v1  ;;  %6552 = vmatprep.mubr.msk.f32.mxu0 %vm434_vm4, %v1288_v18 }
0x135b   :  { %7134 = vmatpush3.bf16.msra.mxu1 %v8156_v7  ;;  %6574 = vmatprep.mubr.msk.f32.mxu1 %vm7786_vm0, %v7784_v1 }
0x135c   :  { %7135 = vmatprep.subr.bf16.mxu1 %v7787_v21 }
0x135f   :  { %7137 = vmatpush3.bf16.msra.mxu1 %v8166_v11 }
0x1360   :  { %7144 = vmatprep.subr.bf16.mxu1 %v7787_v21 }
0x1425   :  { %v1238_v20 = vpop.f32.mrb[10].mxu1 }
0x1426   :  { %v1242_v16 = vadd.f32 %v1238_v20, %v418_v19  ;;  %v6534_v22 = vpop.f32.mrb[11].mxu1 }
0x1428   :  { %v5994_v38 = vmul.f32 -1.442695, %v1242_v16 }
0x142d   :  { %v1500_v27 = vpop.f32.mrb[12].mxu1 }
0x142e   :  { %v1504_v23 = vadd.f32 %v1500_v27, %v1387_v26  ;;  %v6565_v28 = vpop.f32.mrb[13].mxu1  ;;  %v1397_v26 = vadd.f32 %v8192_v24, %v8138_v54 }
0x1430   :  { %7479 = vtanh.f32 %v1504_v23  ;;  %v6004_v10 = vmul.f32 -1.442695, %v1504_v23 }
0x1432   :  { %7481 = vpow2.f32 %v6004_v10 }
0x143a   :  { %v7480_v29 = vpop.eup %7479 }
0x143b   :  { %1514 = vrot.lane.b32.xlu0 %v7480_v29, %s7788_s7 }
0x143c   :  { %v7482_v25 = vpop.eup %7481 }
0x143d   :  { %v1508_v12 = vadd.f32 1.0, %v7482_v25 }
0x143f   :  { %7483 = vrcp.f32 %v1508_v12 }
0x1449   :  { %v7484_v30 = vpop.eup %7483 }
0x144a   :  { %v1512_v33 = vmul.f32 0.0, %v7484_v30 }
0x14ad   :  { %v1515_v31 = vpop.permute.xlu0 %1514 }
0x14ae   :  { %v1517_v32 = vmul.f32 %v7484_v30, %v1515_v31 }
0x14b0   :  { %1519 = vrot.lane.b32.xlu1 %v1517_v32, %s7789_s0 }
0x1522   :  { %v1520_v34 = vpop.permute.xlu1 %1519 }
0x1523   :  { %v1522_v35 = vadd.f32 %v1520_v34, %v1512_v33 }
0x1525   :  { %7485 = vtanh.f32 %v1522_v35 }
0x1526   :  { %7487 = vtanh.f32 %v1242_v16 }
0x1527   :  { %7489 = vpow2.f32 %v5994_v38 }
0x152f   :  { %v7486_v36 = vpop.eup %7485 }
0x1530   :  { %1525 = vrot.lane.b32.xlu0 %v7486_v36, %s7788_s7  ;;  %v7488_v37 = vpop.eup %7487 }
0x1531   :  { %v7490_v39 = vpop.eup %7489 }
0x1532   :  { %v1246_v40 = vadd.f32 1.0, %v7490_v39  ;;  %v1402_v39 = vadd.f32 %v8136_v52, %v8192_v24 }
0x1534   :  { %1252 = vrot.lane.b32.xlu0 %v7488_v37, %s7788_s7  ;;  %7491 = vrcp.f32 %v1246_v40 }
0x153e   :  { %v7492_v43 = vpop.eup %7491 }
0x153f   :  { %v1250_v47 = vmul.f32 %v7492_v43, %v8146_v2 }
0x15a2   :  { %v1526_v41 = vpop.permute.xlu0 %1525 }
0x15a3   :  { %v1528_v42 = vmul.f32 %v7484_v30, %v1526_v41 }
0x15a5   :  { %1530 = vrot.lane.b32.xlu1 %v1528_v42, %s7789_s0 }
0x15a6   :  { %v1253_v44 = vpop.permute.xlu0 %1252 }
0x15a7   :  { %v1255_v45 = vmul.f32 %v7492_v43, %v1253_v44 }
0x15a9   :  { %1257 = vrot.lane.b32.xlu0 %v1255_v45, %s7789_s0 }
0x1617   :  { %v1531_v46 = vpop.permute.xlu1 %1530 }
0x1618   :  { %1533 = vst.msk [vmem:[#allocation3] sm:$0xff] %vm434_vm4, %v1531_v46  ;;  %6575 = vmatmul.mubr.msk.f32.vlgmr.msra.gmra.mrb[14].mxu1 %vm434_vm4, %v1531_v46 }
0x1619   :  { %7146 = vmatpush3.bf16.msra.mxu1 %v8156_v7  ;;  %6596 = vmatprep.mubr.msk.f32.mxu1 %vm7786_vm0, %v7784_v1 }
0x161a   :  { %7147 = vmatprep.subr.bf16.mxu1 %v7787_v21 }
0x161b   :  { %v1258_v48 = vpop.permute.xlu0 %1257 }
0x161c   :  { %v1260_v49 = vadd.f32 %v1258_v48, %v1250_v47 }
0x161d   :  { %7149 = vmatpush3.bf16.msra.mxu1 %v8166_v11 }
0x161e   :  { %7493 = vtanh.f32 %v1260_v49  ;;  %7156 = vmatprep.subr.bf16.mxu1 %v7787_v21 }
0x1628   :  { %v7494_v51 = vpop.eup %7493 }
0x1629   :  { %1263 = vrot.lane.b32.xlu0 %v7494_v51, %s7788_s7 }
0x169b   :  { %v1264_v53 = vpop.permute.xlu0 %1263 }
0x169c   :  { %v1266_v57 = vmul.f32 %v7492_v43, %v1264_v53 }
0x169e   :  { %1268 = vrot.lane.b32.xlu0 %v1266_v57, %s7789_s0 }
0x16eb   :  { %v1603_v58 = vpop.f32.mrb[14].mxu1 }
0x16ec   :  { %v1607_v59 = vadd.f32 %v1603_v58, %v1392_v13  ;;  %v6576_v60 = vpop.f32.mrb[15].mxu1 }
0x16ed   :  { %v1407_v60 = vadd.f32 %v8192_v24, %v8143_v56 }
0x16ee   :  { %7495 = vtanh.f32 %v1607_v59  ;;  %v6006_v2 = vmul.f32 -1.442695, %v1607_v59 }
0x16f0   :  { %7497 = vpow2.f32 %v6006_v2 }
0x16f8   :  { %v7496_v61 = vpop.eup %7495 }
0x16f9   :  { %1617 = vrot.lane.b32.xlu1 %v7496_v61, %s7788_s7 }
0x16fa   :  { %v7498_v3 = vpop.eup %7497 }
0x16fb   :  { %v1611_v50 = vadd.f32 1.0, %v7498_v3 }
0x16fd   :  { %7499 = vrcp.f32 %v1611_v50 }
0x1707   :  { %v7500_v4 = vpop.eup %7499 }
0x1708   :  { %v1615_v9 = vmul.f32 %v7500_v4, %v1522_v35 }
0x1710   :  { %v1269_v62 = vpop.permute.xlu0 %1268 }
0x1711   :  { %1272 = vst.msk [vmem:[#allocation3 + $0x38] sm:$0xff] %vm434_vm4, %v1269_v62 }
0x1718   :  { %v1289_v63 = vld [vmem:[#allocation3 + $0x38] sm:$0xff] }
0x1719   :  { %6553 = vmatmul.mubr.msk.f32.gmra.mrb[22].mxu0 %vm434_vm4, %v1289_v63 }
0x171a   :  { %6585 = vmatprep.mubr.msk.f32.mxu0 %vm7786_vm0, %v7784_v1 }
0x176b   :  { %v1618_v6 = vpop.permute.xlu1 %1617 }
0x176c   :  { %v1620_v8 = vmul.f32 %v7500_v4, %v1618_v6 }
0x176e   :  { %1622 = vrot.lane.b32.xlu1 %v1620_v8, %s7789_s0 }
0x17e0   :  { %v1623_v14 = vpop.permute.xlu1 %1622 }
0x17e1   :  { %v1625_v15 = vadd.f32 %v1623_v14, %v1615_v9 }
0x17e3   :  { %7501 = vtanh.f32 %v1625_v15 }
0x17ec   :  { %v8220_v17 = vpop.f32.mrb[22].mxu0 }
0x17ed   :  { %v7502_v18 = vpop.eup %7501  ;;  %v8222_v19 = vpop.f32.mrb[23].mxu0 }
0x17ee   :  { %1628 = vrot.lane.b32.xlu1 %v7502_v18, %s7788_s7 }
0x1860   :  { %v1629_v20 = vpop.permute.xlu1 %1628 }
0x1861   :  { %v1631_v16 = vmul.f32 %v7500_v4, %v1629_v20 }
0x1863   :  { %1633 = vrot.lane.b32.xlu1 %v1631_v16, %s7789_s0 }
0x18d5   :  { %v1634_v22 = vpop.permute.xlu1 %1633 }
0x18d6   :  { %1636 = vst.msk [vmem:[#allocation3 + $0x8] sm:$0xff] %vm434_vm4, %v1634_v22  ;;  %6586 = vmatmul.mubr.msk.f32.vlgmr.msra.gmra.mrb[24].mxu0 %vm434_vm4, %v1634_v22 }
0x18d7   :  { %7152 = vmatpush3.bf16.msra.mxu0 %v8156_v7  ;;  %6607 = vmatprep.mubr.msk.f32.mxu0 %vm7786_vm0, %v7784_v1 }
0x18d8   :  { %7153 = vmatprep.subr.bf16.mxu0 %v7787_v21 }
0x18db   :  { %7155 = vmatpush3.bf16.msra.mxu0 %v8166_v11 }
0x18dc   :  { %7162 = vmatprep.subr.bf16.mxu0 %v7787_v21 }
0x19a9   :  { %v1706_v27 = vpop.f32.mrb[24].mxu0 }
0x19aa   :  { %v1710_v23 = vadd.f32 %v1706_v27, %v1397_v26  ;;  %v6587_v28 = vpop.f32.mrb[25].mxu0  ;;  %v1412_v26 = vadd.f32 %v8141_v55, %v8192_v24 }
0x19ac   :  { %7503 = vtanh.f32 %v1710_v23  ;;  %v6008_v10 = vmul.f32 -1.442695, %v1710_v23 }
0x19ae   :  { %7505 = vpow2.f32 %v6008_v10 }
0x19b6   :  { %v7504_v29 = vpop.eup %7503 }
0x19b7   :  { %1720 = vrot.lane.b32.xlu0 %v7504_v29, %s7788_s7 }
0x19b8   :  { %v7506_v25 = vpop.eup %7505 }
0x19b9   :  { %v1714_v12 = vadd.f32 1.0, %v7506_v25 }
0x19bb   :  { %7507 = vrcp.f32 %v1714_v12 }
0x19c5   :  { %v7508_v30 = vpop.eup %7507 }
0x19c6   :  { %v1718_v33 = vmul.f32 %v7508_v30, %v1625_v15 }
0x1a29   :  { %v1721_v31 = vpop.permute.xlu0 %1720 }
0x1a2a   :  { %v1723_v32 = vmul.f32 %v7508_v30, %v1721_v31 }
0x1a2c   :  { %1725 = vrot.lane.b32.xlu1 %v1723_v32, %s7789_s0 }
0x1a9e   :  { %v1726_v34 = vpop.permute.xlu1 %1725 }
0x1a9f   :  { %v1728_v54 = vadd.f32 %v1726_v34, %v1718_v33 }
0x1aa1   :  { %7509 = vtanh.f32 %v1728_v54 }
0x1aab   :  { %v7510_v35 = vpop.eup %7509 }
0x1aac   :  { %1731 = vrot.lane.b32.xlu0 %v7510_v35, %s7788_s7 }
0x1b1e   :  { %v1732_v36 = vpop.permute.xlu0 %1731 }
0x1b1f   :  { %v1734_v37 = vmul.f32 %v7508_v30, %v1732_v36  ;;  %v1417_v36 = vadd.f32 %v8192_v24, %v8222_v19 }
0x1b21   :  { %1736 = vrot.lane.b32.xlu1 %v1734_v37, %s7789_s0 }
0x1b93   :  { %v1737_v38 = vpop.permute.xlu1 %1736 }
0x1b94   :  { %1739 = vst.msk [vmem:[#allocation3 + $0x10] sm:$0xff] %vm434_vm4, %v1737_v38  ;;  %6597 = vmatmul.mubr.msk.f32.vlgmr.msra.gmra.mrb[16].mxu1 %vm434_vm4, %v1737_v38 }
0x1b95   :  { %7158 = vmatpush3.bf16.msra.mxu1 %v8156_v7  ;;  %6618 = vmatprep.mubr.msk.f32.mxu1 %vm7786_vm0, %v7784_v1 }
0x1b96   :  { %7159 = vmatprep.subr.bf16.mxu1 %v7787_v21 }
0x1b99   :  { %7161 = vmatpush3.bf16.msra.mxu1 %v8166_v11 }
0x1b9a   :  { %7168 = vmatprep.subr.bf16.mxu1 %v7787_v21 }
0x1c67   :  { %v1809_v40 = vpop.f32.mrb[16].mxu1 }
0x1c68   :  { %v1813_v41 = vadd.f32 %v1809_v40, %v1402_v39  ;;  %v6598_v42 = vpop.f32.mrb[17].mxu1 }
0x1c6a   :  { %7511 = vtanh.f32 %v1813_v41  ;;  %v6010_v44 = vmul.f32 -1.442695, %v1813_v41 }
0x1c6c   :  { %7513 = vpow2.f32 %v6010_v44 }
0x1c74   :  { %v7512_v43 = vpop.eup %7511 }
0x1c75   :  { %1823 = vrot.lane.b32.xlu0 %v7512_v43, %s7788_s7 }
0x1c76   :  { %v7514_v45 = vpop.eup %7513 }
0x1c77   :  { %v1817_v46 = vadd.f32 1.0, %v7514_v45 }
0x1c79   :  { %7515 = vrcp.f32 %v1817_v46 }
0x1c83   :  { %v7516_v47 = vpop.eup %7515 }
0x1c84   :  { %v1821_v51 = vmul.f32 %v7516_v47, %v1728_v54 }
0x1ce7   :  { %v1824_v48 = vpop.permute.xlu0 %1823 }
0x1ce8   :  { %v1826_v49 = vmul.f32 %v7516_v47, %v1824_v48 }
0x1cea   :  { %1828 = vrot.lane.b32.xlu1 %v1826_v49, %s7789_s0 }
0x1d5c   :  { %v1829_v53 = vpop.permute.xlu1 %1828 }
0x1d5d   :  { %v1831_v52 = vadd.f32 %v1829_v53, %v1821_v51 }
0x1d5f   :  { %7517 = vtanh.f32 %v1831_v52 }
0x1d69   :  { %v7518_v57 = vpop.eup %7517 }
0x1d6a   :  { %1834 = vrot.lane.b32.xlu0 %v7518_v57, %s7788_s7  ;;  %v1422_v57 = vadd.f32 %v8220_v17, %v8192_v24 }
0x1ddc   :  { %v1835_v13 = vpop.permute.xlu0 %1834 }
0x1ddd   :  { %v1837_v58 = vmul.f32 %v7516_v47, %v1835_v13 }
0x1ddf   :  { %1839 = vrot.lane.b32.xlu1 %v1837_v58, %s7789_s0 }
0x1e51   :  { %v1840_v59 = vpop.permute.xlu1 %1839 }
0x1e52   :  { %1842 = vst.msk [vmem:[#allocation3 + $0x18] sm:$0xff] %vm434_vm4, %v1840_v59  ;;  %6608 = vmatmul.mubr.msk.f32.vlgmr.msra.gmra.mrb[26].mxu0 %vm434_vm4, %v1840_v59 }
0x1e53   :  { %7164 = vmatpush3.bf16.msra.mxu0 %v8156_v7  ;;  %6629 = vmatprep.mubr.msk.f32.mxu0 %vm7786_vm0, %v7784_v1 }
0x1e54   :  { %7165 = vmatprep.subr.bf16.mxu0 %v7787_v21 }
0x1e57   :  { %7167 = vmatpush3.bf16.msra.mxu0 %v8166_v11 }
0x1e58   :  { %7174 = vmatprep.subr.bf16.mxu0 %v7787_v21 }
0x1f25   :  { %v1912_v61 = vpop.f32.mrb[26].mxu0 }
0x1f26   :  { %v1916_v62 = vadd.f32 %v1912_v61, %v1407_v60  ;;  %v6609_v63 = vpop.f32.mrb[27].mxu0 }
0x1f28   :  { %7519 = vtanh.f32 %v1916_v62  ;;  %v6012_v3 = vmul.f32 -1.442695, %v1916_v62 }
0x1f2a   :  { %7521 = vpow2.f32 %v6012_v3 }
0x1f32   :  { %v7520_v2 = vpop.eup %7519 }
0x1f33   :  { %1926 = vrot.lane.b32.xlu0 %v7520_v2, %s7788_s7 }
0x1f34   :  { %v7522_v50 = vpop.eup %7521 }
0x1f35   :  { %v1920_v4 = vadd.f32 1.0, %v7522_v50 }
0x1f37   :  { %7523 = vrcp.f32 %v1920_v4 }
0x1f41   :  { %v7524_v6 = vpop.eup %7523 }
0x1f42   :  { %v1924_v14 = vmul.f32 %v7524_v6, %v1831_v52 }
0x1fa5   :  { %v1927_v8 = vpop.permute.xlu0 %1926 }
0x1fa6   :  { %v1929_v9 = vmul.f32 %v7524_v6, %v1927_v8  ;;  %v2256_v8 = vld [vmem:[%s9135_s11] sm:$0xff] }
0x1fa8   :  { %1931 = vrot.lane.b32.xlu1 %v1929_v9, %s7789_s0  ;;  %v2257_v9 = vld [vmem:[%s9135_s11 + $0x8] sm:$0xff] }
0x201a   :  { %v1932_v15 = vpop.permute.xlu1 %1931 }
0x201b   :  { %v1934_v56 = vadd.f32 %v1932_v15, %v1924_v14  ;;  %v7175_v14 = vpack.c.bf16 %v2257_v9, %v2256_v8  ;;  %v2258_v15 = vld [vmem:[%s9135_s11 + $0x10] sm:$0xff] }
0x201d   :  { %7525 = vtanh.f32 %v1934_v56 }
0x2027   :  { %v7526_v18 = vpop.eup %7525 }
0x2028   :  { %1937 = vrot.lane.b32.xlu0 %v7526_v18, %s7788_s7 }
0x209a   :  { %v1938_v20 = vpop.permute.xlu0 %1937 }
0x209b   :  { %v1940_v16 = vmul.f32 %v7524_v6, %v1938_v20  ;;  %v93_v20 = vld [vmem:[%s9136_s29] sm:$0xff] }
0x209d   :  { %1942 = vrot.lane.b32.xlu1 %v1940_v16, %s7789_s0 }
0x210f   :  { %v1943_v22 = vpop.permute.xlu1 %1942 }
0x2110   :  { %1945 = vst.msk [vmem:[#allocation3 + $0x20] sm:$0xff] %vm434_vm4, %v1943_v22  ;;  %6619 = vmatmul.mubr.msk.f32.vlgmr.msra.gmra.mrb[18].mxu1 %vm434_vm4, %v1943_v22 }
0x2111   :  { %7170 = vmatpush3.bf16.msra.mxu1 %v8156_v7  ;;  %6640 = vmatprep.mubr.msk.f32.mxu1 %vm7786_vm0, %v7784_v1 }
0x2112   :  { %7171 = vmatprep.subr.bf16.mxu1 %v7787_v21 }
0x2115   :  { %7173 = vmatpush3.bf16.msra.mxu1 %v8166_v11 }
0x2116   :  { %6654 = vmatprep.subr.mxu1 %v7784_v1 }
0x21e3   :  { %v2015_v27 = vpop.f32.mrb[18].mxu1 }
0x21e4   :  { %v2019_v23 = vadd.f32 %v2015_v27, %v1412_v26  ;;  %v6620_v28 = vpop.f32.mrb[19].mxu1 }
0x21e5   :  { %v6019_v28 = vld [vmem:[%s9091_s10] ss:$0 sm:$0xff]  ;;  %s7791_s10 = smov 124  }
0x21e6   :  { %7527 = vtanh.f32 %v2019_v23  ;;  %v6014_v7 = vmul.f32 -1.442695, %v2019_v23  ;;  %v2356_v23 = vld [vmem:[%s9137_s12 + $0x8] sm:$0xf] }
0x21e8   :  { %7529 = vpow2.f32 %v6014_v7 }
0x21f0   :  { %v7528_v29 = vpop.eup %7527 }
0x21f1   :  { %2029 = vrot.lane.b32.xlu0 %v7528_v29, %s7788_s7 }
0x21f2   :  { %v7530_v10 = vpop.eup %7529 }
0x21f3   :  { %v2023_v25 = vadd.f32 1.0, %v7530_v10 }
0x21f5   :  { %7531 = vrcp.f32 %v2023_v25  ;;  %v2355_v25 = vld [vmem:[%s9137_s12] sm:$0xff] }
0x21ff   :  { %v7532_v12 = vpop.eup %7531 }
0x2200   :  { %v2027_v31 = vmul.f32 %v7532_v12, %v1934_v56  ;;  %v2259_v56 = vld [vmem:[%s9135_s11 + $0x18] sm:$0xff] }
0x2201   :  { %v7178_v18 = vpack.c.bf16 %v2259_v56, %v2258_v15 }
0x2263   :  { %v2030_v30 = vpop.permute.xlu0 %2029 }
0x2264   :  { %v2032_v11 = vmul.f32 %v7532_v12, %v2030_v30 }
0x2266   :  { %2034 = vrot.lane.b32.xlu1 %v2032_v11, %s7789_s0  ;;  %v2359_v11 = vcombine.high %v2355_v25, %v2355_v25 }
0x22d8   :  { %v2035_v32 = vpop.permute.xlu1 %2034 }
0x22d9   :  { %v2037_v55 = vadd.f32 %v2035_v32, %v2027_v31 }
0x22db   :  { %7533 = vtanh.f32 %v2037_v55 }
0x22e5   :  { %v7534_v33 = vpop.eup %7533 }
0x22e6   :  { %2040 = vrot.lane.b32.xlu0 %v7534_v33, %s7788_s7  ;;  %v2518_v33 = vld [vmem:[%s9093_s14] sm:$0xff] }
0x2358   :  { %v2041_v34 = vpop.permute.xlu0 %2040 }
0x2359   :  { %v2043_v54 = vmul.f32 %v7532_v12, %v2041_v34  ;;  %v2519_v34 = vld [vmem:[%s9093_s14 + $0x8] sm:$0xff] }
0x235b   :  { %2045 = vrot.lane.b32.xlu1 %v2043_v54, %s7789_s0 }
0x23cd   :  { %v2046_v35 = vpop.permute.xlu1 %2045 }
0x23ce   :  { %2048 = vst.msk [vmem:[#allocation3 + $0x28] sm:$0xff] %vm434_vm4, %v2046_v35  ;;  %6630 = vmatmul.mubr.msk.f32.vlgmr.msra.gmra.mrb[28].mxu0 %vm434_vm4, %v2046_v35  ;;  %v7181_v35 = vpack.c.bf16 %v2519_v34, %v2518_v33 }
0x23cf   :  { %6651 = vmatprep.mubr.msk.f32.mxu0 %vm7786_vm0, %v7784_v1  ;;  %7176 = vmatpush3.bf16.msra.mxu0 %v7175_v14 }
0x23d0   :  { %7177 = vmatprep.subr.bf16.mxu0 %v7787_v21 }
0x23d3   :  { %7179 = vmatpush3.bf16.msra.mxu0 %v7178_v18 }
0x23d4   :  { %6021 = vmatprep.subr.msk.mxu0 %vm2364_vm5, %v2359_v11 }
0x24a1   :  { %v2118_v37 = vpop.f32.mrb[28].mxu0 }
0x24a2   :  { %v2122_v38 = vadd.f32 %v2118_v37, %v1417_v36  ;;  %v6631_v39 = vpop.f32.mrb[29].mxu0  ;;  %v7777_v37 = vld [vmem:[%s9130_s2] sm:$0xff] }
0x24a3   :  { %v7779_v39 = vld [vmem:[%s9130_s2 + $0x8] sm:$0xff] }
0x24a4   :  { %7535 = vtanh.f32 %v2122_v38  ;;  %v6016_v41 = vmul.f32 -1.442695, %v2122_v38  ;;  %v7778_v38 = vld [vmem:[%s9130_s2 + $0x10] sm:$0xff] }
0x24a6   :  { %7537 = vpow2.f32 %v6016_v41  ;;  %v7781_v41 = vld [vmem:[%s9130_s2 + $0x20] sm:$0xff] }
0x24ae   :  { %v7536_v40 = vpop.eup %7535 }
0x24af   :  { %2132 = vrot.lane.b32.xlu0 %v7536_v40, %s7788_s7  ;;  %v7780_v40 = vld [vmem:[%s9130_s2 + $0x18] sm:$0xff] }
0x24b0   :  { %v7538_v42 = vpop.eup %7537 }
0x24b1   :  { %v2126_v43 = vadd.f32 1.0, %v7538_v42  ;;  %v7782_v42 = vld [vmem:[%s9130_s2 + $0x28] sm:$0xff] }
0x24b3   :  { %7539 = vrcp.f32 %v2126_v43  ;;  %v7783_v43 = vld [vmem:[%s9130_s2 + $0x30] sm:$0xff] }
0x24bd   :  { %v7540_v44 = vpop.eup %7539 }
0x24be   :  { %v2130_v47 = vmul.f32 %v7540_v44, %v2037_v55 }
0x2521   :  { %v2133_v45 = vpop.permute.xlu0 %2132 }
0x2522   :  { %v2135_v46 = vmul.f32 %v7540_v44, %v2133_v45  ;;  %v2627_v45 = vld [vmem:[%s9094_s15] sm:$0xff] }
0x2524   :  { %2137 = vrot.lane.b32.xlu1 %v2135_v46, %s7789_s0  ;;  %v2628_v46 = vld [vmem:[%s9094_s15 + $0x8] sm:$0xff] }
0x2596   :  { %v2138_v48 = vpop.permute.xlu1 %2137 }
0x2597   :  { %v2140_v19 = vadd.f32 %v2138_v48, %v2130_v47  ;;  %v2629_v47 = vld [vmem:[%s9094_s15 + $0x10] sm:$0xff]  ;;  %v8402_v48 = vpack.c.bf16 %v2628_v46, %v2627_v45 }
0x2598   :  { %v3471_v46 = vld [vmem:[%s9096_s16 + $0x10] sm:$0xff] }
0x2599   :  { %7541 = vtanh.f32 %v2140_v19 }
0x25a3   :  { %v7542_v49 = vpop.eup %7541 }
0x25a4   :  { %2143 = vrot.lane.b32.xlu0 %v7542_v49, %s7788_s7 }
0x2616   :  { %v2144_v51 = vpop.permute.xlu0 %2143 }
0x2617   :  { %v2146_v53 = vmul.f32 %v7540_v44, %v2144_v51  ;;  %v7792_v44 = vmov 0   ;;  %v108_v51 = vsub.s32 2, %v7939_v5 }
0x2618   :  { %7420 = vset.pattern.permute.xlu0 %v7792_v44  ;;  %v3470_v44 = vld [vmem:[%s9096_s16 + $0x8] sm:$0xff] }
0x2619   :  { %2148 = vrot.lane.b32.xlu1 %v2146_v53, %s7789_s0  ;;  %v96_v53 = vld [vmem:[%s9095_s13] sm:$0x7] }
0x268b   :  { %v2149_v52 = vpop.permute.xlu1 %2148 }
0x268c   :  { %2151 = vst.msk [vmem:[#allocation3 + $0x30] sm:$0xff] %vm434_vm4, %v2149_v52  ;;  %6641 = vmatmul.mubr.msk.f32.vlgmr.msra.gmra.mrb[20].mxu1 %vm434_vm4, %v2149_v52  ;;  %v109_v52 = vrot.slane %v96_v53, %v108_v51 }
0x268d   :  { %6656 = vmatprep.mubr.msk.f32.mxu1 %vm7786_vm0, %v7784_v1  ;;  %6655 = vmatpush3.msk.msra.mxu1 %vm2364_vm5, %v2356_v23 }
0x268e   :  { %7383 = vmatprep.subr.bf16.mxu1 %v7787_v21 }
0x275f   :  { %v2221_v13 = vpop.f32.mrb[20].mxu1 }
0x2760   :  { %v2225_v58 = vadd.f32 %v2221_v13, %v1422_v57  ;;  %v6642_v59 = vpop.f32.mrb[21].mxu1 }
0x2762   :  { %7543 = vtanh.f32 %v2225_v58  ;;  %v6018_v61 = vmul.f32 -1.442695, %v2225_v58 }
0x2764   :  { %7545 = vpow2.f32 %v6018_v61 }
0x276c   :  { %v7544_v60 = vpop.eup %7543 }
0x276d   :  { %2235 = vrot.lane.b32.xlu0 %v7544_v60, %s7788_s7 }
0x276e   :  { %v7546_v62 = vpop.eup %7545 }
0x276f   :  { %v2229_v63 = vadd.f32 1.0, %v7546_v62 }
0x2771   :  { %7547 = vrcp.f32 %v2229_v63 }
0x277b   :  { %v7548_v2 = vpop.eup %7547 }
0x277c   :  { %v2233_v4 = vmul.f32 %v7548_v2, %v2140_v19  ;;  %v2630_v19 = vld [vmem:[%s9094_s15 + $0x18] sm:$0xff] }
0x277d   :  { %v8408_v49 = vpack.c.bf16 %v2630_v19, %v2629_v47  ;;  %v3472_v47 = vld [vmem:[%s9096_s16 + $0x18] sm:$0xff] }
0x277e   :  { %v7235_v19 = vpack.c.bf16 %v3472_v47, %v3471_v46 }
0x27df   :  { %v2236_v3 = vpop.permute.xlu0 %2235 }
0x27e0   :  { %v2238_v50 = vmul.f32 %v7548_v2, %v2236_v3 }
0x27e2   :  { %2240 = vrot.lane.b32.xlu1 %v2238_v50, %s7789_s0  ;;  %v104_v50 = vsub.s32 1, %v7939_v5 }
0x2854   :  { %v2241_v6 = vpop.permute.xlu1 %2240 }
0x2855   :  { %v2243_v24 = vadd.f32 %v2241_v6, %v2233_v4  ;;  %v105_v4 = vrot.slane %v96_v53, %v104_v50 }
0x2857   :  { %7549 = vtanh.f32 %v2243_v24 }
0x2861   :  { %v7550_v17 = vpop.eup %7549 }
0x2862   :  { %2246 = vrot.lane.b32.xlu0 %v7550_v17, %s7788_s7 }
0x2866   :  { %2346 = vrot.lane.b32.xlu0 %v93_v20, %s7790_s5 }
0x28d4   :  { %v2247_v16 = vpop.permute.xlu0 %2246 }
0x28d5   :  { %v2249_v22 = vmul.f32 %v7548_v2, %v2247_v16 }
0x28d7   :  { %2251 = vrot.lane.b32.xlu1 %v2249_v22, %s7789_s0 }
0x28d8   :  { %v2347_v31 = vpop.permute.xlu0 %2346 }
0x2949   :  { %v2252_v26 = vpop.permute.xlu1 %2251 }
0x294a   :  { %2254 = vst.msk [vmem:[#allocation3 + $0x38] sm:$0xff] %vm434_vm4, %v2252_v26 }
0x2951   :  { %v2255_v27 = vld [vmem:[#allocation3 + $0x38] sm:$0xff] }
0x2952   :  { %6652 = vmatmul.mubr.msk.f32.vlgmr.msra.gmra.mrb[30].mxu0 %vm434_vm4, %v2255_v27 }
0x2953   :  { %2435 = vmatprep.mubr.f32.mxu0 %v7784_v1  ;;  %6022 = vmatpush1.msk.msra.mxu0 %vm2364_vm5, %v2355_v25  ;;  %v100_v25 = vsub.s32 0, %v7939_v5 }
0x2954   :  { %7180 = vmatprep.subr.bf16.mxu0 %v7787_v21 }
0x2a25   :  { %v2336_v29 = vpop.f32.mrb[30].mxu0 }
0x2a26   :  { %v2337_v7 = vadd.f32 %v6019_v28, %v2336_v29  ;;  %v6653_v10 = vpop.f32.mrb[31].mxu0 }
0x2a28   :  { %2341 = vst.msk [vmem:[%s9092_s26] sm:$0xff] %vm2340_vm6, %v2337_v7  ;;  %v2342_v12 = vmul.f32 0.5, %v2337_v7 }
0x2a2a   :  { %v2343_v30 = vmul.f32 1.442695, %v2342_v12  ;;  %v101_v12 = vrot.slane %v96_v53, %v100_v25 }
0x2a2c   :  { %7551 = vpow2.f32 %v2343_v30  ;;  %v208_v30 = vadd.f32 nan, %v101_v12 }
0x2a36   :  { %v7552_v32 = vpop.eup %7551 }
0x2a37   :  { %v2349_v55 = vmul.f32 %v7552_v32, %v2347_v31 }
0x2a39   :  { %2351 = vrot.lane.b32.xlu1 %v2349_v55, %s7791_s10 }
0x2aab   :  { %v2352_v54 = vpop.permute.xlu1 %2351 }
0x2aac   :  { %v2354_v36 = vadd.f32 %v2352_v54, %v2337_v7 }
0x2aae   :  { %6023 = vmatmul.mubr.msk.f32.vlgmr.msra.gmra.mrb[0].mxu0 %vm2360_vm7, %v2354_v36  ;;  %6657 = vmatmul.mubr.msk.f32.vlgmr.msra.gmra.mrb[0].mxu1 %vm2360_vm7, %v2354_v36 }
0x2aaf   :  { %7182 = vmatpush3.bf16.msra.mxu0 %v7181_v35  ;;  %6663 = vmatprep.mubr.msk.f32.mxu0 %vm7786_vm0, %v7784_v1 }
0x2ab0   :  { %7183 = vmatprep.subr.bf16.mxu0 %v7787_v21  ;;  %7384 = vmatpush3.bf16.msra.mxu1 %v7181_v35 }
0x2ab1   :  { %6669 = vmatprep.mubr.msk.f32.mxu1 %vm7786_vm0, %v7784_v1  ;;  %7189 = vmatprep.subr.bf16.mxu1 %v7787_v21 }
0x2ab2   :  { %6664 = vmatmul.mubr.msk.f32.vlgmr.msra.gmra.mrb[32].mxu0 %vm291_vm3, %v7777_v37 }
0x2ab3   :  { %6666 = vmatprep.mubr.msk.f32.mxu0 %vm7786_vm0, %v7784_v1  ;;  %6670 = vmatmul.mubr.msk.f32.vlgmr.msra.gmra.mrb[22].mxu1 %vm291_vm3, %v7778_v38 }
0x2ab4   :  { %6672 = vmatprep.mubr.msk.f32.mxu1 %vm7786_vm0, %v7784_v1  ;;  %7185 = vmatpush3.bf16.msra.mxu0 %v8402_v48 }
0x2ab5   :  { %7191 = vmatpush3.bf16.msra.mxu1 %v8402_v48  ;;  %7186 = vmatprep.subr.bf16.mxu0 %v7787_v21 }
0x2ab6   :  { %6667 = vmatmul.mubr.msk.f32.gmra.mrb[34].mxu0 %vm291_vm3, %v7779_v39  ;;  %7192 = vmatprep.subr.bf16.mxu1 %v7787_v21 }
0x2ab7   :  { %6692 = vmatprep.mubr.msk.f32.mxu0 %vm7786_vm0, %v7784_v1  ;;  %6673 = vmatmul.mubr.msk.f32.gmra.mrb[24].mxu1 %vm291_vm3, %v7780_v40 }
0x2ab8   :  { %6675 = vmatprep.mubr.msk.f32.mxu1 %vm7786_vm0, %v7784_v1  ;;  %7188 = vmatpush3.bf16.msra.mxu0 %v8408_v49 }
0x2ab9   :  { %7194 = vmatpush3.bf16.msra.mxu1 %v8408_v49 }
0x2aba   :  { %7195 = vmatprep.subr.bf16.mxu1 %v7787_v21 }
0x2abb   :  { %6676 = vmatmul.mubr.msk.f32.gmra.mrb[26].mxu1 %vm291_vm3, %v7781_v41 }
0x2abc   :  { %6678 = vmatprep.mubr.msk.f32.mxu1 %vm7786_vm0, %v7784_v1 }
0x2abf   :  { %6679 = vmatmul.mubr.msk.f32.gmra.mrb[28].mxu1 %vm291_vm3, %v7782_v42 }
0x2ac0   :  { %6681 = vmatprep.mubr.msk.f32.mxu1 %vm7786_vm0, %v7784_v1 }
0x2ac3   :  { %6682 = vmatmul.mubr.msk.f32.gmra.mrb[30].mxu1 %vm291_vm3, %v7783_v43  ;;  %v3469_v43 = vld [vmem:[%s9096_s16] sm:$0xff] }
0x2ac4   :  { %6703 = vmatprep.mubr.msk.f32.mxu1 %vm7786_vm0, %v7784_v1  ;;  %v7231_v45 = vpack.c.bf16 %v3470_v44, %v3469_v43 }
0x2ac6   :  { %7232 = vmatprep.subr.bf16.mxu0 %v7231_v45 }
0x2b81   :  { %v2437_v57 = vpop.f32.mrb[0].mxu0  ;;  %v2508_v13 = vpop.f32.mrb[0].mxu1 }
0x2b82   :  { %v7387_v58 = vadd.f32 %v2508_v13, %v109_v52  ;;  %v2439_v59 = vpop.f32.mrb[1].mxu0  ;;  %v6658_v60 = vpop.f32.mrb[1].mxu1  ;;  %v8442_v11 = vadd.f32 %v2437_v57, %v208_v30 }
0x2b83   :  { %v7386_v6 = vadd.f32 %v2439_v59, %v105_v4 }
0x2b84   :  { %2514 = vperm.xlu0 %7420, %v7387_v58  }
0x2b85   :  { %v2586_v61 = vpop.f32.mrb[32].mxu0 }
0x2b86   :  { %v6665_v62 = vpop.f32.mrb[33].mxu0  ;;  %v7388_v31 = vadd.f32 %v2586_v61, %v8442_v11 }
0x2b89   :  { %v8420_v63 = vpop.f32.mrb[34].mxu0 }
0x2b8a   :  { %v6668_v2 = vpop.f32.mrb[35].mxu0  ;;  %v7390_v13 = vadd.f32 %v8420_v63, %v8442_v11 }
0x2c03   :  { %v8422_v3 = vpop.permute.xlu0 %2514 }
0x2c04   :  { %6693 = vmatmul.mubr.msk.f32.vlgmr.msra.gmra.mrb[36].mxu0 %vm434_vm4, %v8422_v3 }
0x2c05   :  { %7234 = vmatpush3.bf16.msra.mxu0 %v7231_v45 }
0x2c06   :  { %7236 = vmatprep.subr.bf16.mxu0 %v7235_v19 }
0x2c09   :  { %7238 = vmatpush3.bf16.msra.mxu0 %v7235_v19 }
0x2c0a   :  { %7239 = vmatprep.subr.bf16.mxu0 %v7787_v21 }
0x2cd7   :  { %v2700_v24 = vpop.f32.mrb[36].mxu0 }
0x2cd8   :  { %v2704_v17 = vadd.f32 %v7386_v6, %v2700_v24  ;;  %v6694_v8 = vpop.f32.mrb[37].mxu0 }
0x2cda   :  { %7553 = vtanh.f32 %v2704_v17  ;;  %v6034_v14 = vmul.f32 -1.442695, %v2704_v17 }
0x2cdc   :  { %7555 = vpow2.f32 %v6034_v14 }
0x2ce4   :  { %v7554_v9 = vpop.eup %7553 }
0x2ce5   :  { %2714 = vrot.lane.b32.xlu1 %v7554_v9, %s7788_s7 }
0x2ce6   :  { %v7556_v15 = vpop.eup %7555 }
0x2ce7   :  { %v2708_v56 = vadd.f32 1.0, %v7556_v15 }
0x2ce9   :  { %7557 = vrcp.f32 %v2708_v56 }
0x2cf3   :  { %v7558_v18 = vpop.eup %7557 }
0x2cf4   :  { %v2712_v22 = vmul.f32 %v7558_v18, %v8422_v3 }
0x2d57   :  { %v2715_v20 = vpop.permute.xlu1 %2714 }
0x2d58   :  { %v2717_v16 = vmul.f32 %v7558_v18, %v2715_v20 }
0x2d5a   :  { %2719 = vrot.lane.b32.xlu1 %v2717_v16, %s7789_s0 }
0x2dcc   :  { %v2720_v26 = vpop.permute.xlu1 %2719 }
0x2dcd   :  { %v2722_v27 = vadd.f32 %v2720_v26, %v2712_v22 }
0x2dcf   :  { %7559 = vtanh.f32 %v2722_v27 }
0x2dd9   :  { %v7560_v23 = vpop.eup %7559 }
0x2dda   :  { %2725 = vrot.lane.b32.xlu0 %v7560_v23, %s7788_s7 }
0x2e4c   :  { %v2726_v28 = vpop.permute.xlu0 %2725 }
0x2e4d   :  { %v2728_v29 = vmul.f32 %v7558_v18, %v2726_v28 }
0x2e4f   :  { %2730 = vrot.lane.b32.xlu1 %v2728_v29, %s7789_s0 }
0x2ec1   :  { %v2731_v7 = vpop.permute.xlu1 %2730 }
0x2ec2   :  { %2733 = vst.msk [vmem:[#allocation5] sm:$0xff] %vm434_vm4, %v2731_v7  ;;  %6704 = vmatmul.mubr.msk.f32.vlgmr.msra.gmra.mrb[32].mxu1 %vm434_vm4, %v2731_v7 }
0x2ec3   :  { %7197 = vmatpush3.bf16.msra.mxu1 %v8402_v48  ;;  %6714 = vmatprep.mubr.msk.f32.mxu1 %vm7786_vm0, %v7784_v1 }
0x2ec4   :  { %7198 = vmatprep.subr.bf16.mxu1 %v7787_v21 }
0x2ec7   :  { %7200 = vmatpush3.bf16.msra.mxu1 %v8408_v49 }
0x2ec8   :  { %7201 = vmatprep.subr.bf16.mxu1 %v7787_v21 }
0x2ec9   :  { %v3478_v10 = vld [vmem:[#allocation5] sm:$0xff] }
0x2eca   :  { %6780 = vmatprep.mubr.msk.f32.mxu0 %vm434_vm4, %v3478_v10 }
0x2f95   :  { %v2804_v32 = vpop.f32.mrb[32].mxu1 }
0x2f96   :  { %v7389_v55 = vadd.f32 %v7388_v31, %v2804_v32  ;;  %v6705_v33 = vpop.f32.mrb[33].mxu1 }
0x2f98   :  { %7561 = vtanh.f32 %v7389_v55  ;;  %v6036_v54 = vmul.f32 -1.442695, %v7389_v55 }
0x2f9a   :  { %7563 = vpow2.f32 %v6036_v54 }
0x2fa2   :  { %v7562_v34 = vpop.eup %7561 }
0x2fa3   :  { %2818 = vrot.lane.b32.xlu0 %v7562_v34, %s7788_s7 }
0x2fa4   :  { %v7564_v35 = vpop.eup %7563 }
0x2fa5   :  { %v2812_v36 = vadd.f32 1.0, %v7564_v35 }
0x2fa7   :  { %7565 = vrcp.f32 %v2812_v36 }
0x2fb1   :  { %v7566_v37 = vpop.eup %7565 }
0x2fb2   :  { %v2816_v39 = vmul.f32 %v7566_v37, %v2722_v27 }
0x3015   :  { %v2819_v5 = vpop.permute.xlu0 %2818 }
0x3016   :  { %v2821_v38 = vmul.f32 %v7566_v37, %v2819_v5 }
0x3018   :  { %2823 = vrot.lane.b32.xlu1 %v2821_v38, %s7789_s0 }
0x308a   :  { %v2824_v40 = vpop.permute.xlu1 %2823 }
0x308b   :  { %v2826_v41 = vadd.f32 %v2824_v40, %v2816_v39 }
0x308d   :  { %7567 = vtanh.f32 %v2826_v41 }
0x3097   :  { %v7568_v42 = vpop.eup %7567 }
0x3098   :  { %2829 = vrot.lane.b32.xlu0 %v7568_v42, %s7788_s7 }
0x310a   :  { %v2830_v51 = vpop.permute.xlu0 %2829 }
0x310b   :  { %v2832_v53 = vmul.f32 %v7566_v37, %v2830_v51 }
0x310d   :  { %2834 = vrot.lane.b32.xlu1 %v2832_v53, %s7789_s0 }
0x317f   :  { %v2835_v52 = vpop.permute.xlu1 %2834 }
0x3180   :  { %2838 = vst.msk [vmem:[#allocation5 + $0x8] sm:$0xff] %vm434_vm4, %v2835_v52  ;;  %6715 = vmatmul.mubr.msk.f32.vlgmr.msra.gmra.mrb[34].mxu1 %vm434_vm4, %v2835_v52 }
0x3181   :  { %7203 = vmatpush3.bf16.msra.mxu1 %v8402_v48  ;;  %6725 = vmatprep.mubr.msk.f32.mxu1 %vm7786_vm0, %v7784_v1 }
0x3182   :  { %7204 = vmatprep.subr.bf16.mxu1 %v7787_v21 }
0x3185   :  { %7206 = vmatpush3.bf16.msra.mxu1 %v8408_v49 }
0x3186   :  { %7207 = vmatprep.subr.bf16.mxu1 %v7787_v21 }
0x3187   :  { %v3479_v57 = vld [vmem:[#allocation5 + $0x8] sm:$0xff] }
0x3188   :  { %6781 = vmatmul.mubr.msk.f32.vlgmr.msra.gmra.mrb[38].mxu0 %vm434_vm4, %v3479_v57 }
0x3253   :  { %v2909_v58 = vpop.f32.mrb[34].mxu1 }
0x3254   :  { %v7391_v59 = vadd.f32 %v7390_v13, %v2909_v58  ;;  %v6716_v60 = vpop.f32.mrb[35].mxu1 }
0x3256   :  { %7569 = vtanh.f32 %v7391_v59  ;;  %v6038_v50 = vmul.f32 -1.442695, %v7391_v59 }
0x3258   :  { %7571 = vpow2.f32 %v6038_v50 }
0x325b   :  { %v8473_v61 = vpop.f32.mrb[38].mxu0 }
0x325c   :  { %v8475_v62 = vpop.f32.mrb[39].mxu0 }
0x3260   :  { %v7570_v2 = vpop.eup %7569 }
0x3261   :  { %2923 = vrot.lane.b32.xlu0 %v7570_v2, %s7788_s7 }
0x3262   :  { %v7572_v4 = vpop.eup %7571 }
0x3263   :  { %v2917_v6 = vadd.f32 1.0, %v7572_v4 }
0x3265   :  { %7573 = vrcp.f32 %v2917_v6 }
0x326f   :  { %v7574_v24 = vpop.eup %7573 }
0x3270   :  { %v2921_v63 = vmul.f32 %v7574_v24, %v2826_v41 }
0x32d3   :  { %v2924_v17 = vpop.permute.xlu0 %2923 }
0x32d4   :  { %v2926_v8 = vmul.f32 %v7574_v24, %v2924_v17 }
0x32d6   :  { %2928 = vrot.lane.b32.xlu1 %v2926_v8, %s7789_s0 }
0x3348   :  { %v2929_v9 = vpop.permute.xlu1 %2928 }
0x3349   :  { %v2931_v14 = vadd.f32 %v2929_v9, %v2921_v63 }
0x334b   :  { %7575 = vtanh.f32 %v2931_v14 }
0x3355   :  { %v7576_v15 = vpop.eup %7575 }
0x3356   :  { %2934 = vrot.lane.b32.xlu0 %v7576_v15, %s7788_s7 }
0x33c8   :  { %v2935_v56 = vpop.permute.xlu0 %2934 }
0x33c9   :  { %v2937_v18 = vmul.f32 %v7574_v24, %v2935_v56 }
0x33cb   :  { %2939 = vrot.lane.b32.xlu1 %v2937_v18, %s7789_s0 }
0x343d   :  { %v2940_v20 = vpop.permute.xlu1 %2939 }
0x343e   :  { %2943 = vst.msk [vmem:[#allocation5 + $0x10] sm:$0xff] %vm434_vm4, %v2940_v20  ;;  %6726 = vmatmul.mubr.msk.f32.vlgmr.msra.gmra.mrb[22].mxu1 %vm434_vm4, %v2940_v20 }
0x343f   :  { %7209 = vmatpush3.bf16.msra.mxu1 %v8402_v48  ;;  %6736 = vmatprep.mubr.msk.f32.mxu1 %vm7786_vm0, %v7784_v1 }
0x3440   :  { %7210 = vmatprep.subr.bf16.mxu1 %v7787_v21 }
0x3443   :  { %7212 = vmatpush3.bf16.msra.mxu1 %v8408_v49 }
0x3444   :  { %7213 = vmatprep.subr.bf16.mxu1 %v7787_v21 }
0x3445   :  { %v3480_v16 = vld [vmem:[#allocation5 + $0x10] sm:$0xff] }
0x3446   :  { %6783 = vmatprep.mubr.msk.f32.mxu0 %vm434_vm4, %v3480_v16 }
0x3511   :  { %v3014_v22 = vpop.f32.mrb[22].mxu1 }
0x3512   :  { %v7392_v26 = vadd.f32 %v3014_v22, %v8442_v11  ;;  %v6727_v27 = vpop.f32.mrb[23].mxu1 }
0x3514   :  { %7577 = vtanh.f32 %v7392_v26  ;;  %v6040_v28 = vmul.f32 -1.442695, %v7392_v26 }
0x3516   :  { %7579 = vpow2.f32 %v6040_v28 }
0x351e   :  { %v7578_v23 = vpop.eup %7577 }
0x351f   :  { %3028 = vrot.lane.b32.xlu0 %v7578_v23, %s7788_s7 }
0x3520   :  { %v7580_v29 = vpop.eup %7579 }
0x3521   :  { %v3022_v7 = vadd.f32 1.0, %v7580_v29 }
0x3523   :  { %7581 = vrcp.f32 %v3022_v7 }
0x352d   :  { %v7582_v10 = vpop.eup %7581 }
0x352e   :  { %v3026_v30 = vmul.f32 %v7582_v10, %v2931_v14 }
0x3591   :  { %v3029_v25 = vpop.permute.xlu0 %3028 }
0x3592   :  { %v3031_v12 = vmul.f32 %v7582_v10, %v3029_v25 }
0x3594   :  { %3033 = vrot.lane.b32.xlu1 %v3031_v12, %s7789_s0 }
0x3606   :  { %v3034_v31 = vpop.permute.xlu1 %3033 }
0x3607   :  { %v3036_v32 = vadd.f32 %v3034_v31, %v3026_v30 }
0x3609   :  { %7583 = vtanh.f32 %v3036_v32 }
0x3613   :  { %v7584_v55 = vpop.eup %7583 }
0x3614   :  { %3039 = vrot.lane.b32.xlu0 %v7584_v55, %s7788_s7 }
0x3686   :  { %v3040_v33 = vpop.permute.xlu0 %3039 }
0x3687   :  { %v3042_v34 = vmul.f32 %v7582_v10, %v3040_v33 }
0x3689   :  { %3044 = vrot.lane.b32.xlu1 %v3042_v34, %s7789_s0 }
0x36fb   :  { %v3045_v54 = vpop.permute.xlu1 %3044 }
0x36fc   :  { %3048 = vst.msk [vmem:[#allocation5 + $0x18] sm:$0xff] %vm434_vm4, %v3045_v54  ;;  %6737 = vmatmul.mubr.msk.f32.vlgmr.msra.gmra.mrb[24].mxu1 %vm434_vm4, %v3045_v54 }
0x36fd   :  { %7215 = vmatpush3.bf16.msra.mxu1 %v8402_v48  ;;  %6747 = vmatprep.mubr.msk.f32.mxu1 %vm7786_vm0, %v7784_v1 }
0x36fe   :  { %7216 = vmatprep.subr.bf16.mxu1 %v7787_v21 }
0x3701   :  { %7218 = vmatpush3.bf16.msra.mxu1 %v8408_v49 }
0x3702   :  { %7219 = vmatprep.subr.bf16.mxu1 %v7787_v21 }
0x3703   :  { %v3481_v35 = vld [vmem:[#allocation5 + $0x18] sm:$0xff] }
0x3704   :  { %6784 = vmatmul.mubr.msk.f32.gmra.mrb[40].mxu0 %vm434_vm4, %v3481_v35 }
0x37cf   :  { %v3119_v36 = vpop.f32.mrb[24].mxu1 }
0x37d0   :  { %v7393_v37 = vadd.f32 %v3119_v36, %v8442_v11  ;;  %v6738_v5 = vpop.f32.mrb[25].mxu1 }
0x37d2   :  { %7585 = vtanh.f32 %v7393_v37  ;;  %v6042_v41 = vmul.f32 -1.442695, %v7393_v37 }
0x37d4   :  { %7587 = vpow2.f32 %v6042_v41 }
0x37d7   :  { %v8505_v38 = vpop.f32.mrb[40].mxu0 }
0x37d8   :  { %v8507_v39 = vpop.f32.mrb[41].mxu0 }
0x37dc   :  { %v7586_v40 = vpop.eup %7585 }
0x37dd   :  { %3133 = vrot.lane.b32.xlu0 %v7586_v40, %s7788_s7 }
0x37de   :  { %v7588_v42 = vpop.eup %7587 }
0x37df   :  { %v3127_v43 = vadd.f32 1.0, %v7588_v42 }
0x37e1   :  { %7589 = vrcp.f32 %v3127_v43 }
0x37eb   :  { %v7590_v44 = vpop.eup %7589 }
0x37ec   :  { %v3131_v47 = vmul.f32 %v7590_v44, %v3036_v32 }
0x384f   :  { %v3134_v45 = vpop.permute.xlu0 %3133 }
0x3850   :  { %v3136_v46 = vmul.f32 %v7590_v44, %v3134_v45 }
0x3852   :  { %3138 = vrot.lane.b32.xlu1 %v3136_v46, %s7789_s0 }
0x38c4   :  { %v3139_v19 = vpop.permute.xlu1 %3138 }
0x38c5   :  { %v3141_v51 = vadd.f32 %v3139_v19, %v3131_v47 }
0x38c7   :  { %7591 = vtanh.f32 %v3141_v51 }
0x38d1   :  { %v7592_v53 = vpop.eup %7591 }
0x38d2   :  { %3144 = vrot.lane.b32.xlu0 %v7592_v53, %s7788_s7 }
0x3944   :  { %v3145_v52 = vpop.permute.xlu0 %3144 }
0x3945   :  { %v3147_v57 = vmul.f32 %v7590_v44, %v3145_v52  ;;  %v3474_v52 = vld [vmem:[%s9097_s17 + $0x8] sm:$0xff] }
0x3947   :  { %3149 = vrot.lane.b32.xlu1 %v3147_v57, %s7789_s0 }
0x39b9   :  { %v3150_v13 = vpop.permute.xlu1 %3149 }
0x39ba   :  { %3153 = vst.msk [vmem:[#allocation5 + $0x20] sm:$0xff] %vm434_vm4, %v3150_v13  ;;  %6748 = vmatmul.mubr.msk.f32.vlgmr.msra.gmra.mrb[26].mxu1 %vm434_vm4, %v3150_v13 }
0x39bb   :  { %7221 = vmatpush3.bf16.msra.mxu1 %v8402_v48  ;;  %6758 = vmatprep.mubr.msk.f32.mxu1 %vm7786_vm0, %v7784_v1 }
0x39bc   :  { %7222 = vmatprep.subr.bf16.mxu1 %v7787_v21 }
0x39bf   :  { %7224 = vmatpush3.bf16.msra.mxu1 %v8408_v49 }
0x39c0   :  { %7225 = vmatprep.subr.bf16.mxu1 %v7787_v21 }
0x39c1   :  { %v3482_v58 = vld [vmem:[#allocation5 + $0x20] sm:$0xff] }
0x39c2   :  { %6786 = vmatprep.mubr.msk.f32.mxu0 %vm434_vm4, %v3482_v58  ;;  %v3475_v58 = vld [vmem:[%s9097_s17 + $0x10] sm:$0xff] }
0x3a8d   :  { %v3224_v59 = vpop.f32.mrb[26].mxu1 }
0x3a8e   :  { %v7394_v60 = vadd.f32 %v3224_v59, %v8442_v11  ;;  %v6749_v2 = vpop.f32.mrb[27].mxu1  ;;  %v3476_v59 = vld [vmem:[%s9097_s17 + $0x18] sm:$0xff] }
0x3a90   :  { %7593 = vtanh.f32 %v7394_v60  ;;  %v6044_v4 = vmul.f32 -1.442695, %v7394_v60  ;;  %v8572_v60 = vpack.c.bf16 %v3476_v59, %v3475_v58 }
0x3a92   :  { %7595 = vpow2.f32 %v6044_v4 }
0x3a9a   :  { %v7594_v50 = vpop.eup %7593 }
0x3a9b   :  { %3238 = vrot.lane.b32.xlu0 %v7594_v50, %s7788_s7 }
0x3a9c   :  { %v7596_v6 = vpop.eup %7595 }
0x3a9d   :  { %v3232_v24 = vadd.f32 1.0, %v7596_v6 }
0x3a9f   :  { %7597 = vrcp.f32 %v3232_v24  ;;  %v8594_v24 = vld [vmem:[%s9098_s18] ss:$0 sm:$0xff] }
0x3aa9   :  { %v7598_v17 = vpop.eup %7597 }
0x3aaa   :  { %v3236_v9 = vmul.f32 %v7598_v17, %v3141_v51 }
0x3b0d   :  { %v3239_v8 = vpop.permute.xlu0 %3238 }
0x3b0e   :  { %v3241_v63 = vmul.f32 %v7598_v17, %v3239_v8 }
0x3b10   :  { %3243 = vrot.lane.b32.xlu1 %v3241_v63, %s7789_s0  ;;  %v3583_v63 = vadd.f32 %v8594_v24, %v8475_v62 }
0x3b82   :  { %v3244_v14 = vpop.permute.xlu1 %3243 }
0x3b83   :  { %v3246_v15 = vadd.f32 %v3244_v14, %v3236_v9 }
0x3b85   :  { %7599 = vtanh.f32 %v3246_v15 }
0x3b8f   :  { %v7600_v56 = vpop.eup %7599 }
0x3b90   :  { %3249 = vrot.lane.b32.xlu0 %v7600_v56, %s7788_s7 }
0x3c02   :  { %v3250_v18 = vpop.permute.xlu0 %3249 }
0x3c03   :  { %v3252_v20 = vmul.f32 %v7598_v17, %v3250_v18 }
0x3c05   :  { %3254 = vrot.lane.b32.xlu1 %v3252_v20, %s7789_s0 }
0x3c77   :  { %v3255_v16 = vpop.permute.xlu1 %3254 }
0x3c78   :  { %3258 = vst.msk [vmem:[#allocation5 + $0x28] sm:$0xff] %vm434_vm4, %v3255_v16  ;;  %6759 = vmatmul.mubr.msk.f32.vlgmr.msra.gmra.mrb[28].mxu1 %vm434_vm4, %v3255_v16 }
0x3c79   :  { %7227 = vmatpush3.bf16.msra.mxu1 %v8402_v48  ;;  %6769 = vmatprep.mubr.msk.f32.mxu1 %vm7786_vm0, %v7784_v1 }
0x3c7a   :  { %7228 = vmatprep.subr.bf16.mxu1 %v7787_v21 }
0x3c7d   :  { %7230 = vmatpush3.bf16.msra.mxu1 %v8408_v49 }
0x3c7e   :  { %7281 = vmatprep.subr.bf16.mxu1 %v7787_v21 }
0x3c7f   :  { %v3483_v22 = vld [vmem:[#allocation5 + $0x28] sm:$0xff] }
0x3c80   :  { %6787 = vmatmul.mubr.msk.f32.gmra.mrb[42].mxu0 %vm434_vm4, %v3483_v22 }
0x3d4b   :  { %v3329_v26 = vpop.f32.mrb[28].mxu1 }
0x3d4c   :  { %v7395_v27 = vadd.f32 %v3329_v26, %v8442_v11  ;;  %v6760_v23 = vpop.f32.mrb[29].mxu1 }
0x3d4e   :  { %7601 = vtanh.f32 %v7395_v27  ;;  %v6046_v7 = vmul.f32 -1.442695, %v7395_v27 }
0x3d50   :  { %7603 = vpow2.f32 %v6046_v7 }
0x3d53   :  { %v8537_v28 = vpop.f32.mrb[42].mxu0 }
0x3d54   :  { %v8539_v48 = vpop.f32.mrb[43].mxu0 }
0x3d58   :  { %v7602_v29 = vpop.eup %7601 }
0x3d59   :  { %3343 = vrot.lane.b32.xlu0 %v7602_v29, %s7788_s7 }
0x3d5a   :  { %v7604_v49 = vpop.eup %7603 }
0x3d5b   :  { %v3337_v10 = vadd.f32 1.0, %v7604_v49 }
0x3d5d   :  { %7605 = vrcp.f32 %v3337_v10 }
0x3d67   :  { %v7606_v25 = vpop.eup %7605 }
0x3d68   :  { %v3341_v31 = vmul.f32 %v7606_v25, %v3246_v15 }
0x3dcb   :  { %v3344_v12 = vpop.permute.xlu0 %3343 }
0x3dcc   :  { %v3346_v30 = vmul.f32 %v7606_v25, %v3344_v12  ;;  %v3588_v12 = vadd.f32 %v8473_v61, %v8594_v24 }
0x3dce   :  { %3348 = vrot.lane.b32.xlu1 %v3346_v30, %s7789_s0 }
0x3e40   :  { %v3349_v32 = vpop.permute.xlu1 %3348 }
0x3e41   :  { %v3351_v55 = vadd.f32 %v3349_v32, %v3341_v31 }
0x3e43   :  { %7607 = vtanh.f32 %v3351_v55 }
0x3e4d   :  { %v7608_v33 = vpop.eup %7607 }
0x3e4e   :  { %3354 = vrot.lane.b32.xlu0 %v7608_v33, %s7788_s7 }
0x3ec0   :  { %v3355_v34 = vpop.permute.xlu0 %3354 }
0x3ec1   :  { %v3357_v54 = vmul.f32 %v7606_v25, %v3355_v34 }
0x3ec3   :  { %3359 = vrot.lane.b32.xlu1 %v3357_v54, %s7789_s0 }
0x3f35   :  { %v3360_v35 = vpop.permute.xlu1 %3359 }
0x3f36   :  { %3363 = vst.msk [vmem:[#allocation5 + $0x30] sm:$0xff] %vm434_vm4, %v3360_v35  ;;  %6770 = vmatmul.mubr.msk.f32.vlgmr.msra.gmra.mrb[30].mxu1 %vm434_vm4, %v3360_v35 }
0x3f37   :  { %6877 = vmatprep.mubr.msk.f32.mxu1 %vm7786_vm0, %v7784_v1 }
0x3f3d   :  { %v3484_v36 = vld [vmem:[#allocation5 + $0x30] sm:$0xff] }
0x3f3e   :  { %6789 = vmatprep.mubr.msk.f32.mxu0 %vm434_vm4, %v3484_v36 }
0x4009   :  { %v3434_v37 = vpop.f32.mrb[30].mxu1 }
0x400a   :  { %v7396_v5 = vadd.f32 %v3434_v37, %v8442_v11  ;;  %v6771_v40 = vpop.f32.mrb[31].mxu1  ;;  %v3473_v11 = vld [vmem:[%s9097_s17] sm:$0xff] }
0x400b   :  { %v8559_v57 = vpack.c.bf16 %v3474_v52, %v3473_v11 }
0x400c   :  { %7609 = vtanh.f32 %v7396_v5  ;;  %v6048_v42 = vmul.f32 -1.442695, %v7396_v5 }
0x400d   :  { %7241 = vmatpush3.bf16.msra.mxu0 %v8559_v57  ;;  %7283 = vmatpush3.bf16.msra.mxu1 %v8559_v57 }
0x400e   :  { %7611 = vpow2.f32 %v6048_v42  ;;  %7242 = vmatprep.subr.bf16.mxu0 %v7787_v21  ;;  %7284 = vmatprep.subr.bf16.mxu1 %v7787_v21 }
0x4011   :  { %7244 = vmatpush3.bf16.msra.mxu0 %v8572_v60  ;;  %7286 = vmatpush3.bf16.msra.mxu1 %v8572_v60 }
0x4012   :  { %7245 = vmatprep.subr.bf16.mxu0 %v7787_v21  ;;  %7295 = vmatprep.subr.bf16.mxu1 %v7787_v21 }
0x4016   :  { %v7610_v41 = vpop.eup %7609 }
0x4017   :  { %3448 = vrot.lane.b32.xlu0 %v7610_v41, %s7788_s7 }
0x4018   :  { %v7612_v43 = vpop.eup %7611 }
0x4019   :  { %v3442_v44 = vadd.f32 1.0, %v7612_v43 }
0x401b   :  { %7613 = vrcp.f32 %v3442_v44 }
0x4025   :  { %v7614_v45 = vpop.eup %7613 }
0x4026   :  { %v3446_v19 = vmul.f32 %v7614_v45, %v3351_v55 }
0x4089   :  { %v3449_v46 = vpop.permute.xlu0 %3448 }
0x408a   :  { %v3451_v47 = vmul.f32 %v7614_v45, %v3449_v46 }
0x408c   :  { %3453 = vrot.lane.b32.xlu1 %v3451_v47, %s7789_s0 }
0x40fe   :  { %v3454_v51 = vpop.permute.xlu1 %3453 }
0x40ff   :  { %v3456_v53 = vadd.f32 %v3454_v51, %v3446_v19 }
0x4101   :  { %7615 = vtanh.f32 %v3456_v53 }
0x410b   :  { %v7616_v13 = vpop.eup %7615 }
0x410c   :  { %3459 = vrot.lane.b32.xlu0 %v7616_v13, %s7788_s7 }
0x417e   :  { %v3460_v2 = vpop.permute.xlu0 %3459 }
0x417f   :  { %v3462_v50 = vmul.f32 %v7614_v45, %v3460_v2  ;;  %v3593_v45 = vadd.f32 %v8594_v24, %v8507_v39 }
0x4181   :  { %3464 = vrot.lane.b32.xlu1 %v3462_v50, %s7789_s0 }
0x41f3   :  { %v3465_v4 = vpop.permute.xlu1 %3464 }
0x41f4   :  { %3468 = vst.msk [vmem:[#allocation5 + $0x38] sm:$0xff] %vm434_vm4, %v3465_v4 }
0x41fb   :  { %v3485_v6 = vld [vmem:[#allocation5 + $0x38] sm:$0xff] }
0x41fc   :  { %6790 = vmatmul.mubr.msk.f32.gmra.mrb[44].mxu0 %vm434_vm4, %v3485_v6 }
0x41fd   :  { %6800 = vmatprep.mubr.msk.f32.mxu0 %vm7786_vm0, %v7784_v1 }
0x4200   :  { %6801 = vmatmul.mubr.msk.f32.vlgmr.msra.gmra.mrb[46].mxu0 %vm434_vm4, %v8422_v3 }
0x4201   :  { %7247 = vmatpush3.bf16.msra.mxu0 %v8559_v57  ;;  %6811 = vmatprep.mubr.msk.f32.mxu0 %vm7786_vm0, %v7784_v1 }
0x4202   :  { %7248 = vmatprep.subr.bf16.mxu0 %v7787_v21 }
0x4205   :  { %7250 = vmatpush3.bf16.msra.mxu0 %v8572_v60 }
0x4206   :  { %7251 = vmatprep.subr.bf16.mxu0 %v7787_v21 }
0x42cf   :  { %v8596_v17 = vpop.f32.mrb[44].mxu0 }
0x42d0   :  { %v8598_v8 = vpop.f32.mrb[45].mxu0 }
0x42d3   :  { %v3696_v9 = vpop.f32.mrb[46].mxu0 }
0x42d4   :  { %v3700_v14 = vadd.f32 %v3696_v9, %v3583_v63  ;;  %v6802_v15 = vpop.f32.mrb[47].mxu0 }
0x42d6   :  { %7617 = vtanh.f32 %v3700_v14  ;;  %v6059_v18 = vmul.f32 -1.442695, %v3700_v14  ;;  %v3598_v14 = vadd.f32 %v8505_v38, %v8594_v24 }
0x42d8   :  { %7619 = vpow2.f32 %v6059_v18 }
0x42e0   :  { %v7618_v56 = vpop.eup %7617 }
0x42e1   :  { %3710 = vrot.lane.b32.xlu0 %v7618_v56, %s7788_s7 }
0x42e2   :  { %v7620_v20 = vpop.eup %7619 }
0x42e3   :  { %v3704_v16 = vadd.f32 1.0, %v7620_v20 }
0x42e5   :  { %7621 = vrcp.f32 %v3704_v16 }
0x42ef   :  { %v7622_v22 = vpop.eup %7621 }
0x42f0   :  { %v3708_v23 = vmul.f32 %v7622_v22, %v8422_v3 }
0x4353   :  { %v3711_v26 = vpop.permute.xlu0 %3710 }
0x4354   :  { %v3713_v27 = vmul.f32 %v7622_v22, %v3711_v26 }
0x4356   :  { %3715 = vrot.lane.b32.xlu1 %v3713_v27, %s7789_s0 }
0x43c8   :  { %v3716_v62 = vpop.permute.xlu1 %3715 }
0x43c9   :  { %v3718_v29 = vadd.f32 %v3716_v62, %v3708_v23 }
0x43cb   :  { %7623 = vtanh.f32 %v3718_v29 }
0x43d5   :  { %v7624_v7 = vpop.eup %7623 }
0x43d6   :  { %3721 = vrot.lane.b32.xlu0 %v7624_v7, %s7788_s7 }
0x4448   :  { %v3722_v49 = vpop.permute.xlu0 %3721 }
0x4449   :  { %v3724_v10 = vmul.f32 %v7622_v22, %v3722_v49 }
0x444b   :  { %3726 = vrot.lane.b32.xlu1 %v3724_v10, %s7789_s0 }
0x44bd   :  { %v3727_v25 = vpop.permute.xlu1 %3726 }
0x44be   :  { %3729 = vst.msk [vmem:[#allocation5] sm:$0xff] %vm434_vm4, %v3727_v25  ;;  %6812 = vmatmul.mubr.msk.f32.vlgmr.msra.gmra.mrb[48].mxu0 %vm434_vm4, %v3727_v25 }
0x44bf   :  { %7253 = vmatpush3.bf16.msra.mxu0 %v8559_v57  ;;  %6822 = vmatprep.mubr.msk.f32.mxu0 %vm7786_vm0, %v7784_v1 }
0x44c0   :  { %7254 = vmatprep.subr.bf16.mxu0 %v7787_v21 }
0x44c3   :  { %7256 = vmatpush3.bf16.msra.mxu0 %v8572_v60 }
0x44c4   :  { %7257 = vmatprep.subr.bf16.mxu0 %v7787_v21 }
0x4591   :  { %v3799_v30 = vpop.f32.mrb[48].mxu0 }
0x4592   :  { %v3803_v31 = vadd.f32 %v3799_v30, %v3588_v12  ;;  %v6813_v32 = vpop.f32.mrb[49].mxu0  ;;  %v3603_v30 = vadd.f32 %v8594_v24, %v8539_v48 }
0x4594   :  { %7625 = vtanh.f32 %v3803_v31  ;;  %v6061_v33 = vmul.f32 -1.442695, %v3803_v31 }
0x4596   :  { %7627 = vpow2.f32 %v6061_v33 }
0x459e   :  { %v7626_v55 = vpop.eup %7625 }
0x459f   :  { %3813 = vrot.lane.b32.xlu0 %v7626_v55, %s7788_s7 }
0x45a0   :  { %v7628_v34 = vpop.eup %7627 }
0x45a1   :  { %v3807_v54 = vadd.f32 1.0, %v7628_v34 }
0x45a3   :  { %7629 = vrcp.f32 %v3807_v54 }
0x45ad   :  { %v7630_v35 = vpop.eup %7629 }
0x45ae   :  { %v3811_v5 = vmul.f32 %v7630_v35, %v3718_v29 }
0x4611   :  { %v3814_v36 = vpop.permute.xlu0 %3813 }
0x4612   :  { %v3816_v37 = vmul.f32 %v7630_v35, %v3814_v36 }
0x4614   :  { %3818 = vrot.lane.b32.xlu1 %v3816_v37, %s7789_s0 }
0x4686   :  { %v3819_v40 = vpop.permute.xlu1 %3818 }
0x4687   :  { %v3821_v61 = vadd.f32 %v3819_v40, %v3811_v5 }
0x4689   :  { %7631 = vtanh.f32 %v3821_v61 }
0x4693   :  { %v7632_v41 = vpop.eup %7631 }
0x4694   :  { %3824 = vrot.lane.b32.xlu0 %v7632_v41, %s7788_s7 }
0x4706   :  { %v3825_v42 = vpop.permute.xlu0 %3824 }
0x4707   :  { %v3827_v43 = vmul.f32 %v7630_v35, %v3825_v42 }
0x4709   :  { %3829 = vrot.lane.b32.xlu1 %v3827_v43, %s7789_s0 }
0x477b   :  { %v3830_v44 = vpop.permute.xlu1 %3829 }
0x477c   :  { %3832 = vst.msk [vmem:[#allocation5 + $0x8] sm:$0xff] %vm434_vm4, %v3830_v44  ;;  %6823 = vmatmul.mubr.msk.f32.vlgmr.msra.gmra.mrb[50].mxu0 %vm434_vm4, %v3830_v44 }
0x477d   :  { %7259 = vmatpush3.bf16.msra.mxu0 %v8559_v57  ;;  %6833 = vmatprep.mubr.msk.f32.mxu0 %vm7786_vm0, %v7784_v1 }
0x477e   :  { %7260 = vmatprep.subr.bf16.mxu0 %v7787_v21 }
0x4781   :  { %7262 = vmatpush3.bf16.msra.mxu0 %v8572_v60 }
0x4782   :  { %7263 = vmatprep.subr.bf16.mxu0 %v7787_v21 }
0x484f   :  { %v3902_v46 = vpop.f32.mrb[50].mxu0 }
0x4850   :  { %v3906_v47 = vadd.f32 %v3902_v46, %v3593_v45  ;;  %v6824_v19 = vpop.f32.mrb[51].mxu0  ;;  %v3608_v45 = vadd.f32 %v8537_v28, %v8594_v24 }
0x4852   :  { %7633 = vtanh.f32 %v3906_v47  ;;  %v6063_v53 = vmul.f32 -1.442695, %v3906_v47 }
0x4854   :  { %7635 = vpow2.f32 %v6063_v53 }
0x485c   :  { %v7634_v51 = vpop.eup %7633 }
0x485d   :  { %3916 = vrot.lane.b32.xlu0 %v7634_v51, %s7788_s7 }
0x485e   :  { %v7636_v11 = vpop.eup %7635 }
0x485f   :  { %v3910_v52 = vadd.f32 1.0, %v7636_v11 }
0x4861   :  { %7637 = vrcp.f32 %v3910_v52 }
0x486b   :  { %v7638_v13 = vpop.eup %7637 }
0x486c   :  { %v3914_v2 = vmul.f32 %v7638_v13, %v3821_v61 }
0x48cf   :  { %v3917_v58 = vpop.permute.xlu0 %3916 }
0x48d0   :  { %v3919_v59 = vmul.f32 %v7638_v13, %v3917_v58 }
0x48d2   :  { %3921 = vrot.lane.b32.xlu1 %v3919_v59, %s7789_s0 }
0x4944   :  { %v3922_v50 = vpop.permute.xlu1 %3921 }
0x4945   :  { %v3924_v39 = vadd.f32 %v3922_v50, %v3914_v2  ;;  %v4451_v2 = vld [vmem:[%s9099_s19] sm:$0xff]  ;;  %v4452_v50 = vld [vmem:[%s9099_s19 + $0x8] sm:$0xff] }
0x4947   :  { %7639 = vtanh.f32 %v3924_v39 }
0x4951   :  { %v7640_v4 = vpop.eup %7639 }
0x4952   :  { %3927 = vrot.lane.b32.xlu0 %v7640_v4, %s7788_s7 }
0x49c4   :  { %v3928_v6 = vpop.permute.xlu0 %3927 }
0x49c5   :  { %v3930_v63 = vmul.f32 %v7638_v13, %v3928_v6 }
0x49c7   :  { %3932 = vrot.lane.b32.xlu1 %v3930_v63, %s7789_s0 }
0x4a39   :  { %v3933_v9 = vpop.permute.xlu1 %3932 }
0x4a3a   :  { %3935 = vst.msk [vmem:[#allocation5 + $0x10] sm:$0xff] %vm434_vm4, %v3933_v9  ;;  %6834 = vmatmul.mubr.msk.f32.vlgmr.msra.gmra.mrb[52].mxu0 %vm434_vm4, %v3933_v9  ;;  %v4453_v9 = vld [vmem:[%s9099_s19 + $0x10] sm:$0xff] }
0x4a3b   :  { %7265 = vmatpush3.bf16.msra.mxu0 %v8559_v57  ;;  %6844 = vmatprep.mubr.msk.f32.mxu0 %vm7786_vm0, %v7784_v1 }
0x4a3c   :  { %7266 = vmatprep.subr.bf16.mxu0 %v7787_v21 }
0x4a3f   :  { %7268 = vmatpush3.bf16.msra.mxu0 %v8572_v60 }
0x4a40   :  { %7269 = vmatprep.subr.bf16.mxu0 %v7787_v21 }
0x4b0d   :  { %v4005_v15 = vpop.f32.mrb[52].mxu0 }
0x4b0e   :  { %v4009_v56 = vadd.f32 %v4005_v15, %v3598_v14  ;;  %v6835_v18 = vpop.f32.mrb[53].mxu0  ;;  %v4454_v14 = vld [vmem:[%s9099_s19 + $0x18] sm:$0xff] }
0x4b0f   :  { %v7291_v15 = vpack.c.bf16 %v4454_v14, %v4453_v9  ;;  %v4460_v18 = vld [vmem:[#allocation5] sm:$0xff] }
0x4b10   :  { %7641 = vtanh.f32 %v4009_v56  ;;  %v6065_v16 = vmul.f32 -1.442695, %v4009_v56 }
0x4b12   :  { %7643 = vpow2.f32 %v6065_v16  ;;  %v4462_v16 = vld [vmem:[#allocation5 + $0x10] sm:$0xff] }
0x4b1a   :  { %v7642_v20 = vpop.eup %7641 }
0x4b1b   :  { %4019 = vrot.lane.b32.xlu0 %v7642_v20, %s7788_s7  ;;  %v4461_v20 = vld [vmem:[#allocation5 + $0x8] sm:$0xff] }
0x4b1c   :  { %v7644_v22 = vpop.eup %7643 }
0x4b1d   :  { %v4013_v26 = vadd.f32 1.0, %v7644_v22 }
0x4b1f   :  { %7645 = vrcp.f32 %v4013_v26 }
0x4b29   :  { %v7646_v27 = vpop.eup %7645 }
0x4b2a   :  { %v4017_v29 = vmul.f32 %v7646_v27, %v3924_v39  ;;  %v7287_v39 = vpack.c.bf16 %v4452_v50, %v4451_v2 }
0x4b8d   :  { %v4020_v23 = vpop.permute.xlu0 %4019 }
0x4b8e   :  { %v4022_v62 = vmul.f32 %v7646_v27, %v4020_v23  ;;  %v3613_v23 = vadd.f32 %v8594_v24, %v8598_v8 }
0x4b90   :  { %4024 = vrot.lane.b32.xlu1 %v4022_v62, %s7789_s0 }
0x4c02   :  { %v4025_v7 = vpop.permute.xlu1 %4024 }
0x4c03   :  { %v4027_v38 = vadd.f32 %v4025_v7, %v4017_v29 }
0x4c05   :  { %7647 = vtanh.f32 %v4027_v38 }
0x4c0f   :  { %v7648_v49 = vpop.eup %7647 }
0x4c10   :  { %4030 = vrot.lane.b32.xlu0 %v7648_v49, %s7788_s7 }
0x4c82   :  { %v4031_v10 = vpop.permute.xlu0 %4030 }
0x4c83   :  { %v4033_v25 = vmul.f32 %v7646_v27, %v4031_v10 }
0x4c85   :  { %4035 = vrot.lane.b32.xlu1 %v4033_v25, %s7789_s0 }
0x4cf7   :  { %v4036_v12 = vpop.permute.xlu1 %4035 }
0x4cf8   :  { %4038 = vst.msk [vmem:[#allocation5 + $0x18] sm:$0xff] %vm434_vm4, %v4036_v12  ;;  %6845 = vmatmul.mubr.msk.f32.vlgmr.msra.gmra.mrb[54].mxu0 %vm434_vm4, %v4036_v12 }
0x4cf9   :  { %7271 = vmatpush3.bf16.msra.mxu0 %v8559_v57  ;;  %6855 = vmatprep.mubr.msk.f32.mxu0 %vm7786_vm0, %v7784_v1 }
0x4cfa   :  { %7272 = vmatprep.subr.bf16.mxu0 %v7787_v21 }
0x4cfd   :  { %7274 = vmatpush3.bf16.msra.mxu0 %v8572_v60 }
0x4cfe   :  { %7275 = vmatprep.subr.bf16.mxu0 %v7787_v21 }
0x4cff   :  { %v4463_v22 = vld [vmem:[#allocation5 + $0x18] sm:$0xff] }
0x4dcb   :  { %v4108_v31 = vpop.f32.mrb[54].mxu0 }
0x4dcc   :  { %v4112_v32 = vadd.f32 %v4108_v31, %v3603_v30  ;;  %v6846_v55 = vpop.f32.mrb[55].mxu0 }
0x4dce   :  { %7649 = vtanh.f32 %v4112_v32  ;;  %v6067_v34 = vmul.f32 -1.442695, %v4112_v32 }
0x4dd0   :  { %7651 = vpow2.f32 %v6067_v34 }
0x4dd8   :  { %v7650_v33 = vpop.eup %7649 }
0x4dd9   :  { %4122 = vrot.lane.b32.xlu0 %v7650_v33, %s7788_s7 }
0x4dda   :  { %v7652_v54 = vpop.eup %7651 }
0x4ddb   :  { %v4116_v35 = vadd.f32 1.0, %v7652_v54 }
0x4ddd   :  { %7653 = vrcp.f32 %v4116_v35 }
0x4de7   :  { %v7654_v36 = vpop.eup %7653 }
0x4de8   :  { %v4120_v40 = vmul.f32 %v7654_v36, %v4027_v38 }
0x4e4b   :  { %v4123_v37 = vpop.permute.xlu0 %4122 }
0x4e4c   :  { %v4125_v5 = vmul.f32 %v7654_v36, %v4123_v37 }
0x4e4e   :  { %4127 = vrot.lane.b32.xlu1 %v4125_v5, %s7789_s0 }
0x4ec0   :  { %v4128_v61 = vpop.permute.xlu1 %4127 }
0x4ec1   :  { %v4130_v48 = vadd.f32 %v4128_v61, %v4120_v40  ;;  %v4455_v40 = vld [vmem:[%s9100_s20] sm:$0xff]  ;;  %v4456_v61 = vld [vmem:[%s9100_s20 + $0x8] sm:$0xff] }
0x4ec3   :  { %7655 = vtanh.f32 %v4130_v48 }
0x4ecd   :  { %v7656_v41 = vpop.eup %7655 }
0x4ece   :  { %4133 = vrot.lane.b32.xlu0 %v7656_v41, %s7788_s7  ;;  %v4457_v41 = vld [vmem:[%s9100_s20 + $0x10] sm:$0xff] }
0x4f40   :  { %v4134_v42 = vpop.permute.xlu0 %4133 }
0x4f41   :  { %v4136_v43 = vmul.f32 %v7654_v36, %v4134_v42  ;;  %v4458_v42 = vld [vmem:[%s9100_s20 + $0x18] sm:$0xff] }
0x4f43   :  { %4138 = vrot.lane.b32.xlu1 %v4136_v43, %s7789_s0  ;;  %v8731_v43 = vpack.c.bf16 %v4458_v42, %v4457_v41 }
0x4fb5   :  { %v4139_v44 = vpop.permute.xlu1 %4138 }
0x4fb6   :  { %4141 = vst.msk [vmem:[#allocation5 + $0x20] sm:$0xff] %vm434_vm4, %v4139_v44  ;;  %6856 = vmatmul.mubr.msk.f32.vlgmr.msra.gmra.mrb[56].mxu0 %vm434_vm4, %v4139_v44 }
0x4fb7   :  { %7277 = vmatpush3.bf16.msra.mxu0 %v8559_v57  ;;  %6866 = vmatprep.mubr.msk.f32.mxu0 %vm7786_vm0, %v7784_v1 }
0x4fb8   :  { %7278 = vmatprep.subr.bf16.mxu0 %v7787_v21 }
0x4fbb   :  { %7280 = vmatpush3.bf16.msra.mxu0 %v8572_v60 }
0x4fbc   :  { %7288 = vmatprep.subr.bf16.mxu0 %v7287_v39 }
0x4fbd   :  { %v4464_v26 = vld [vmem:[#allocation5 + $0x20] sm:$0xff] }
0x5089   :  { %v4211_v46 = vpop.f32.mrb[56].mxu0 }
0x508a   :  { %v4215_v47 = vadd.f32 %v4211_v46, %v3608_v45  ;;  %v6857_v19 = vpop.f32.mrb[57].mxu0 }
0x508b   :  { %v3618_v19 = vadd.f32 %v8596_v17, %v8594_v24 }
0x508c   :  { %7657 = vtanh.f32 %v4215_v47  ;;  %v6069_v53 = vmul.f32 -1.442695, %v4215_v47 }
0x508e   :  { %7659 = vpow2.f32 %v6069_v53 }
0x5096   :  { %v7658_v51 = vpop.eup %7657 }
0x5097   :  { %4225 = vrot.lane.b32.xlu0 %v7658_v51, %s7788_s7 }
0x5098   :  { %v7660_v57 = vpop.eup %7659 }
0x5099   :  { %v4219_v11 = vadd.f32 1.0, %v7660_v57 }
0x509b   :  { %7661 = vrcp.f32 %v4219_v11  ;;  %v8758_v11 = vld [vmem:[%s9101_s21] ss:$0 sm:$0xff] }
0x50a5   :  { %v7662_v52 = vpop.eup %7661 }
0x50a6   :  { %v4223_v60 = vmul.f32 %v7662_v52, %v4130_v48  ;;  %v8721_v48 = vpack.c.bf16 %v4456_v61, %v4455_v40 }
0x5109   :  { %v4226_v13 = vpop.permute.xlu0 %4225 }
0x510a   :  { %v4228_v58 = vmul.f32 %v7662_v52, %v4226_v13 }
0x510c   :  { %4230 = vrot.lane.b32.xlu1 %v4228_v58, %s7789_s0 }
0x517e   :  { %v4231_v59 = vpop.permute.xlu1 %4230 }
0x517f   :  { %v4233_v28 = vadd.f32 %v4231_v59, %v4223_v60 }
0x5181   :  { %7663 = vtanh.f32 %v4233_v28 }
0x518b   :  { %v7664_v4 = vpop.eup %7663 }
0x518c   :  { %4236 = vrot.lane.b32.xlu0 %v7664_v4, %s7788_s7 }
0x51fe   :  { %v4237_v6 = vpop.permute.xlu0 %4236 }
0x51ff   :  { %v4239_v63 = vmul.f32 %v7662_v52, %v4237_v6 }
0x5201   :  { %4241 = vrot.lane.b32.xlu1 %v4239_v63, %s7789_s0 }
0x5273   :  { %v4242_v56 = vpop.permute.xlu1 %4241 }
0x5274   :  { %4244 = vst.msk [vmem:[#allocation5 + $0x28] sm:$0xff] %vm434_vm4, %v4242_v56  ;;  %6867 = vmatmul.mubr.msk.f32.vlgmr.msra.gmra.mrb[58].mxu0 %vm434_vm4, %v4242_v56 }
0x5275   :  { %7290 = vmatpush3.bf16.msra.mxu0 %v7287_v39  ;;  %6888 = vmatprep.mubr.msk.f32.mxu0 %vm434_vm4, %v4460_v18 }
0x5276   :  { %7292 = vmatprep.subr.bf16.mxu0 %v7291_v15 }
0x5279   :  { %7294 = vmatpush3.bf16.msra.mxu0 %v7291_v15 }
0x527a   :  { %7307 = vmatprep.subr.bf16.mxu0 %v7787_v21 }
0x527b   :  { %v4465_v27 = vld [vmem:[#allocation5 + $0x28] sm:$0xff] }
0x527c   :  { %6889 = vmatmul.mubr.msk.f32.vlgmr.msra.gmra.mrb[60].mxu0 %vm434_vm4, %v4461_v20 }
0x527d   :  { %6891 = vmatprep.mubr.msk.f32.mxu0 %vm434_vm4, %v4462_v16  ;;  %7309 = vmatpush3.bf16.msra.mxu0 %v8721_v48 }
0x527e   :  { %7310 = vmatprep.subr.bf16.mxu0 %v7787_v21 }
0x5280   :  { %6892 = vmatmul.mubr.msk.f32.gmra.mrb[62].mxu0 %vm434_vm4, %v4463_v22 }
0x5281   :  { %6894 = vmatprep.mubr.msk.f32.mxu0 %vm434_vm4, %v4464_v26  ;;  %7312 = vmatpush3.bf16.msra.mxu0 %v8731_v43 }
0x5282   :  { %7319 = vmatprep.subr.bf16.mxu0 %v7787_v21 }
0x5284   :  { %6895 = vmatmul.mubr.msk.f32.gmra.mrb[64].mxu0 %vm434_vm4, %v4465_v27 }
0x5347   :  { %v4314_v62 = vpop.f32.mrb[58].mxu0 }
0x5348   :  { %v4318_v29 = vadd.f32 %v4314_v62, %v3613_v23  ;;  %v6868_v7 = vpop.f32.mrb[59].mxu0 }
0x534a   :  { %7665 = vtanh.f32 %v4318_v29  ;;  %v6071_v32 = vmul.f32 -1.442695, %v4318_v29 }
0x534c   :  { %7667 = vpow2.f32 %v6071_v32 }
0x534f   :  { %v8699_v38 = vpop.f32.mrb[60].mxu0 }
0x5350   :  { %v4564_v49 = vpop.f32.mrb[61].mxu0  ;;  %v4570_v32 = vadd.f32 %v8699_v38, %v8758_v11 }
0x5351   :  { %v4565_v52 = vadd.f32 %v8758_v11, %v4564_v49 }
0x5353   :  { %v8701_v10 = vpop.f32.mrb[62].mxu0 }
0x5354   :  { %v7666_v25 = vpop.eup %7665  ;;  %v8703_v12 = vpop.f32.mrb[63].mxu0 }
0x5355   :  { %4328 = vrot.lane.b32.xlu0 %v7666_v25, %s7788_s7 }
0x5356   :  { %v7668_v8 = vpop.eup %7667 }
0x5357   :  { %v8706_v30 = vpop.f32.mrb[64].mxu0  ;;  %v4322_v55 = vadd.f32 1.0, %v7668_v8 }
0x5358   :  { %v8708_v31 = vpop.f32.mrb[65].mxu0 }
0x5359   :  { %7669 = vrcp.f32 %v4322_v55 }
0x5363   :  { %v7670_v33 = vpop.eup %7669 }
0x5364   :  { %v4326_v35 = vmul.f32 %v7670_v33, %v4233_v28 }
0x53c7   :  { %v4329_v34 = vpop.permute.xlu0 %4328 }
0x53c8   :  { %v4331_v54 = vmul.f32 %v7670_v33, %v4329_v34 }
0x53ca   :  { %4333 = vrot.lane.b32.xlu1 %v4331_v54, %s7789_s0 }
0x543c   :  { %v4334_v36 = vpop.permute.xlu1 %4333 }
0x543d   :  { %v8711_v37 = vadd.f32 %v4334_v36, %v4326_v35 }
0x543f   :  { %7671 = vtanh.f32 %v8711_v37 }
0x5449   :  { %v7672_v5 = vpop.eup %7671 }
0x544a   :  { %4339 = vrot.lane.b32.xlu0 %v7672_v5, %s7788_s7 }
0x54bc   :  { %v4340_v44 = vpop.permute.xlu0 %4339 }
0x54bd   :  { %v4342_v45 = vmul.f32 %v7670_v33, %v4340_v44 }
0x54bf   :  { %4344 = vrot.lane.b32.xlu1 %v4342_v45, %s7789_s0 }
0x5531   :  { %v4345_v46 = vpop.permute.xlu1 %4344 }
0x5532   :  { %4347 = vst.msk [vmem:[#allocation5 + $0x30] sm:$0xff] %vm434_vm4, %v4345_v46  ;;  %6878 = vmatmul.mubr.msk.f32.vlgmr.msra.gmra.mrb[36].mxu1 %vm434_vm4, %v4345_v46 }
0x5533   :  { %7297 = vmatpush3.bf16.msra.mxu1 %v8721_v48  ;;  %6908 = vmatprep.mubr.msk.f32.mxu1 %vm7786_vm0, %v7784_v1 }
0x5534   :  { %7298 = vmatprep.subr.bf16.mxu1 %v7787_v21 }
0x5537   :  { %7300 = vmatpush3.bf16.msra.mxu1 %v8731_v43 }
0x5538   :  { %7301 = vmatprep.subr.bf16.mxu1 %v7787_v21 }
0x5539   :  { %v4466_v47 = vld [vmem:[#allocation5 + $0x30] sm:$0xff] }
0x553a   :  { %6909 = vmatmul.mubr.msk.f32.vlgmr.msra.gmra.mrb[38].mxu1 %vm434_vm4, %v8422_v3  ;;  %6897 = vmatprep.mubr.msk.f32.mxu0 %vm434_vm4, %v4466_v47 }
0x553b   :  { %7303 = vmatpush3.bf16.msra.mxu1 %v8721_v48  ;;  %6919 = vmatprep.mubr.msk.f32.mxu1 %vm7786_vm0, %v7784_v1 }
0x553c   :  { %7304 = vmatprep.subr.bf16.mxu1 %v7787_v21 }
0x553f   :  { %7306 = vmatpush3.bf16.msra.mxu1 %v8731_v43 }
0x5540   :  { %7313 = vmatprep.subr.bf16.mxu1 %v7787_v21 }
0x5605   :  { %v4417_v51 = vpop.f32.mrb[36].mxu1 }
0x5606   :  { %v4421_v53 = vadd.f32 %v4417_v51, %v3618_v19  ;;  %v6879_v57 = vpop.f32.mrb[37].mxu1 }
0x5607   :  { %v4575_v57 = vadd.f32 %v8758_v11, %v8703_v12 }
0x5608   :  { %v6073_v15 = vmul.f32 -1.442695, %v4421_v53 }
0x560d   :  { %v4678_v13 = vpop.f32.mrb[38].mxu1 }
0x560e   :  { %v4682_v58 = vadd.f32 %v4678_v13, %v4565_v52  ;;  %v6910_v60 = vpop.f32.mrb[39].mxu1 }
0x5610   :  { %7673 = vtanh.f32 %v4682_v58  ;;  %v6084_v28 = vmul.f32 -1.442695, %v4682_v58 }
0x5612   :  { %7675 = vpow2.f32 %v6084_v28 }
0x561a   :  { %v7674_v59 = vpop.eup %7673 }
0x561b   :  { %4692 = vrot.lane.b32.xlu0 %v7674_v59, %s7788_s7 }
0x561c   :  { %v7676_v24 = vpop.eup %7675 }
0x561d   :  { %v4686_v17 = vadd.f32 1.0, %v7676_v24 }
0x561f   :  { %7677 = vrcp.f32 %v4686_v17 }
0x5629   :  { %v7678_v2 = vpop.eup %7677 }
0x562a   :  { %v4690_v4 = vmul.f32 %v7678_v2, %v8422_v3 }
0x568d   :  { %v4693_v50 = vpop.permute.xlu0 %4692 }
0x568e   :  { %v4695_v39 = vmul.f32 %v7678_v2, %v4693_v50 }
0x5690   :  { %4697 = vrot.lane.b32.xlu1 %v4695_v39, %s7789_s0 }
0x5702   :  { %v4698_v6 = vpop.permute.xlu1 %4697 }
0x5703   :  { %v4700_v63 = vadd.f32 %v4698_v6, %v4690_v4 }
0x5705   :  { %7679 = vtanh.f32 %v4700_v63 }
0x5706   :  { %7681 = vtanh.f32 %v4421_v53 }
0x5707   :  { %7683 = vpow2.f32 %v6073_v15  ;;  %v4580_v15 = vadd.f32 %v8701_v10, %v8758_v11 }
0x570f   :  { %v7680_v9 = vpop.eup %7679 }
0x5710   :  { %4703 = vrot.lane.b32.xlu0 %v7680_v9, %s7788_s7  ;;  %v7682_v14 = vpop.eup %7681 }
0x5711   :  { %v7684_v56 = vpop.eup %7683 }
0x5712   :  { %v4425_v18 = vadd.f32 1.0, %v7684_v56 }
0x5714   :  { %4431 = vrot.lane.b32.xlu0 %v7682_v14, %s7788_s7  ;;  %7685 = vrcp.f32 %v4425_v18 }
0x571e   :  { %v7686_v3 = vpop.eup %7685 }
0x571f   :  { %v4429_v23 = vmul.f32 %v7686_v3, %v8711_v37 }
0x5782   :  { %v4704_v20 = vpop.permute.xlu0 %4703 }
0x5783   :  { %v4706_v16 = vmul.f32 %v7678_v2, %v4704_v20 }
0x5785   :  { %4708 = vrot.lane.b32.xlu1 %v4706_v16, %s7789_s0 }
0x5786   :  { %v4432_v22 = vpop.permute.xlu0 %4431 }
0x5787   :  { %v4434_v26 = vmul.f32 %v7686_v3, %v4432_v22 }
0x5789   :  { %4436 = vrot.lane.b32.xlu0 %v4434_v26, %s7789_s0 }
0x57f7   :  { %v4709_v27 = vpop.permute.xlu1 %4708 }
0x57f8   :  { %4711 = vst.msk [vmem:[#allocation5] sm:$0xff] %vm434_vm4, %v4709_v27  ;;  %6920 = vmatmul.mubr.msk.f32.vlgmr.msra.gmra.mrb[40].mxu1 %vm434_vm4, %v4709_v27 }
0x57f9   :  { %7315 = vmatpush3.bf16.msra.mxu1 %v8721_v48  ;;  %6941 = vmatprep.mubr.msk.f32.mxu1 %vm7786_vm0, %v7784_v1 }
0x57fa   :  { %7316 = vmatprep.subr.bf16.mxu1 %v7787_v21 }
0x57fb   :  { %v4437_v62 = vpop.permute.xlu0 %4436 }
0x57fc   :  { %v4439_v29 = vadd.f32 %v4437_v62, %v4429_v23 }
0x57fd   :  { %7318 = vmatpush3.bf16.msra.mxu1 %v8731_v43 }
0x57fe   :  { %7687 = vtanh.f32 %v4439_v29  ;;  %7325 = vmatprep.subr.bf16.mxu1 %v7787_v21 }
0x5808   :  { %v7688_v7 = vpop.eup %7687 }
0x5809   :  { %4442 = vrot.lane.b32.xlu0 %v7688_v7, %s7788_s7 }
0x587b   :  { %v4443_v49 = vpop.permute.xlu0 %4442 }
0x587c   :  { %v4445_v25 = vmul.f32 %v7686_v3, %v4443_v49 }
0x587e   :  { %4447 = vrot.lane.b32.xlu0 %v4445_v25, %s7789_s0 }
0x58cb   :  { %v4781_v8 = vpop.f32.mrb[40].mxu1 }
0x58cc   :  { %v4785_v55 = vadd.f32 %v4781_v8, %v4570_v32  ;;  %v6921_v33 = vpop.f32.mrb[41].mxu1 }
0x58ce   :  { %7689 = vtanh.f32 %v4785_v55  ;;  %v6086_v36 = vmul.f32 -1.442695, %v4785_v55  ;;  %v4585_v55 = vadd.f32 %v8758_v11, %v8708_v31 }
0x58d0   :  { %7691 = vpow2.f32 %v6086_v36 }
0x58d8   :  { %v7690_v34 = vpop.eup %7689 }
0x58d9   :  { %4795 = vrot.lane.b32.xlu1 %v7690_v34, %s7788_s7 }
0x58da   :  { %v7692_v37 = vpop.eup %7691 }
0x58db   :  { %v4789_v38 = vadd.f32 1.0, %v7692_v37 }
0x58dd   :  { %7693 = vrcp.f32 %v4789_v38 }
0x58e7   :  { %v7694_v5 = vpop.eup %7693 }
0x58e8   :  { %v4793_v41 = vmul.f32 %v7694_v5, %v4700_v63 }
0x58f0   :  { %v4448_v54 = vpop.permute.xlu0 %4447 }
0x58f1   :  { %4450 = vst.msk [vmem:[#allocation5 + $0x38] sm:$0xff] %vm434_vm4, %v4448_v54 }
0x58f8   :  { %v4467_v35 = vld [vmem:[#allocation5 + $0x38] sm:$0xff] }
0x58f9   :  { %6898 = vmatmul.mubr.msk.f32.gmra.mrb[66].mxu0 %vm434_vm4, %v4467_v35 }
0x58fa   :  { %6930 = vmatprep.mubr.msk.f32.mxu0 %vm7786_vm0, %v7784_v1 }
0x594b   :  { %v4796_v40 = vpop.permute.xlu1 %4795 }
0x594c   :  { %v4798_v61 = vmul.f32 %v7694_v5, %v4796_v40 }
0x594e   :  { %4800 = vrot.lane.b32.xlu1 %v4798_v61, %s7789_s0 }
0x59c0   :  { %v4801_v42 = vpop.permute.xlu1 %4800 }
0x59c1   :  { %v4803_v44 = vadd.f32 %v4801_v42, %v4793_v41 }
0x59c3   :  { %7695 = vtanh.f32 %v4803_v44 }
0x59cc   :  { %v8787_v45 = vpop.f32.mrb[66].mxu0 }
0x59cd   :  { %v7696_v46 = vpop.eup %7695  ;;  %v8789_v47 = vpop.f32.mrb[67].mxu0 }
0x59ce   :  { %4806 = vrot.lane.b32.xlu1 %v7696_v46, %s7788_s7 }
0x5a40   :  { %v4807_v19 = vpop.permute.xlu1 %4806 }
0x5a41   :  { %v4809_v51 = vmul.f32 %v7694_v5, %v4807_v19 }
0x5a43   :  { %4811 = vrot.lane.b32.xlu1 %v4809_v51, %s7789_s0 }
0x5ab5   :  { %v4812_v53 = vpop.permute.xlu1 %4811 }
0x5ab6   :  { %4814 = vst.msk [vmem:[#allocation5 + $0x8] sm:$0xff] %vm434_vm4, %v4812_v53  ;;  %6931 = vmatmul.mubr.msk.f32.vlgmr.msra.gmra.mrb[68].mxu0 %vm434_vm4, %v4812_v53  ;;  %v4590_v53 = vadd.f32 %v8706_v30, %v8758_v11 }
0x5ab7   :  { %7321 = vmatpush3.bf16.msra.mxu0 %v8721_v48  ;;  %6952 = vmatprep.mubr.msk.f32.mxu0 %vm7786_vm0, %v7784_v1 }
0x5ab8   :  { %7322 = vmatprep.subr.bf16.mxu0 %v7787_v21 }
0x5abb   :  { %7324 = vmatpush3.bf16.msra.mxu0 %v8731_v43 }
0x5abc   :  { %7331 = vmatprep.subr.bf16.mxu0 %v7787_v21 }
0x5b89   :  { %v4884_v52 = vpop.f32.mrb[68].mxu0 }
0x5b8a   :  { %v4888_v13 = vadd.f32 %v4884_v52, %v4575_v57  ;;  %v6932_v58 = vpop.f32.mrb[69].mxu0 }
0x5b8c   :  { %7697 = vtanh.f32 %v4888_v13  ;;  %v6088_v59 = vmul.f32 -1.442695, %v4888_v13 }
0x5b8e   :  { %7699 = vpow2.f32 %v6088_v59 }
0x5b96   :  { %v7698_v60 = vpop.eup %7697 }
0x5b97   :  { %4898 = vrot.lane.b32.xlu0 %v7698_v60, %s7788_s7 }
0x5b98   :  { %v7700_v28 = vpop.eup %7699 }
0x5b99   :  { %v4892_v24 = vadd.f32 1.0, %v7700_v28 }
0x5b9b   :  { %7701 = vrcp.f32 %v4892_v24 }
0x5ba5   :  { %v7702_v17 = vpop.eup %7701 }
0x5ba6   :  { %v4896_v39 = vmul.f32 %v7702_v17, %v4803_v44 }
0x5c09   :  { %v4899_v2 = vpop.permute.xlu0 %4898 }
0x5c0a   :  { %v4901_v50 = vmul.f32 %v7702_v17, %v4899_v2  ;;  %v5441_v2 = vld [vmem:[%s9102_s22] sm:$0xff] }
0x5c0c   :  { %4903 = vrot.lane.b32.xlu1 %v4901_v50, %s7789_s0  ;;  %v5442_v50 = vld [vmem:[%s9102_s22 + $0x8] sm:$0xff] }
0x5c7e   :  { %v4904_v4 = vpop.permute.xlu1 %4903 }
0x5c7f   :  { %v4906_v12 = vadd.f32 %v4904_v4, %v4896_v39  ;;  %v7343_v39 = vpack.c.bf16 %v5442_v50, %v5441_v2 }
0x5c81   :  { %7703 = vtanh.f32 %v4906_v12 }
0x5c8b   :  { %v7704_v6 = vpop.eup %7703 }
0x5c8c   :  { %4909 = vrot.lane.b32.xlu0 %v7704_v6, %s7788_s7 }
0x5cfe   :  { %v4910_v63 = vpop.permute.xlu0 %4909 }
0x5cff   :  { %v4912_v9 = vmul.f32 %v7702_v17, %v4910_v63  ;;  %v5443_v63 = vld [vmem:[%s9102_s22 + $0x10] sm:$0xff] }
0x5d01   :  { %4914 = vrot.lane.b32.xlu1 %v4912_v9, %s7789_s0  ;;  %v5444_v9 = vld [vmem:[%s9102_s22 + $0x18] sm:$0xff] }
0x5d73   :  { %v4915_v14 = vpop.permute.xlu1 %4914 }
0x5d74   :  { %4917 = vst.msk [vmem:[#allocation5 + $0x10] sm:$0xff] %vm434_vm4, %v4915_v14  ;;  %6942 = vmatmul.mubr.msk.f32.vlgmr.msra.gmra.mrb[42].mxu1 %vm434_vm4, %v4915_v14  ;;  %v7347_v14 = vpack.c.bf16 %v5444_v9, %v5443_v63 }
0x5d75   :  { %7327 = vmatpush3.bf16.msra.mxu1 %v8721_v48  ;;  %6963 = vmatprep.mubr.msk.f32.mxu1 %vm7786_vm0, %v7784_v1 }
0x5d76   :  { %7328 = vmatprep.subr.bf16.mxu1 %v7787_v21 }
0x5d79   :  { %7330 = vmatpush3.bf16.msra.mxu1 %v8731_v43 }
0x5d7a   :  { %7337 = vmatprep.subr.bf16.mxu1 %v7787_v21 }
0x5e47   :  { %v4987_v56 = vpop.f32.mrb[42].mxu1 }
0x5e48   :  { %v4991_v18 = vadd.f32 %v4987_v56, %v4580_v15  ;;  %v6943_v20 = vpop.f32.mrb[43].mxu1  ;;  %v5433_v56 = vld [vmem:[#allocation5] sm:$0xff] }
0x5e49   :  { %v5435_v20 = vld [vmem:[#allocation5 + $0x10] sm:$0xff] }
0x5e4a   :  { %7705 = vtanh.f32 %v4991_v18  ;;  %v6090_v3 = vmul.f32 -1.442695, %v4991_v18  ;;  %v5434_v18 = vld [vmem:[#allocation5 + $0x8] sm:$0xff] }
0x5e4c   :  { %7707 = vpow2.f32 %v6090_v3 }
0x5e54   :  { %v7706_v16 = vpop.eup %7705 }
0x5e55   :  { %5001 = vrot.lane.b32.xlu0 %v7706_v16, %s7788_s7 }
0x5e56   :  { %v7708_v22 = vpop.eup %7707 }
0x5e57   :  { %v4995_v26 = vadd.f32 1.0, %v7708_v22 }
0x5e59   :  { %7709 = vrcp.f32 %v4995_v26  ;;  %v4595_v26 = vadd.f32 %v8758_v11, %v8789_v47 }
0x5e63   :  { %v7710_v27 = vpop.eup %7709 }
0x5e64   :  { %v4999_v29 = vmul.f32 %v7710_v27, %v4906_v12 }
0x5ec7   :  { %v5002_v23 = vpop.permute.xlu0 %5001 }
0x5ec8   :  { %v5004_v62 = vmul.f32 %v7710_v27, %v5002_v23 }
0x5eca   :  { %5006 = vrot.lane.b32.xlu1 %v5004_v62, %s7789_s0 }
0x5f3c   :  { %v5007_v7 = vpop.permute.xlu1 %5006 }
0x5f3d   :  { %v5009_v10 = vadd.f32 %v5007_v7, %v4999_v29 }
0x5f3f   :  { %7711 = vtanh.f32 %v5009_v10 }
0x5f49   :  { %v7712_v49 = vpop.eup %7711 }
0x5f4a   :  { %5012 = vrot.lane.b32.xlu0 %v7712_v49, %s7788_s7 }
0x5fbc   :  { %v5013_v25 = vpop.permute.xlu0 %5012 }
0x5fbd   :  { %v5015_v32 = vmul.f32 %v7710_v27, %v5013_v25 }
0x5fbf   :  { %5017 = vrot.lane.b32.xlu1 %v5015_v32, %s7789_s0 }
0x6031   :  { %v5018_v8 = vpop.permute.xlu1 %5017 }
0x6032   :  { %5020 = vst.msk [vmem:[#allocation5 + $0x18] sm:$0xff] %vm434_vm4, %v5018_v8  ;;  %6953 = vmatmul.mubr.msk.f32.vlgmr.msra.gmra.mrb[70].mxu0 %vm434_vm4, %v5018_v8 }
0x6033   :  { %7333 = vmatpush3.bf16.msra.mxu0 %v8721_v48  ;;  %6974 = vmatprep.mubr.msk.f32.mxu0 %vm7786_vm0, %v7784_v1 }
0x6034   :  { %7334 = vmatprep.subr.bf16.mxu0 %v7787_v21 }
0x6037   :  { %7336 = vmatpush3.bf16.msra.mxu0 %v8731_v43 }
0x6038   :  { %7344 = vmatprep.subr.bf16.mxu0 %v7343_v39 }
0x6039   :  { %v5436_v16 = vld [vmem:[#allocation5 + $0x18] sm:$0xff] }
0x6105   :  { %v5090_v33 = vpop.f32.mrb[70].mxu0 }
0x6106   :  { %v5094_v34 = vadd.f32 %v5090_v33, %v4585_v55  ;;  %v6954_v54 = vpop.f32.mrb[71].mxu0 }
0x6108   :  { %7713 = vtanh.f32 %v5094_v34  ;;  %v6092_v36 = vmul.f32 -1.442695, %v5094_v34 }
0x610a   :  { %7715 = vpow2.f32 %v6092_v36 }
0x6112   :  { %v7714_v35 = vpop.eup %7713 }
0x6113   :  { %5104 = vrot.lane.b32.xlu0 %v7714_v35, %s7788_s7 }
0x6114   :  { %v7716_v37 = vpop.eup %7715 }
0x6115   :  { %v5098_v38 = vadd.f32 1.0, %v7716_v37 }
0x6117   :  { %7717 = vrcp.f32 %v5098_v38 }
0x6121   :  { %v7718_v5 = vpop.eup %7717 }
0x6122   :  { %v5102_v41 = vmul.f32 %v7718_v5, %v5009_v10 }
0x6185   :  { %v5105_v40 = vpop.permute.xlu0 %5104 }
0x6186   :  { %v5107_v61 = vmul.f32 %v7718_v5, %v5105_v40 }
0x6188   :  { %5109 = vrot.lane.b32.xlu1 %v5107_v61, %s7789_s0 }
0x61fa   :  { %v5110_v42 = vpop.permute.xlu1 %5109 }
0x61fb   :  { %v5112_v31 = vadd.f32 %v5110_v42, %v5102_v41 }
0x61fd   :  { %7719 = vtanh.f32 %v5112_v31 }
0x6207   :  { %v7720_v44 = vpop.eup %7719 }
0x6208   :  { %5115 = vrot.lane.b32.xlu0 %v7720_v44, %s7788_s7 }
0x627a   :  { %v5116_v46 = vpop.permute.xlu0 %5115 }
0x627b   :  { %v5118_v19 = vmul.f32 %v7718_v5, %v5116_v46 }
0x627d   :  { %5120 = vrot.lane.b32.xlu1 %v5118_v19, %s7789_s0 }
0x62ef   :  { %v5121_v51 = vpop.permute.xlu1 %5120 }
0x62f0   :  { %5123 = vst.msk [vmem:[#allocation5 + $0x20] sm:$0xff] %vm434_vm4, %v5121_v51  ;;  %6964 = vmatmul.mubr.msk.f32.vlgmr.msra.gmra.mrb[44].mxu1 %vm434_vm4, %v5121_v51 }
0x62f1   :  { %7339 = vmatpush3.bf16.msra.mxu1 %v8721_v48  ;;  %6985 = vmatprep.mubr.msk.f32.mxu1 %vm7786_vm0, %v7784_v1 }
0x62f2   :  { %7340 = vmatprep.subr.bf16.mxu1 %v7787_v21 }
0x62f5   :  { %7342 = vmatpush3.bf16.msra.mxu1 %v8731_v43 }
0x62f7   :  { %v5437_v3 = vld [vmem:[#allocation5 + $0x20] sm:$0xff] }
0x63c3   :  { %v5193_v57 = vpop.f32.mrb[44].mxu1 }
0x63c4   :  { %v5197_v52 = vadd.f32 %v5193_v57, %v4590_v53  ;;  %v6965_v13 = vpop.f32.mrb[45].mxu1 }
0x63c6   :  { %7721 = vtanh.f32 %v5197_v52  ;;  %v6094_v60 = vmul.f32 -1.442695, %v5197_v52 }
0x63c8   :  { %7723 = vpow2.f32 %v6094_v60 }
0x63d0   :  { %v7722_v58 = vpop.eup %7721 }
0x63d1   :  { %5207 = vrot.lane.b32.xlu0 %v7722_v58, %s7788_s7 }
0x63d2   :  { %v7724_v48 = vpop.eup %7723 }
0x63d3   :  { %v5201_v59 = vadd.f32 1.0, %v7724_v48 }
0x63d5   :  { %7725 = vrcp.f32 %v5201_v59 }
0x63df   :  { %v7726_v28 = vpop.eup %7725 }
0x63e0   :  { %v5205_v43 = vmul.f32 %v7726_v28, %v5112_v31  ;;  %v4600_v31 = vadd.f32 %v8787_v45, %v8758_v11 }
0x6443   :  { %v5208_v24 = vpop.permute.xlu0 %5207 }
0x6444   :  { %v5210_v21 = vmul.f32 %v7726_v28, %v5208_v24  ;;  %v8891_v24 = vld [vmem:[%s9103_s23] ss:$0 sm:$0xff] }
0x6446   :  { %5212 = vrot.lane.b32.xlu1 %v5210_v21, %s7789_s0 }
0x64b8   :  { %v5213_v17 = vpop.permute.xlu1 %5212 }
0x64b9   :  { %v5215_v30 = vadd.f32 %v5213_v17, %v5205_v43 }
0x64bb   :  { %7727 = vtanh.f32 %v5215_v30 }
0x64c5   :  { %v7728_v4 = vpop.eup %7727 }
0x64c6   :  { %5218 = vrot.lane.b32.xlu0 %v7728_v4, %s7788_s7  ;;  %v5643_v4 = vld [vmem:[%s9104_s24] sm:$0xff] }
0x6538   :  { %v5219_v12 = vpop.permute.xlu0 %5218 }
0x6539   :  { %v5221_v6 = vmul.f32 %v7726_v28, %v5219_v12  ;;  %v8886_v28 = vand.u32 127, %v98_v0  ;;  %v5644_v12 = vld [vmem:[%s9104_s24 + $0x8] sm:$0xff] }
0x653a   :  { %v7351_v9 = vpack.c.bf16 %v5644_v12, %v5643_v4  ;;  %v5764_v12 = vld [vmem:[%s9105_s25] sm:$0xff] }
0x653b   :  { %5223 = vrot.lane.b32.xlu1 %v5221_v6, %s7789_s0  ;;  %vm5583_vm8 = vcmp.lt.s32.totalorder %v8886_v28, 26  ;;  %v5645_v6 = vld [vmem:[%s9104_s24 + $0x10] sm:$0xff] }
0x653c   :  { %7352 = vmatprep.subr.bf16.mxu1 %v7351_v9 }
0x65ad   :  { %v5224_v15 = vpop.permute.xlu1 %5223 }
0x65ae   :  { %5226 = vst.msk [vmem:[#allocation5 + $0x28] sm:$0xff] %vm434_vm4, %v5224_v15  ;;  %6975 = vmatmul.mubr.msk.f32.vlgmr.msra.gmra.mrb[72].mxu0 %vm434_vm4, %v5224_v15 }
0x65af   :  { %7346 = vmatpush3.bf16.msra.mxu0 %v7343_v39  ;;  %6996 = vmatprep.mubr.msk.f32.mxu0 %vm434_vm4, %v5433_v56 }
0x65b0   :  { %7348 = vmatprep.subr.bf16.mxu0 %v7347_v14 }
0x65b3   :  { %7350 = vmatpush3.bf16.msra.mxu0 %v7347_v14  ;;  %v5646_v14 = vld [vmem:[%s9104_s24 + $0x18] sm:$0xff] }
0x65b4   :  { %v7355_v56 = vpack.c.bf16 %v5646_v14, %v5645_v6  ;;  %7052 = vmatprep.subr.mxu0 %v5764_v12 }
0x65b5   :  { %v5438_v22 = vld [vmem:[#allocation5 + $0x28] sm:$0xff] }
0x65b6   :  { %6997 = vmatmul.mubr.msk.f32.vlgmr.msra.gmra.mrb[74].mxu0 %vm434_vm4, %v5434_v18  ;;  %v5647_v18 = vld [vmem:[%s9104_s24 + $0x20] sm:$0xff] }
0x65b7   :  { %6999 = vmatprep.mubr.msk.f32.mxu0 %vm434_vm4, %v5435_v20  ;;  %v5648_v20 = vld [vmem:[%s9104_s24 + $0x28] sm:$0xff]  ;;  %7053 = vmatpush3.msra.mxu0 %v5764_v12 }
0x65ba   :  { %7000 = vmatmul.mubr.msk.f32.gmra.mrb[76].mxu0 %vm434_vm4, %v5436_v16  ;;  %v7359_v16 = vpack.c.bf16 %v5648_v20, %v5647_v18 }
0x65bb   :  { %7002 = vmatprep.mubr.msk.f32.mxu0 %vm434_vm4, %v5437_v3  ;;  %v5649_v3 = vld [vmem:[%s9104_s24 + $0x30] sm:$0xff] }
0x65be   :  { %7003 = vmatmul.mubr.msk.f32.gmra.mrb[78].mxu0 %vm434_vm4, %v5438_v22  ;;  %v5650_v22 = vld [vmem:[%s9104_s24 + $0x38] sm:$0xff] }
0x6681   :  { %v5296_v27 = vpop.f32.mrb[72].mxu0 }
0x6682   :  { %v5300_v23 = vadd.f32 %v5296_v27, %v4595_v26  ;;  %v6976_v62 = vpop.f32.mrb[73].mxu0  ;;  %v7363_v26 = vpack.c.bf16 %v5650_v22, %v5649_v3 }
0x6684   :  { %7729 = vtanh.f32 %v5300_v23  ;;  %v6096_v55 = vmul.f32 -1.442695, %v5300_v23 }
0x6686   :  { %7731 = vpow2.f32 %v6096_v55 }
0x6689   :  { %v8869_v29 = vpop.f32.mrb[74].mxu0 }
0x668a   :  { %v5542_v7 = vpop.f32.mrb[75].mxu0  ;;  %v5548_v27 = vadd.f32 %v8869_v29, %v8891_v24 }
0x668b   :  { %v5543_v21 = vadd.f32 %v8891_v24, %v5542_v7 }
0x668c   :  { %v5587_v62 = vsel %vm5583_vm8, %v5548_v27, -1e+30 }
0x668d   :  { %v7001_v10 = vpop.f32.mrb[76].mxu0  ;;  %v5586_v17 = vsel %vm5583_vm8, %v5543_v21, -1e+30 }
0x668e   :  { %v7730_v49 = vpop.eup %7729  ;;  %v5552_v25 = vpop.f32.mrb[77].mxu0 }
0x668f   :  { %5310 = vrot.lane.b32.xlu0 %v7730_v49, %s7788_s7  ;;  %v8896_v43 = vadd.f32 %v8891_v24, %v5552_v25  ;;  %v5652_v49 = vld [vmem:[%s9104_s24 + $0x48] sm:$0xff]  ;;  %v5653_v25 = vld [vmem:[%s9104_s24 + $0x50] sm:$0xff] }
0x6690   :  { %v7732_v33 = vpop.eup %7731 }
0x6691   :  { %v7004_v32 = vpop.f32.mrb[78].mxu0  ;;  %v5304_v34 = vadd.f32 1.0, %v7732_v33  ;;  %v5588_v0 = vsel %vm5583_vm8, %v8896_v43, -1e+30 }
0x6692   :  { %v8872_v8 = vpop.f32.mrb[79].mxu0  ;;  %v8907_v2 = vadd.f32 %v7004_v32, %v8891_v24  ;;  %v5654_v32 = vld [vmem:[%s9104_s24 + $0x58] sm:$0xff] }
0x6693   :  { %7733 = vrcp.f32 %v5304_v34  ;;  %v5563_v23 = vadd.f32 %v8891_v24, %v8872_v8  ;;  %v7371_v8 = vpack.c.bf16 %v5654_v32, %v5653_v25  ;;  %v5655_v34 = vld [vmem:[%s9104_s24 + $0x60] sm:$0xff] }
0x6694   :  { %v5591_v39 = vsel %vm5583_vm8, %v8907_v2, -1e+30 }
0x6695   :  { %v5590_v7 = vsel %vm5583_vm8, %v5563_v23, -1e+30 }
0x669d   :  { %v7734_v47 = vpop.eup %7733 }
0x669e   :  { %v5308_v36 = vmul.f32 %v7734_v47, %v5215_v30  ;;  %v8901_v30 = vadd.f32 %v7001_v10, %v8891_v24  ;;  %v5651_v10 = vld [vmem:[%s9104_s24 + $0x40] sm:$0xff] }
0x669f   :  { %v7367_v29 = vpack.c.bf16 %v5652_v49, %v5651_v10 }
0x66a0   :  { %v5589_v50 = vsel %vm5583_vm8, %v8901_v30, -1e+30 }
0x6701   :  { %v5311_v54 = vpop.permute.xlu0 %5310 }
0x6702   :  { %v5313_v35 = vmul.f32 %v7734_v47, %v5311_v54 }
0x6704   :  { %5315 = vrot.lane.b32.xlu1 %v5313_v35, %s7789_s0 }
0x6776   :  { %v5316_v37 = vpop.permute.xlu1 %5315 }
0x6777   :  { %v5318_v38 = vadd.f32 %v5316_v37, %v5308_v36  ;;  %v5657_v36 = vld [vmem:[%s9104_s24 + $0x70] sm:$0xff]  ;;  %v5658_v37 = vld [vmem:[%s9104_s24 + $0x78] sm:$0xff] }
0x6779   :  { %7735 = vtanh.f32 %v5318_v38 }
0x6783   :  { %v7736_v5 = vpop.eup %7735 }
0x6784   :  { %5321 = vrot.lane.b32.xlu0 %v7736_v5, %s7788_s7  ;;  %v8975_v5 = vsel %vm5583_vm8, 1.0, %v7784_v1 }
0x67f6   :  { %v5322_v40 = vpop.permute.xlu0 %5321 }
0x67f7   :  { %v5324_v61 = vmul.f32 %v7734_v47, %v5322_v40  ;;  %v5656_v47 = vld [vmem:[%s9104_s24 + $0x68] sm:$0xff] }
0x67f8   :  { %v7375_v35 = vpack.c.bf16 %v5656_v47, %v5655_v34 }
0x67f9   :  { %5326 = vrot.lane.b32.xlu1 %v5324_v61, %s7789_s0 }
0x686b   :  { %v5327_v41 = vpop.permute.xlu1 %5326 }
0x686c   :  { %5329 = vst.msk [vmem:[#allocation5 + $0x30] sm:$0xff] %vm434_vm4, %v5327_v41  ;;  %6986 = vmatmul.mubr.msk.f32.vlgmr.msra.gmra.mrb[46].mxu1 %vm434_vm4, %v5327_v41 }
0x686d   :  { %7354 = vmatpush3.bf16.msra.mxu1 %v7351_v9 }
0x686e   :  { %7356 = vmatprep.subr.bf16.mxu1 %v7355_v56 }
0x6871   :  { %7358 = vmatpush3.bf16.msra.mxu1 %v7355_v56 }
0x6872   :  { %7360 = vmatprep.subr.bf16.mxu1 %v7359_v16 }
0x6873   :  { %v5439_v42 = vld [vmem:[#allocation5 + $0x30] sm:$0xff] }
0x6874   :  { %7005 = vmatprep.mubr.msk.f32.mxu0 %vm434_vm4, %v5439_v42 }
0x6875   :  { %7362 = vmatpush3.bf16.msra.mxu1 %v7359_v16 }
0x6876   :  { %7364 = vmatprep.subr.bf16.mxu1 %v7363_v26 }
0x6879   :  { %7366 = vmatpush3.bf16.msra.mxu1 %v7363_v26 }
0x687a   :  { %7368 = vmatprep.subr.bf16.mxu1 %v7367_v29 }
0x687d   :  { %7370 = vmatpush3.bf16.msra.mxu1 %v7367_v29 }
0x687e   :  { %7372 = vmatprep.subr.bf16.mxu1 %v7371_v8 }
0x6881   :  { %7374 = vmatpush3.bf16.msra.mxu1 %v7371_v8 }
0x6882   :  { %7376 = vmatprep.subr.bf16.mxu1 %v7375_v35 }
0x6885   :  { %7378 = vmatpush3.bf16.msra.mxu1 %v7375_v35 }
0x693f   :  { %v5399_v44 = vpop.f32.mrb[46].mxu1 }
0x6940   :  { %v5403_v46 = vadd.f32 %v5399_v44, %v4600_v31  ;;  %v6987_v19 = vpop.f32.mrb[47].mxu1 }
0x6942   :  { %7737 = vtanh.f32 %v5403_v46  ;;  %v6098_v53 = vmul.f32 -1.442695, %v5403_v46 }
0x6944   :  { %7739 = vpow2.f32 %v6098_v53 }
0x694c   :  { %v7738_v51 = vpop.eup %7737 }
0x694d   :  { %5413 = vrot.lane.b32.xlu0 %v7738_v51, %s7788_s7 }
0x694e   :  { %v7740_v57 = vpop.eup %7739 }
0x694f   :  { %v5407_v52 = vadd.f32 1.0, %v7740_v57 }
0x6951   :  { %7741 = vrcp.f32 %v5407_v52 }
0x695b   :  { %v7742_v13 = vpop.eup %7741 }
0x695c   :  { %v5411_v48 = vmul.f32 %v7742_v13, %v5318_v38  ;;  %v7379_v38 = vpack.c.bf16 %v5658_v37, %v5657_v36 }
0x695e   :  { %7380 = vmatprep.subr.bf16.mxu1 %v7379_v38 }
0x695f   :  { %7382 = vmatpush3.bf16.msra.mxu1 %v7379_v38 }
0x69bf   :  { %v5414_v58 = vpop.permute.xlu0 %5413 }
0x69c0   :  { %v5416_v60 = vmul.f32 %v7742_v13, %v5414_v58 }
0x69c2   :  { %5418 = vrot.lane.b32.xlu1 %v5416_v60, %s7789_s0 }
0x6a34   :  { %v5419_v59 = vpop.permute.xlu1 %5418 }
0x6a35   :  { %v5421_v11 = vadd.f32 %v5419_v59, %v5411_v48 }
0x6a37   :  { %7743 = vtanh.f32 %v5421_v11 }
0x6a41   :  { %v7744_v45 = vpop.eup %7743 }
0x6a42   :  { %5424 = vrot.lane.b32.xlu0 %v7744_v45, %s7788_s7 }
0x6a61   :  { %5594 = vmax.xlane.f32.xlu0 %v5586_v17 }
0x6a65   :  { %5598 = vmax.xlane.f32.xlu0 %v5588_v0 }
0x6a69   :  { %5600 = vmax.xlane.f32.xlu0 %v5589_v50 }
0x6a6d   :  { %5604 = vmax.xlane.f32.xlu0 %v5591_v39 }
0x6ab4   :  { %v5425_v63 = vpop.permute.xlu0 %5424 }
0x6ab5   :  { %v5427_v15 = vmul.f32 %v7742_v13, %v5425_v63 }
0x6ab7   :  { %5429 = vrot.lane.b32.xlu1 %v5427_v15, %s7789_s0 }
0x6adb   :  { %5596 = vmax.xlane.f32.xlu1 %v5587_v62 }
0x6adf   :  { %5602 = vmax.xlane.f32.xlu1 %v5590_v7 }
0x6aee   :  { %v5595_v55 = vpop.xlane.xlu0 %5594 }
0x6aef   :  { %v5610_v33 = vsub.f32 %v5543_v21, %v5595_v55 }
0x6af1   :  { %v5618_v54 = vmul.f32 1.442695, %v5610_v33 }
0x6af2   :  { %v5599_v31 = vpop.xlane.xlu0 %5598 }
0x6af3   :  { %7745 = vpow2.f32 %v5618_v54  ;;  %v5612_v46 = vsub.f32 %v8896_v43, %v5599_v31 }
0x6af5   :  { %v5622_v1 = vmul.f32 1.442695, %v5612_v46 }
0x6af6   :  { %v5601_v44 = vpop.xlane.xlu0 %5600 }
0x6af7   :  { %v5613_v19 = vsub.f32 %v8901_v30, %v5601_v44  ;;  %7747 = vpow2.f32 %v5622_v1 }
0x6af9   :  { %v5624_v52 = vmul.f32 1.442695, %v5613_v19 }
0x6afa   :  { %v5605_v51 = vpop.xlane.xlu0 %5604 }
0x6afb   :  { %v5615_v13 = vsub.f32 %v8907_v2, %v5605_v51 }
0x6afd   :  { %v7746_v40 = vpop.eup %7745  ;;  %v5628_v59 = vmul.f32 1.442695, %v5615_v13 }
0x6afe   :  { %v8978_v61 = vmul.f32 %v7746_v40, %v8975_v5 }
0x6b00   :  { %7040 = vmatprep.mubr.f32.mxu1 %v8978_v61 }
0x6b01   :  { %v7748_v45 = vpop.eup %7747 }
0x6b02   :  { %v8990_v30 = vmul.f32 %v7748_v45, %v8975_v5 }
0x6b29   :  { %v5430_v41 = vpop.permute.xlu1 %5429 }
0x6b2a   :  { %5432 = vst.msk [vmem:[#allocation5 + $0x38] sm:$0xff] %vm434_vm4, %v5430_v41 }
0x6b31   :  { %v5440_v42 = vld [vmem:[#allocation5 + $0x38] sm:$0xff] }
0x6b32   :  { %7006 = vmatmul.mubr.msk.f32.gmra.mrb[80].mxu0 %vm434_vm4, %v5440_v42 }
0x6b68   :  { %v5597_v53 = vpop.xlane.xlu1 %5596 }
0x6b69   :  { %v5611_v57 = vsub.f32 %v5548_v27, %v5597_v53 }
0x6b6b   :  { %v5620_v58 = vmul.f32 1.442695, %v5611_v57 }
0x6b6c   :  { %v5603_v60 = vpop.xlane.xlu1 %5602 }
0x6b6d   :  { %7749 = vpow2.f32 %v5620_v58  ;;  %v5614_v48 = vsub.f32 %v5563_v23, %v5603_v60 }
0x6b6e   :  { %7751 = vpow2.f32 %v5624_v52 }
0x6b6f   :  { %v5626_v11 = vmul.f32 1.442695, %v5614_v48 }
0x6b71   :  { %7753 = vpow2.f32 %v5626_v11 }
0x6b72   :  { %7755 = vpow2.f32 %v5628_v59 }
0x6b77   :  { %v7750_v21 = vpop.eup %7749 }
0x6b78   :  { %v8987_v43 = vmul.f32 %v7750_v21, %v8975_v5  ;;  %v7752_v17 = vpop.eup %7751 }
0x6b79   :  { %v8995_v2 = vmul.f32 %v7752_v17, %v8975_v5 }
0x6b7a   :  { %7041 = vmatmul.mubr.f32.vlgmr.msra.gmra.mrb[48].mxu1 %v8987_v43 }
0x6b7b   :  { %v7754_v0 = vpop.eup %7753  ;;  %7043 = vmatprep.mubr.f32.mxu1 %v8990_v30 }
0x6b7c   :  { %v8998_v50 = vmul.f32 %v7754_v0, %v8975_v5  ;;  %v7756_v39 = vpop.eup %7755 }
0x6b7d   :  { %v9003_v4 = vmul.f32 %v7756_v39, %v8975_v5 }
0x6b7e   :  { %7044 = vmatmul.mubr.f32.gmra.mrb[50].mxu1 %v8995_v2 }
0x6b7f   :  { %7046 = vmatprep.mubr.f32.mxu1 %v8998_v50 }
0x6b82   :  { %7047 = vmatmul.mubr.f32.gmra.mrb[52].mxu1 %v9003_v4 }
0x6c05   :  { %v7007_v6 = vpop.f32.mrb[80].mxu0 }
0x6c06   :  { %v5578_v63 = vadd.f32 %v7007_v6, %v8891_v24  ;;  %v5572_v9 = vpop.f32.mrb[81].mxu0 }
0x6c07   :  { %v5573_v14 = vadd.f32 %v8891_v24, %v5572_v9 }
0x6c08   :  { %v5593_v15 = vsel %vm5583_vm8, %v5578_v63, -1e+30 }
0x6c09   :  { %5608 = vmax.xlane.f32.xlu0 %v5593_v15  ;;  %v5592_v56 = vsel %vm5583_vm8, %v5573_v14, -1e+30 }
0x6c0a   :  { %5606 = vmax.xlane.f32.xlu1 %v5592_v56 }
0x6c4d   :  { %v7042_v18 = vpop.f32.mrb[48].mxu1 }
0x6c4e   :  { %v5725_v20 = vpop.f32.mrb[49].mxu1 }
0x6c4f   :  { %7054 = vmatprep.mubr.msk.f32.mxu0 %vm2340_vm6, %v5725_v20 }
0x6c50   :  { %7055 = vmatmul.mubr.msk.f32.vlgmr.msra.gmra.mrb[82].mxu0 %vm2340_vm6, %v7042_v18 }
0x6c51   :  { %v7045_v16 = vpop.f32.mrb[50].mxu1 }
0x6c52   :  { %v5735_v3 = vpop.f32.mrb[51].mxu1 }
0x6c53   :  { %7057 = vmatprep.mubr.msk.f32.mxu0 %vm2340_vm6, %v5735_v3 }
0x6c54   :  { %7058 = vmatmul.mubr.msk.f32.gmra.mrb[84].mxu0 %vm2340_vm6, %v7045_v16 }
0x6c55   :  { %v7048_v24 = vpop.f32.mrb[52].mxu1 }
0x6c56   :  { %v5745_v22 = vpop.f32.mrb[53].mxu1 }
0x6c57   :  { %7060 = vmatprep.mubr.msk.f32.mxu0 %vm2340_vm6, %v5745_v22 }
0x6c58   :  { %7061 = vmatmul.mubr.msk.f32.gmra.mrb[86].mxu0 %vm2340_vm6, %v7048_v24 }
0x6c96   :  { %v5609_v26 = vpop.xlane.xlu0 %5608 }
0x6c97   :  { %v5617_v27 = vsub.f32 %v5578_v63, %v5609_v26  ;;  %v5607_v23 = vpop.xlane.xlu1 %5606 }
0x6c98   :  { %v5616_v62 = vsub.f32 %v5573_v14, %v5607_v23 }
0x6c99   :  { %v5632_v7 = vmul.f32 1.442695, %v5617_v27 }
0x6c9a   :  { %v5630_v10 = vmul.f32 1.442695, %v5616_v62 }
0x6c9b   :  { %7757 = vpow2.f32 %v5632_v7 }
0x6c9c   :  { %7759 = vpow2.f32 %v5630_v10 }
0x6ca5   :  { %v7758_v49 = vpop.eup %7757 }
0x6ca6   :  { %v7760_v29 = vpop.eup %7759  ;;  %v9025_v32 = vmul.f32 %v7758_v49, %v8975_v5 }
0x6ca7   :  { %v9022_v25 = vmul.f32 %v7760_v29, %v8975_v5 }
0x6ca9   :  { %7049 = vmatprep.mubr.f32.mxu1 %v9022_v25 }
0x6caa   :  { %7050 = vmatmul.mubr.f32.gmra.mrb[54].mxu1 %v9025_v32 }
0x6d23   :  { %v7056_v8 = vpop.f32.mrb[82].mxu0 }
0x6d24   :  { %v5895_v55 = vmax.f32 %v7056_v8, 1e-30  ;;  %v5855_v33 = vpop.f32.mrb[83].mxu0 }
0x6d25   :  { %v5894_v34 = vmax.f32 %v5855_v33, 1e-30 }
0x6d26   :  { %v5903_v47 = vsel %vm5583_vm8, %v5895_v55, 1.0 }
0x6d27   :  { %7761 = vrcp.f32 %v5903_v47  ;;  %v5902_v54 = vsel %vm5583_vm8, %v5894_v34, 1.0  ;;  %v7059_v35 = vpop.f32.mrb[84].mxu0 }
0x6d28   :  { %7763 = vrcp.f32 %v5902_v54  ;;  %v5897_v36 = vmax.f32 %v7059_v35, 1e-30  ;;  %v5865_v37 = vpop.f32.mrb[85].mxu0 }
0x6d29   :  { %v5896_v38 = vmax.f32 %v5865_v37, 1e-30 }
0x6d2a   :  { %v5905_v5 = vsel %vm5583_vm8, %v5897_v36, 1.0 }
0x6d2b   :  { %7765 = vrcp.f32 %v5905_v5  ;;  %v5904_v40 = vsel %vm5583_vm8, %v5896_v38, 1.0  ;;  %v7062_v41 = vpop.f32.mrb[86].mxu0 }
0x6d2c   :  { %7767 = vrcp.f32 %v5904_v40  ;;  %v5899_v42 = vmax.f32 %v7062_v41, 1e-30  ;;  %v5875_v31 = vpop.f32.mrb[87].mxu0 }
0x6d2d   :  { %v5898_v44 = vmax.f32 %v5875_v31, 1e-30 }
0x6d2e   :  { %v5907_v46 = vsel %vm5583_vm8, %v5899_v42, 1.0 }
0x6d2f   :  { %7769 = vrcp.f32 %v5907_v46  ;;  %v5906_v19 = vsel %vm5583_vm8, %v5898_v44, 1.0 }
0x6d30   :  { %7771 = vrcp.f32 %v5906_v19 }
0x6d31   :  { %v7762_v1 = vpop.eup %7761 }
0x6d32   :  { %v7764_v51 = vpop.eup %7763  ;;  %v5919_v53 = vmul.f32 %v7762_v1, %v5903_v47 }
0x6d33   :  { %v5918_v57 = vmul.f32 %v7764_v51, %v5902_v54 }
0x6d34   :  { %v5927_v52 = vsub.f32 2.0, %v5919_v53 }
0x6d35   :  { %v7766_v13 = vpop.eup %7765  ;;  %v5926_v58 = vsub.f32 2.0, %v5918_v57 }
0x6d36   :  { %v7768_v60 = vpop.eup %7767  ;;  %v5935_v48 = vmul.f32 %v7762_v1, %v5927_v52  ;;  %v5921_v59 = vmul.f32 %v7766_v13, %v5905_v5 }
0x6d37   :  { %v5934_v11 = vmul.f32 %v7764_v51, %v5926_v58  ;;  %v5920_v45 = vmul.f32 %v7768_v60, %v5904_v40 }
0x6d38   :  { %v5943_v21 = vmul.f32 %v5935_v48, %v8987_v43  ;;  %v5929_v17 = vsub.f32 2.0, %v5921_v59 }
0x6d39   :  { %v7770_v0 = vpop.eup %7769  ;;  %v5942_v39 = vmul.f32 %v5934_v11, %v8978_v61  ;;  %v5928_v12 = vsub.f32 2.0, %v5920_v45 }
0x6d3a   :  { %v7772_v6 = vpop.eup %7771  ;;  %5951 = vst [vmem:[%s9106_s27 + $0x8] sm:$0xff] %v5943_v21  ;;  %v5937_v63 = vmul.f32 %v7766_v13, %v5929_v17  ;;  %v5923_v9 = vmul.f32 %v7770_v0, %v5907_v46 }
0x6d3b   :  { %5950 = vst [vmem:[%s9106_s27] sm:$0xff] %v5942_v39  ;;  %v5936_v14 = vmul.f32 %v7768_v60, %v5928_v12  ;;  %v5922_v15 = vmul.f32 %v7772_v6, %v5906_v19 }
0x6d3c   :  { %v5945_v43 = vmul.f32 %v5937_v63, %v8995_v2  ;;  %v5931_v56 = vsub.f32 2.0, %v5923_v9 }
0x6d3d   :  { %v5944_v18 = vmul.f32 %v5936_v14, %v8990_v30  ;;  %v5930_v61 = vsub.f32 2.0, %v5922_v15 }
0x6d3e   :  { %5953 = vst [vmem:[%s9106_s27 + $0x18] sm:$0xff] %v5945_v43  ;;  %v5939_v20 = vmul.f32 %v7770_v0, %v5931_v56 }
0x6d3f   :  { %5952 = vst [vmem:[%s9106_s27 + $0x10] sm:$0xff] %v5944_v18  ;;  %v5938_v16 = vmul.f32 %v7772_v6, %v5930_v61 }
0x6d40   :  { %v5947_v3 = vmul.f32 %v5939_v20, %v9003_v4 }
0x6d41   :  { %v5946_v24 = vmul.f32 %v5938_v16, %v8998_v50 }
0x6d42   :  { %5955 = vst [vmem:[%s9106_s27 + $0x28] sm:$0xff] %v5947_v3 }
0x6d43   :  { %5954 = vst [vmem:[%s9106_s27 + $0x20] sm:$0xff] %v5946_v24 }
0x6d7d   :  { %v7051_v30 = vpop.f32.mrb[54].mxu1 }
0x6d7e   :  { %v5755_v2 = vpop.f32.mrb[55].mxu1 }
0x6d7f   :  { %7063 = vmatprep.mubr.msk.f32.mxu0 %vm2340_vm6, %v5755_v2 }
0x6d80   :  { %7064 = vmatmul.mubr.msk.f32.gmra.mrb[88].mxu0 %vm2340_vm6, %v7051_v30 }
0x6e53   :  { %v7065_v22 = vpop.f32.mrb[88].mxu0 }
0x6e54   :  { %v5901_v26 = vmax.f32 %v7065_v22, 1e-30  ;;  %v5885_v27 = vpop.f32.mrb[89].mxu0 }
0x6e55   :  { %v5900_v4 = vmax.f32 %v5885_v27, 1e-30 }
0x6e56   :  { %v5909_v50 = vsel %vm5583_vm8, %v5901_v26, 1.0 }
0x6e57   :  { %7773 = vrcp.f32 %v5909_v50  ;;  %v5908_v23 = vsel %vm5583_vm8, %v5900_v4, 1.0 }
0x6e58   :  { %7775 = vrcp.f32 %v5908_v23 }
0x6e61   :  { %v7774_v62 = vpop.eup %7773 }
0x6e62   :  { %v7776_v7 = vpop.eup %7775  ;;  %v5925_v10 = vmul.f32 %v7774_v62, %v5909_v50 }
0x6e63   :  { %v5924_v49 = vmul.f32 %v7776_v7, %v5908_v23 }
0x6e64   :  { %v5933_v29 = vsub.f32 2.0, %v5925_v10 }
0x6e65   :  { %v5932_v8 = vsub.f32 2.0, %v5924_v49 }
0x6e66   :  { %v5941_v55 = vmul.f32 %v7774_v62, %v5933_v29 }
0x6e67   :  { %v5940_v33 = vmul.f32 %v7776_v7, %v5932_v8 }
0x6e68   :  { %v5949_v34 = vmul.f32 %v5941_v55, %v9025_v32 }
0x6e69   :  { %v5948_v47 = vmul.f32 %v5940_v33, %v9022_v25 }
0x6e6a   :  { %5957 = vst [vmem:[%s9106_s27 + $0x38] sm:$0xff] %v5949_v34 }
0x6e6b   :  { %5956 = vst [vmem:[%s9106_s27 + $0x30] sm:$0xff] %v5948_v47 }

</bundles_post_ra>
